<compile_context>
chip_gen: v5e
topology: v5e:2x2
jax: 0.10.0
libtpu: 0.0.40
codegen_flags: <defaults>
</compile_context>

<pallas_src>
import functools

import jax
import jax.numpy as jnp
from jax.experimental import pallas as pl
from jax.experimental.pallas import tpu as pltpu


_LANE = 128   # channel dims are zero-padded to a multiple of the lane width
_SUB = 8      # padded W is rounded up to a multiple of the sublane width


def _round_up(v, m):
    return -(-v // m) * m


# ----------------------------------------------------------------------------
# Tiny one-off hardware probes (cached).  Cost: two sub-second compiles on the
# first call.  They let the main kernel pick safe fallbacks instead of failing
# if a Pallas feature behaves differently on the local stack.
# ----------------------------------------------------------------------------
@functools.lru_cache(maxsize=None)
def _hw_roll_shift_factor():
    """+1 if pltpu.roll(x, s) == jnp.roll(x, s), -1 if the opposite sign,
    None if pltpu.roll is unusable here (fall back to jnp.roll)."""
    try:
        x = jnp.arange(8 * 16 * 128, dtype=jnp.float32).reshape(8, 16, 128)

        def k(x_ref, o_ref):
            o_ref[...] = pltpu.roll(x_ref[...], 15, axis=1)   # == shift -1 mod 16

        y = pl.pallas_call(k, out_shape=jax.ShapeDtypeStruct(x.shape, x.dtype))(x)
        y = jax.block_until_ready(y)
        if bool(jnp.array_equal(y, jnp.roll(x, -1, axis=1))):
            return 1
        if bool(jnp.array_equal(y, jnp.roll(x, 1, axis=1))):
            return -1
        return None
    except Exception:
        return None


@functools.lru_cache(maxsize=None)
def _element_windows_ok():
    """True if overlapping row windows via pl.Element work on this backend."""
    try:
        tile, halo, wq, cq = 4, 4, 8, 128
        hq = 2 * tile + halo
        x = jnp.arange(hq * wq * cq, dtype=jnp.float32).reshape(1, hq, wq, cq)

        def k(x_ref, o_ref):
            o_ref[0] = x_ref[0]

        out = pl.pallas_call(
            k,
            out_shape=jax.ShapeDtypeStruct((2, tile + halo, wq, cq), jnp.float32),
            grid_spec=pltpu.PrefetchScalarGridSpec(
                num_scalar_prefetch=0,
                grid=(2,),
                in_specs=[pl.BlockSpec((1, pl.Element(tile + halo), wq, cq),
                                       lambda h: (0, h * tile, 0, 0))],
                out_specs=pl.BlockSpec((1, tile + halo, wq, cq),
                                       lambda h: (h, 0, 0, 0))),
        )(x)
        out = jax.block_until_ready(out)
        expect = jnp.stack([x[0, 0:tile + halo], x[0, tile:2 * tile + halo]])
        return bool(jnp.array_equal(out, expect))
    except Exception:
        return False


def _vmem_capacity_bytes():
    try:
        return int(pltpu.get_tpu_info().vmem_capacity_bytes)
    except Exception:
        return 64 * 1024 * 1024        # v7x per-core figure == safe lower bound


# ----------------------------------------------------------------------------
# VMEM-driven row-tile selection (review items: v7x 64 MiB fit, v5e/v6e bigger
# tiles, megacore grid parity).
# ----------------------------------------------------------------------------
def _step_vmem_bytes(th, W, Wp, c1p, cmp_, c2p, itemsize, chunk_rows):
    win = (th + 4) * Wp * c1p * itemsize           # overlapping input window
    out = th * W * c2p * itemsize                  # output tile
    mid = (th + 2) * Wp * cmp_ * itemsize          # cv1 scratch
    pack1 = (th + 4) * Wp * 3 * c1p * itemsize     # dx-packed cv1 operand
    pack2 = (th + 2) * Wp * 3 * cmp_ * itemsize    # dx-packed cv2 operand
    wts = 3 * (3 * c1p * cmp_ + 3 * cmp_ * c2p) * itemsize
    acc = 2 * chunk_rows * Wp * max(cmp_, c2p) * 4
    return 2 * (win + out + wts) + mid + pack1 + pack2 + acc


def _pick_row_tile(N, H, W, Wp, c1p, cmp_, c2p, itemsize, chunk_rows, budget):
    divisors = [d for d in range(H, 0, -1) if H % d == 0]
    fitting = [d for d in divisors
               if _step_vmem_bytes(d, W, Wp, c1p, cmp_, c2p, itemsize,
                                   chunk_rows) <= budget]
    cands = fitting if fitting else [divisors[-1]]
    if N % 2 == 1:                     # v7x megacore: keep N * (H // TH) even
        even = [d for d in cands if (H // d) % 2 == 0]
        if even:
            cands = even
    return cands[0]


# ----------------------------------------------------------------------------
# Kernel: one (batch, row-tile) step of cv1 -> BN -> SiLU -> cv2 -> BN -> SiLU
# (+ residual).  Both 3x3 convs run as 3 K-packed (K = 3*Cin) MXU matmuls,
# accumulated in f32, chunked over rows.
# ----------------------------------------------------------------------------
def _bottleneck_kernel(xp_ref, w1_ref, s1_ref, b1_ref, w2_ref, s2_ref, b2_ref,
                       o_ref, mid_ref,
                       *, TH, W, Wp, add, chunk_rows, roll_factor):
    # xp_ref : (1, TH+4, Wp, C1p)  overlapping input window (padded frame:
    #          window row r == image row h*TH - 2 + r, col j == image col j-1)
    # w*_ref : (3, 3*Cin_p, Cout_p) dx-packed weights; s/b: folded BN (f32)
    # mid_ref: (TH+2, Wp, Cmp)     cv1 output incl. 1-row halo each side
    h = pl.program_id(1)
    n_h = pl.num_programs(1)
    C1p = xp_ref.shape[-1]
    Cmp = w1_ref.shape[-1]
    C2p = w2_ref.shape[-1]
    R1 = TH + 2

    def shift_w(v, s):
        # result[..., w, :] == v[..., w + s, :].  Circular wrap only ever pulls
        # in zero-pad columns or lands on columns >= W that are discarded.
        if s == 0:
            return v
        if roll_factor is not None:
            amt = (roll_factor * (-s)) % v.shape[1]
            return pltpu.roll(v, amt, axis=1)        # XLU rotate (free slot)
        return jnp.roll(v, -s, axis=1)               # correctness fallback

    # ---- cv1: 3x3 conv + folded BN + SiLU over TH+2 rows ---------------------
    xw = xp_ref[0]                                               # (TH+4, Wp, C1p)
    px = jnp.concatenate([xw, shift_w(xw, 1), shift_w(xw, 2)], axis=-1)

    s1 = s1_ref[0]
    b1 = b1_ref[0]
    for m0 in range(0, R1, chunk_rows):              # chunked f32 accumulation
        mrows = min(chunk_rows, R1 - m0)
        acc = jnp.zeros((mrows * Wp, Cmp), jnp.float32)
        for dy in range(3):
            lhs = px[m0 + dy:m0 + dy + mrows].reshape(mrows * Wp, 3 * C1p)
            acc = acc + jnp.dot(lhs, w1_ref[dy],
                                preferred_element_type=jnp.float32)
        z = acc * s1 + b1
        y = z * jax.nn.sigmoid(z)                    # SiLU (EUP)
        mid_ref[m0:m0 + mrows] = y.reshape(mrows, Wp, Cmp).astype(mid_ref.dtype)

    # Columns >= W never hold valid conv outputs: zero them so cv2's circular
    # column shifts read zeros there (they provide cv2's left/right padding).
    mid_ref[:, W:, :] = jnp.zeros((R1, Wp - W, Cmp), mid_ref.dtype)

    @pl.when(h == 0)
    def _():                 # cv1 row above the image top == zero padding for cv2
        mid_ref[0:1] = jnp.zeros((1, Wp, Cmp), mid_ref.dtype)

    @pl.when(h == n_h - 1)
    def _():                 # cv1 row below the image bottom
        mid_ref[R1 - 1:R1] = jnp.zeros((1, Wp, Cmp), mid_ref.dtype)

    # ---- cv2: 3x3 conv + folded BN + SiLU over TH rows (+ residual) ----------
    mid = mid_ref[...]
    pm = jnp.concatenate([shift_w(mid, -1), mid, shift_w(mid, 1)], axis=-1)

    s2 = s2_ref[0]
    b2 = b2_ref[0]
    for r0 in range(0, TH, chunk_rows):
        rrows = min(chunk_rows, TH - r0)
        acc = jnp.zeros((rrows * Wp, C2p), jnp.float32)
        for dy in range(3):
            lhs = pm[r0 + dy:r0 + dy + rrows].reshape(rrows * Wp, 3 * Cmp)
            acc = acc + jnp.dot(lhs, w2_ref[dy],
                                preferred_element_type=jnp.float32)
        z = acc * s2 + b2
        y = (z * jax.nn.sigmoid(z)).reshape(rrows, Wp, C2p)[:, :W, :]
        if add:                                      # shortcut (c1 == c2)
            res = shift_w(xp_ref[0, 2 + r0:2 + r0 + rrows], 1)[:, :W, :]
            y = y + res.astype(jnp.float32)
        o_ref[0, r0:r0 + rrows] = y.astype(o_ref.dtype)


# ----------------------------------------------------------------------------
# Wrapper: NHWC in / NHWC out.
# ----------------------------------------------------------------------------
def bottleneck_forward(x, w1, s1, b1, w2, s2, b2,
                       shortcut=True, row_tile=None, chunk_rows=None):
    """x: NHWC.  w1, w2: HWIO 3x3 conv weights.  s*, b*: folded BatchNorm."""
    N, H, W, C1 = x.shape
    kh, kw, wci, Cm = w1.shape
    C2 = w2.shape[-1]
    assert (kh, kw) == (3, 3) and w2.shape[:2] == (3, 3), "kernel assumes k=(3,3)"
    assert wci == C1 and w2.shape[2] == Cm, "kernel assumes groups g=1"
    add = bool(shortcut and C1 == C2)

    C1p = _round_up(C1, _LANE)
    Cmp = _round_up(Cm, _LANE)
    C2p = _round_up(C2, _LANE)
    Wp = _round_up(W + 2, _SUB)

    dt = x.dtype
    itemsize = jnp.dtype(dt).itemsize

    if chunk_rows is None:
        chunk_rows = max(2, min(16, 512 // Wp))      # ~512 M-rows per matmul

    cap = _vmem_capacity_bytes()
    if row_tile is None:
        TH = _pick_row_tile(N, H, W, Wp, C1p, Cmp, C2p, itemsize,
                            chunk_rows, budget=int(cap * 0.55))
    else:
        TH = int(row_tile)
    assert TH >= 1 and H % TH == 0, "row_tile must divide H"
    n_h = H // TH

    # ---- weights: channel-padded to lane width and dx-packed (K = 3*Cin) ----
    def pack_w(w, cinp, coutp):
        wp = jnp.zeros((3, 3, cinp, coutp), dt)
        wp = wp.at[:, :, :w.shape[2], :w.shape[3]].set(w.astype(dt))
        return wp.reshape(3, 3 * cinp, coutp)

    def pad_vec(v, cp):
        return jnp.zeros((1, cp), jnp.float32).at[0, :v.shape[0]].set(
            v.astype(jnp.float32))

    w1p = pack_w(w1, C1p, Cmp)
    w2p = pack_w(w2, Cmp, C2p)
    s1p, b1p = pad_vec(s1, Cmp), pad_vec(b1, Cmp)
    s2p, b2p = pad_vec(s2, C2p), pad_vec(b2, C2p)

    # ---- input: zero-pad H (+2/+2), W (to Wp, left 1), C (to C1p) ------------
    # TODO(synk): in a full network this padded, lane-dense NHWC layout would be
    # kept across layers instead of being re-created per Bottleneck call.
    xp = jnp.pad(x, ((0, 0), (2, 2), (1, Wp - W - 1), (0, C1p - C1)))

    roll_factor = _hw_roll_shift_factor()
    if _element_windows_ok():
        # Overlapping TH+4-row windows read in place via element indexing.
        x_in = xp
        in_x_spec = pl.BlockSpec((1, pl.Element(TH + 4), Wp, C1p),
                                 lambda n, h: (n, h * TH, 0, 0))
    else:
        # Fallback: duplicate the halo rows once in HBM, then plain blocks.
        idx = (jnp.arange(n_h)[:, None] * TH
               + jnp.arange(TH + 4)[None, :]).reshape(-1)
        x_in = xp[:, idx]
        in_x_spec = pl.BlockSpec((1, TH + 4, Wp, C1p),
                                 lambda n, h: (n, h, 0, 0))

    kernel = functools.partial(
        _bottleneck_kernel, TH=TH, W=W, Wp=Wp, add=add,
        chunk_rows=chunk_rows, roll_factor=roll_factor)

    cost = pl.CostEstimate(
        flops=int(2 * 9 * N * H * Wp * (C1p * Cmp + Cmp * C2p)),
        transcendentals=int(N * H * Wp * (Cmp + C2p)),
        bytes_accessed=int((xp.size + N * H * W * C2p
                            + w1p.size + w2p.size) * itemsize
                           + 2 * (Cmp + C2p) * 4))

    out = pl.pallas_call(
        kernel,
        out_shape=jax.ShapeDtypeStruct((N, H, W, C2p), dt),
        grid_spec=pltpu.PrefetchScalarGridSpec(
            num_scalar_prefetch=0,
            grid=(N, n_h),
            in_specs=[
                in_x_spec,
                pl.BlockSpec((3, 3 * C1p, Cmp), lambda n, h: (0, 0, 0)),   # w1
                pl.BlockSpec((1, Cmp), lambda n, h: (0, 0)),               # s1
                pl.BlockSpec((1, Cmp), lambda n, h: (0, 0)),               # b1
                pl.BlockSpec((3, 3 * Cmp, C2p), lambda n, h: (0, 0, 0)),   # w2
                pl.BlockSpec((1, C2p), lambda n, h: (0, 0)),               # s2
                pl.BlockSpec((1, C2p), lambda n, h: (0, 0)),               # b2
            ],
            out_specs=pl.BlockSpec((1, TH, W, C2p), lambda n, h: (n, h, 0, 0)),
            scratch_shapes=[pltpu.VMEM((TH + 2, Wp, Cmp), dt)],            # mid
        ),
        compiler_params=pltpu.CompilerParams(
            dimension_semantics=("parallel", "parallel"),
            vmem_limit_bytes=int(cap * 0.85)),
        cost_estimate=cost,
    )(x_in, w1p, s1p, b1p, w2p, s2p, b2p)

    return out[..., :C2] if C2p != C2 else out


# ----------------------------------------------------------------------------
# Pure-JAX reference (correctness check only).
# ----------------------------------------------------------------------------
def _reference(x, w1, s1, b1, w2, s2, b2, add):
    def conv_bn_silu(inp, w, s, b):
        z = jax.lax.conv_general_dilated(
            inp, w, window_strides=(1, 1), padding="SAME",
            dimension_numbers=("NHWC", "HWIO", "NHWC"))
        z = z * s.reshape(1, 1, 1, -1) + b.reshape(1, 1, 1, -1)
        return z * jax.nn.sigmoid(z)

    y = conv_bn_silu(conv_bn_silu(x.astype(jnp.float32), w1, s1, b1), w2, s2, b2)
    return y + x if add else y


if __name__ == "__main__":
    # Bottleneck(c1=4, c2=4, shortcut=True, g=1, k=(3,3), e=0.5) -> c_ = 2
    N, H, W, C1 = 2, 16, 16, 4
    C2 = 4
    Cm = int(C2 * 0.5)
    eps = 1e-3  # ultralytics BatchNorm2d eps

    key = jax.random.PRNGKey(0)
    (kx, kw1, kw2, kg1, kg2, kb1, kb2, km1, km2, kv1, kv2) = jax.random.split(key, 11)

    x = jax.random.normal(kx, (N, H, W, C1), jnp.float32)            # NHWC

    w1 = 0.2 * jax.random.normal(kw1, (3, 3, C1, Cm), jnp.float32)   # HWIO
    w2 = 0.2 * jax.random.normal(kw2, (3, 3, Cm, C2), jnp.float32)

    gamma1 = 1.0 + 0.1 * jax.random.normal(kg1, (Cm,), jnp.float32)
    beta1 = 0.1 * jax.random.normal(kb1, (Cm,), jnp.float32)
    mean1 = 0.1 * jax.random.normal(km1, (Cm,), jnp.float32)
    var1 = 1.0 + 0.1 * jnp.abs(jax.random.normal(kv1, (Cm,), jnp.float32))

    gamma2 = 1.0 + 0.1 * jax.random.normal(kg2, (C2,), jnp.float32)
    beta2 = 0.1 * jax.random.normal(kb2, (C2,), jnp.float32)
    mean2 = 0.1 * jax.random.normal(km2, (C2,), jnp.float32)
    var2 = 1.0 + 0.1 * jnp.abs(jax.random.normal(kv2, (C2,), jnp.float32))

    s1 = gamma1 / jnp.sqrt(var1 + eps)
    b1 = beta1 - mean1 * s1
    s2 = gamma2 / jnp.sqrt(var2 + eps)
    b2 = beta2 - mean2 * s2

    y_ref = _reference(x, w1, s1, b1, w2, s2, b2, add=True)

    # row_tile=8 exercises the multi-tile path (overlapping windows, boundary
    # zeroing); row_tile=16 exercises the single-tile path.
    for th in (8, 16):
        y = bottleneck_forward(x, w1, s1, b1, w2, s2, b2,
                               shortcut=True, row_tile=th)
        y = jax.block_until_ready(y)
        assert y.shape == (N, H, W, C2)
        err = float(jnp.max(jnp.abs(y - y_ref)))
        assert err < 1e-4, err

    # No-shortcut path with auto row-tile selection.
    y_ref_ns = _reference(x, w1, s1, b1, w2, s2, b2, add=False)
    y_ns = bottleneck_forward(x, w1, s1, b1, w2, s2, b2, shortcut=False)
    y_ns = jax.block_until_ready(y_ns)
    assert y_ns.shape == (N, H, W, C2)
    err = float(jnp.max(jnp.abs(y_ns - y_ref_ns)))
    assert err < 1e-4, err

    print("KERNEL_OK")
</pallas_src>

<mosaic_0001>
module attributes {stable_mosaic.version = 11 : i64} {
  func.func @k(%arg0: memref<8x16x128xf32, #tpu.memory_space<vmem>>, %arg1: memref<8x16x128xf32, #tpu.memory_space<vmem>>) attributes {dimension_semantics = [], scalar_prefetch = 0 : i64, scratch_operands = 0 : i64, tpu.core_type = #tpu.core_type<tc>} {
    %c0 = arith.constant 0 : index
    %c0_0 = arith.constant 0 : index
    %c0_1 = arith.constant 0 : index
    %0 = vector.load %arg0[%c0, %c0_0, %c0_1] : memref<8x16x128xf32, #tpu.memory_space<vmem>>, vector<8x16x128xf32>
    %c15_i32 = arith.constant 15 : i32
    %1 = tpu.dynamic_rotate %0 by %c15_i32 dim 1 : vector<8x16x128xf32>, i32 -> vector<8x16x128xf32>
    %c0_2 = arith.constant 0 : index
    %c0_3 = arith.constant 0 : index
    %c0_4 = arith.constant 0 : index
    %2 = vector.load %arg1[%c0_2, %c0_3, %c0_4] : memref<8x16x128xf32, #tpu.memory_space<vmem>>, vector<8x16x128xf32>
    tpu.vector_store %arg1[%c0_2, %c0_3, %c0_4], %1 {strides = array<i32>} : memref<8x16x128xf32, #tpu.memory_space<vmem>>, vector<8x16x128xf32>,
    return
  }
}

module attributes {stable_mosaic.version = 11 : i64} {
  func.func @_bottleneck_kernel(%arg0: i32, %arg1: i32, %arg2: memref<1x12x24x128xf32, #tpu.memory_space<vmem>>, %arg3: memref<3x384x128xf32, #tpu.memory_space<vmem>>, %arg4: memref<1x128xf32, #tpu.memory_space<vmem>>, %arg5: memref<1x128xf32, #tpu.memory_space<vmem>>, %arg6: memref<3x384x128xf32, #tpu.memory_space<vmem>>, %arg7: memref<1x128xf32, #tpu.memory_space<vmem>>, %arg8: memref<1x128xf32, #tpu.memory_space<vmem>>, %arg9: memref<1x8x16x128xf32, #tpu.memory_space<vmem>>, %arg10: memref<10x24x128xf32, #tpu.memory_space<vmem>>) attributes {dimension_semantics = [#tpu.dimension_semantics<parallel>, #tpu.dimension_semantics<parallel>], iteration_bounds = array<i64: 2, 2>, scalar_prefetch = 0 : i64, scratch_operands = 1 : i64, tpu.core_type = #tpu.core_type<tc>, window_params = [{transform_indices = @transform_0, window_bounds = array<i64: 1, 12, 24, 128>}, {pipeline_mode = #tpu.pipeline_mode<synchronous>, transform_indices = @transform_1, window_bounds = array<i64: 3, 384, 128>}, {pipeline_mode = #tpu.pipeline_mode<synchronous>, transform_indices = @transform_2, window_bounds = array<i64: 1, 128>}, {pipeline_mode = #tpu.pipeline_mode<synchronous>, transform_indices = @transform_3, window_bounds = array<i64: 1, 128>}, {pipeline_mode = #tpu.pipeline_mode<synchronous>, transform_indices = @transform_4, window_bounds = array<i64: 3, 384, 128>}, {pipeline_mode = #tpu.pipeline_mode<synchronous>, transform_indices = @transform_5, window_bounds = array<i64: 1, 128>}, {pipeline_mode = #tpu.pipeline_mode<synchronous>, transform_indices = @transform_6, window_bounds = array<i64: 1, 128>}, {transform_indices = @transform_7, window_bounds = array<i64: 1, 8, 16, 128>}]} {
    %c0 = arith.constant 0 : index
    %c0_0 = arith.constant 0 : index
    %c0_1 = arith.constant 0 : index
    %c0_2 = arith.constant 0 : index
    %0 = vector.load %arg2[%c0, %c0_0, %c0_1, %c0_2] : memref<1x12x24x128xf32, #tpu.memory_space<vmem>>, vector<1x12x24x128xf32>
    %1 = vector.shape_cast %0 : vector<1x12x24x128xf32> to vector<12x24x128xf32>
    %2 = vector.extract_strided_slice %1 {offsets = [0, 1, 0], sizes = [12, 23, 128], strides = [1, 1, 1]} : vector<12x24x128xf32> to vector<12x23x128xf32>
    %3 = vector.extract_strided_slice %1 {offsets = [0, 0, 0], sizes = [12, 1, 128], strides = [1, 1, 1]} : vector<12x24x128xf32> to vector<12x1x128xf32>
    %4 = tpu.concatenate %2, %3 in 1 : vector<12x23x128xf32>, vector<12x1x128xf32> -> vector<12x24x128xf32>
    %5 = vector.extract_strided_slice %1 {offsets = [0, 2, 0], sizes = [12, 22, 128], strides = [1, 1, 1]} : vector<12x24x128xf32> to vector<12x22x128xf32>
    %6 = vector.extract_strided_slice %1 {offsets = [0, 0, 0], sizes = [12, 2, 128], strides = [1, 1, 1]} : vector<12x24x128xf32> to vector<12x2x128xf32>
    %7 = tpu.concatenate %5, %6 in 1 : vector<12x22x128xf32>, vector<12x2x128xf32> -> vector<12x24x128xf32>
    %8 = tpu.concatenate %1, %4, %7 in 2 : vector<12x24x128xf32>, vector<12x24x128xf32>, vector<12x24x128xf32> -> vector<12x24x384xf32>
    %c0_3 = arith.constant 0 : index
    %c0_4 = arith.constant 0 : index
    %9 = vector.load %arg4[%c0_3, %c0_4] : memref<1x128xf32, #tpu.memory_space<vmem>>, vector<1x128xf32>
    %10 = vector.shape_cast %9 : vector<1x128xf32> to vector<128xf32>
    %c0_5 = arith.constant 0 : index
    %c0_6 = arith.constant 0 : index
    %11 = vector.load %arg5[%c0_5, %c0_6] : memref<1x128xf32, #tpu.memory_space<vmem>>, vector<1x128xf32>
    %12 = vector.shape_cast %11 : vector<1x128xf32> to vector<128xf32>
    %cst = arith.constant 0.000000e+00 : f32
    %13 = vector.broadcast %cst : f32 to vector<240x128xf32>
    %14 = vector.extract_strided_slice %8 {offsets = [0, 0, 0], sizes = [10, 24, 384], strides = [1, 1, 1]} : vector<12x24x384xf32> to vector<10x24x384xf32>
    %15 = vector.shape_cast %14 : vector<10x24x384xf32> to vector<240x384xf32>
    %c0_7 = arith.constant 0 : index
    %c0_8 = arith.constant 0 : index
    %c0_9 = arith.constant 0 : index
    %16 = vector.load %arg3[%c0_7, %c0_8, %c0_9] : memref<3x384x128xf32, #tpu.memory_space<vmem>>, vector<1x384x128xf32>
    %17 = vector.shape_cast %16 : vector<1x384x128xf32> to vector<384x128xf32>
    %cst_10 = arith.constant dense<0.000000e+00> : vector<240x128xf32>
    %18 = tpu.matmul %15, %17, %cst_10 {dimension_numbers = #tpu.dot_dimension_numbers<[1], [0], [0], [1], [0, 0, 1, 1], [], []>} : vector<240x384xf32>, vector<384x128xf32>, vector<240x128xf32> -> vector<240x128xf32>
    %19 = arith.addf %13, %18 : vector<240x128xf32>
    %20 = vector.extract_strided_slice %8 {offsets = [1, 0, 0], sizes = [10, 24, 384], strides = [1, 1, 1]} : vector<12x24x384xf32> to vector<10x24x384xf32>
    %21 = vector.shape_cast %20 : vector<10x24x384xf32> to vector<240x384xf32>
    %c1 = arith.constant 1 : index
    %c0_11 = arith.constant 0 : index
    %c0_12 = arith.constant 0 : index
    %22 = vector.load %arg3[%c1, %c0_11, %c0_12] : memref<3x384x128xf32, #tpu.memory_space<vmem>>, vector<1x384x128xf32>
    %23 = vector.shape_cast %22 : vector<1x384x128xf32> to vector<384x128xf32>
    %cst_13 = arith.constant dense<0.000000e+00> : vector<240x128xf32>
    %24 = tpu.matmul %21, %23, %cst_13 {dimension_numbers = #tpu.dot_dimension_numbers<[1], [0], [0], [1], [0, 0, 1, 1], [], []>} : vector<240x384xf32>, vector<384x128xf32>, vector<240x128xf32> -> vector<240x128xf32>
    %25 = arith.addf %19, %24 : vector<240x128xf32>
    %26 = vector.extract_strided_slice %8 {offsets = [2, 0, 0], sizes = [10, 24, 384], strides = [1, 1, 1]} : vector<12x24x384xf32> to vector<10x24x384xf32>
    %27 = vector.shape_cast %26 : vector<10x24x384xf32> to vector<240x384xf32>
    %c2 = arith.constant 2 : index
    %c0_14 = arith.constant 0 : index
    %c0_15 = arith.constant 0 : index
    %28 = vector.load %arg3[%c2, %c0_14, %c0_15] : memref<3x384x128xf32, #tpu.memory_space<vmem>>, vector<1x384x128xf32>
    %29 = vector.shape_cast %28 : vector<1x384x128xf32> to vector<384x128xf32>
    %cst_16 = arith.constant dense<0.000000e+00> : vector<240x128xf32>
    %30 = tpu.matmul %27, %29, %cst_16 {dimension_numbers = #tpu.dot_dimension_numbers<[1], [0], [0], [1], [0, 0, 1, 1], [], []>} : vector<240x384xf32>, vector<384x128xf32>, vector<240x128xf32> -> vector<240x128xf32>
    %31 = arith.addf %25, %30 : vector<240x128xf32>
    %32 = vector.shape_cast %10 : vector<128xf32> to vector<1x128xf32>
    %33 = vector.broadcast %32 : vector<1x128xf32> to vector<240x128xf32>
    %34 = arith.mulf %31, %33 : vector<240x128xf32>
    %35 = vector.shape_cast %12 : vector<128xf32> to vector<1x128xf32>
    %36 = vector.broadcast %35 : vector<1x128xf32> to vector<240x128xf32>
    %37 = arith.addf %34, %36 : vector<240x128xf32>
    %38 = arith.negf %37 : vector<240x128xf32>
    %39 = math.exp %38 : vector<240x128xf32>
    %cst_17 = arith.constant 1.000000e+00 : f32
    %40 = vector.broadcast %cst_17 : f32 to vector<240x128xf32>
    %41 = arith.addf %40, %39 : vector<240x128xf32>
    %42 = arith.divf %40, %41 : vector<240x128xf32>
    %43 = arith.mulf %37, %42 : vector<240x128xf32>
    %44 = vector.shape_cast %43 : vector<240x128xf32> to vector<10x24x128xf32>
    %c0_18 = arith.constant 0 : index
    %c0_19 = arith.constant 0 : index
    %c0_20 = arith.constant 0 : index
    %45 = vector.load %arg10[%c0_18, %c0_19, %c0_20] : memref<10x24x128xf32, #tpu.memory_space<vmem>>, vector<10x24x128xf32>
    tpu.vector_store %arg10[%c0_18, %c0_19, %c0_20], %44 {strides = array<i32>} : memref<10x24x128xf32, #tpu.memory_space<vmem>>, vector<10x24x128xf32>,
    %cst_21 = arith.constant 0.000000e+00 : f32
    %46 = vector.broadcast %cst_21 : f32 to vector<10x8x128xf32>
    %c0_22 = arith.constant 0 : index
    %c16 = arith.constant 16 : index
    %c0_23 = arith.constant 0 : index
    %47 = vector.load %arg10[%c0_22, %c16, %c0_23] : memref<10x24x128xf32, #tpu.memory_space<vmem>>, vector<10x8x128xf32>
    tpu.vector_store %arg10[%c0_22, %c16, %c0_23], %46 {strides = array<i32>} : memref<10x24x128xf32, #tpu.memory_space<vmem>>, vector<10x8x128xf32>,
    %c0_i32 = arith.constant 0 : i32
    %48 = arith.cmpi eq, %arg1, %c0_i32 : i32
    %49 = arith.extui %48 : i1 to i32
    %c0_i32_24 = arith.constant 0 : i32
    %50 = arith.cmpi ne, %49, %c0_i32_24 : i32
    scf.if %50 {
      %cst_55 = arith.constant 0.000000e+00 : f32
      %109 = vector.broadcast %cst_55 : f32 to vector<1x24x128xf32>
      %c0_56 = arith.constant 0 : index
      %c0_57 = arith.constant 0 : index
      %c0_58 = arith.constant 0 : index
      %110 = vector.load %arg10[%c0_56, %c0_57, %c0_58] : memref<10x24x128xf32, #tpu.memory_space<vmem>>, vector<1x24x128xf32>
      tpu.vector_store %arg10[%c0_56, %c0_57, %c0_58], %109 {strides = array<i32>} : memref<10x24x128xf32, #tpu.memory_space<vmem>>, vector<1x24x128xf32>,
    } else {
    }
    %c1_i32 = arith.constant 1 : i32
    %51 = arith.cmpi eq, %arg1, %c1_i32 : i32
    %52 = arith.extui %51 : i1 to i32
    %c0_i32_25 = arith.constant 0 : i32
    %53 = arith.cmpi ne, %52, %c0_i32_25 : i32
    scf.if %53 {
      %cst_55 = arith.constant 0.000000e+00 : f32
      %109 = vector.broadcast %cst_55 : f32 to vector<1x24x128xf32>
      %c9 = arith.constant 9 : index
      %c0_56 = arith.constant 0 : index
      %c0_57 = arith.constant 0 : index
      %110 = vector.load %arg10[%c9, %c0_56, %c0_57] : memref<10x24x128xf32, #tpu.memory_space<vmem>>, vector<1x24x128xf32>
      tpu.vector_store %arg10[%c9, %c0_56, %c0_57], %109 {strides = array<i32>} : memref<10x24x128xf32, #tpu.memory_space<vmem>>, vector<1x24x128xf32>,
    } else {
    }
    %c0_26 = arith.constant 0 : index
    %c0_27 = arith.constant 0 : index
    %c0_28 = arith.constant 0 : index
    %54 = vector.load %arg10[%c0_26, %c0_27, %c0_28] : memref<10x24x128xf32, #tpu.memory_space<vmem>>, vector<10x24x128xf32>
    %55 = vector.extract_strided_slice %54 {offsets = [0, 23, 0], sizes = [10, 1, 128], strides = [1, 1, 1]} : vector<10x24x128xf32> to vector<10x1x128xf32>
    %56 = vector.extract_strided_slice %54 {offsets = [0, 0, 0], sizes = [10, 23, 128], strides = [1, 1, 1]} : vector<10x24x128xf32> to vector<10x23x128xf32>
    %57 = tpu.concatenate %55, %56 in 1 : vector<10x1x128xf32>, vector<10x23x128xf32> -> vector<10x24x128xf32>
    %58 = vector.extract_strided_slice %54 {offsets = [0, 1, 0], sizes = [10, 23, 128], strides = [1, 1, 1]} : vector<10x24x128xf32> to vector<10x23x128xf32>
    %59 = vector.extract_strided_slice %54 {offsets = [0, 0, 0], sizes = [10, 1, 128], strides = [1, 1, 1]} : vector<10x24x128xf32> to vector<10x1x128xf32>
    %60 = tpu.concatenate %58, %59 in 1 : vector<10x23x128xf32>, vector<10x1x128xf32> -> vector<10x24x128xf32>
    %61 = tpu.concatenate %57, %54, %60 in 2 : vector<10x24x128xf32>, vector<10x24x128xf32>, vector<10x24x128xf32> -> vector<10x24x384xf32>
    %c0_29 = arith.constant 0 : index
    %c0_30 = arith.constant 0 : index
    %62 = vector.load %arg7[%c0_29, %c0_30] : memref<1x128xf32, #tpu.memory_space<vmem>>, vector<1x128xf32>
    %63 = vector.shape_cast %62 : vector<1x128xf32> to vector<128xf32>
    %c0_31 = arith.constant 0 : index
    %c0_32 = arith.constant 0 : index
    %64 = vector.load %arg8[%c0_31, %c0_32] : memref<1x128xf32, #tpu.memory_space<vmem>>, vector<1x128xf32>
    %65 = vector.shape_cast %64 : vector<1x128xf32> to vector<128xf32>
    %cst_33 = arith.constant 0.000000e+00 : f32
    %66 = vector.broadcast %cst_33 : f32 to vector<192x128xf32>
    %67 = vector.extract_strided_slice %61 {offsets = [0, 0, 0], sizes = [8, 24, 384], strides = [1, 1, 1]} : vector<10x24x384xf32> to vector<8x24x384xf32>
    %68 = vector.shape_cast %67 : vector<8x24x384xf32> to vector<192x384xf32>
    %c0_34 = arith.constant 0 : index
    %c0_35 = arith.constant 0 : index
    %c0_36 = arith.constant 0 : index
    %69 = vector.load %arg6[%c0_34, %c0_35, %c0_36] : memref<3x384x128xf32, #tpu.memory_space<vmem>>, vector<1x384x128xf32>
    %70 = vector.shape_cast %69 : vector<1x384x128xf32> to vector<384x128xf32>
    %cst_37 = arith.constant dense<0.000000e+00> : vector<192x128xf32>
    %71 = tpu.matmul %68, %70, %cst_37 {dimension_numbers = #tpu.dot_dimension_numbers<[1], [0], [0], [1], [0, 0, 1, 1], [], []>} : vector<192x384xf32>, vector<384x128xf32>, vector<192x128xf32> -> vector<192x128xf32>
    %72 = arith.addf %66, %71 : vector<192x128xf32>
    %73 = vector.extract_strided_slice %61 {offsets = [1, 0, 0], sizes = [8, 24, 384], strides = [1, 1, 1]} : vector<10x24x384xf32> to vector<8x24x384xf32>
    %74 = vector.shape_cast %73 : vector<8x24x384xf32> to vector<192x384xf32>
    %c1_38 = arith.constant 1 : index
    %c0_39 = arith.constant 0 : index
    %c0_40 = arith.constant 0 : index
    %75 = vector.load %arg6[%c1_38, %c0_39, %c0_40] : memref<3x384x128xf32, #tpu.memory_space<vmem>>, vector<1x384x128xf32>
    %76 = vector.shape_cast %75 : vector<1x384x128xf32> to vector<384x128xf32>
    %cst_41 = arith.constant dense<0.000000e+00> : vector<192x128xf32>
    %77 = tpu.matmul %74, %76, %cst_41 {dimension_numbers = #tpu.dot_dimension_numbers<[1], [0], [0], [1], [0, 0, 1, 1], [], []>} : vector<192x384xf32>, vector<384x128xf32>, vector<192x128xf32> -> vector<192x128xf32>
    %78 = arith.addf %72, %77 : vector<192x128xf32>
    %79 = vector.extract_strided_slice %61 {offsets = [2, 0, 0], sizes = [8, 24, 384], strides = [1, 1, 1]} : vector<10x24x384xf32> to vector<8x24x384xf32>
    %80 = vector.shape_cast %79 : vector<8x24x384xf32> to vector<192x384xf32>
    %c2_42 = arith.constant 2 : index
    %c0_43 = arith.constant 0 : index
    %c0_44 = arith.constant 0 : index
    %81 = vector.load %arg6[%c2_42, %c0_43, %c0_44] : memref<3x384x128xf32, #tpu.memory_space<vmem>>, vector<1x384x128xf32>
    %82 = vector.shape_cast %81 : vector<1x384x128xf32> to vector<384x128xf32>
    %cst_45 = arith.constant dense<0.000000e+00> : vector<192x128xf32>
    %83 = tpu.matmul %80, %82, %cst_45 {dimension_numbers = #tpu.dot_dimension_numbers<[1], [0], [0], [1], [0, 0, 1, 1], [], []>} : vector<192x384xf32>, vector<384x128xf32>, vector<192x128xf32> -> vector<192x128xf32>
    %84 = arith.addf %78, %83 : vector<192x128xf32>
    %85 = vector.shape_cast %63 : vector<128xf32> to vector<1x128xf32>
    %86 = vector.broadcast %85 : vector<1x128xf32> to vector<192x128xf32>
    %87 = arith.mulf %84, %86 : vector<192x128xf32>
    %88 = vector.shape_cast %65 : vector<128xf32> to vector<1x128xf32>
    %89 = vector.broadcast %88 : vector<1x128xf32> to vector<192x128xf32>
    %90 = arith.addf %87, %89 : vector<192x128xf32>
    %91 = arith.negf %90 : vector<192x128xf32>
    %92 = math.exp %91 : vector<192x128xf32>
    %cst_46 = arith.constant 1.000000e+00 : f32
    %93 = vector.broadcast %cst_46 : f32 to vector<192x128xf32>
    %94 = arith.addf %93, %92 : vector<192x128xf32>
    %95 = arith.divf %93, %94 : vector<192x128xf32>
    %96 = arith.mulf %90, %95 : vector<192x128xf32>
    %97 = vector.shape_cast %96 : vector<192x128xf32> to vector<8x24x128xf32>
    %98 = vector.extract_strided_slice %97 {offsets = [0, 0, 0], sizes = [8, 16, 128], strides = [1, 1, 1]} : vector<8x24x128xf32> to vector<8x16x128xf32>
    %c0_47 = arith.constant 0 : index
    %c2_48 = arith.constant 2 : index
    %c0_49 = arith.constant 0 : index
    %c0_50 = arith.constant 0 : index
    %99 = vector.load %arg2[%c0_47, %c2_48, %c0_49, %c0_50] : memref<1x12x24x128xf32, #tpu.memory_space<vmem>>, vector<1x8x24x128xf32>
    %100 = vector.shape_cast %99 : vector<1x8x24x128xf32> to vector<8x24x128xf32>
    %101 = vector.extract_strided_slice %100 {offsets = [0, 1, 0], sizes = [8, 23, 128], strides = [1, 1, 1]} : vector<8x24x128xf32> to vector<8x23x128xf32>
    %102 = vector.extract_strided_slice %100 {offsets = [0, 0, 0], sizes = [8, 1, 128], strides = [1, 1, 1]} : vector<8x24x128xf32> to vector<8x1x128xf32>
    %103 = tpu.concatenate %101, %102 in 1 : vector<8x23x128xf32>, vector<8x1x128xf32> -> vector<8x24x128xf32>
    %104 = vector.extract_strided_slice %103 {offsets = [0, 0, 0], sizes = [8, 16, 128], strides = [1, 1, 1]} : vector<8x24x128xf32> to vector<8x16x128xf32>
    %105 = arith.addf %98, %104 : vector<8x16x128xf32>
    %c0_51 = arith.constant 0 : index
    %c0_52 = arith.constant 0 : index
    %c0_53 = arith.constant 0 : index
    %c0_54 = arith.constant 0 : index
    %106 = vector.load %arg9[%c0_51, %c0_52, %c0_53, %c0_54] : memref<1x8x16x128xf32, #tpu.memory_space<vmem>>, vector<1x8x16x128xf32>
    %107 = vector.shape_cast %106 : vector<1x8x16x128xf32> to vector<8x16x128xf32>
    %108 = vector.shape_cast %105 : vector<8x16x128xf32> to vector<1x8x16x128xf32>
    tpu.vector_store %arg9[%c0_51, %c0_52, %c0_53, %c0_54], %108 {strides = array<i32>} : memref<1x8x16x128xf32, #tpu.memory_space<vmem>>, vector<1x8x16x128xf32>,
    return
  }
  func.func @transform_0(%arg0: i32, %arg1: i32) -> (i32, i32, i32, i32) {
    %c0_i32 = arith.constant 0 : i32
    %c0_i32_0 = arith.constant 0 : i32
    %c0_i32_1 = arith.constant 0 : i32
    return %arg0, %arg1, %c0_i32, %c0_i32_0 : i32, i32, i32, i32
  }
  func.func @transform_1(%arg0: i32, %arg1: i32) -> (i32, i32, i32) {
    %c0_i32 = arith.constant 0 : i32
    %c0_i32_0 = arith.constant 0 : i32
    %c0_i32_1 = arith.constant 0 : i32
    %c0_i32_2 = arith.constant 0 : i32
    return %c0_i32, %c0_i32_0, %c0_i32_1 : i32, i32, i32
  }
  func.func @transform_2(%arg0: i32, %arg1: i32) -> (i32, i32) {
    %c0_i32 = arith.constant 0 : i32
    %c0_i32_0 = arith.constant 0 : i32
    %c0_i32_1 = arith.constant 0 : i32
    return %c0_i32, %c0_i32_0 : i32, i32
  }
  func.func @transform_3(%arg0: i32, %arg1: i32) -> (i32, i32) {
    %c0_i32 = arith.constant 0 : i32
    %c0_i32_0 = arith.constant 0 : i32
    %c0_i32_1 = arith.constant 0 : i32
    return %c0_i32, %c0_i32_0 : i32, i32
  }
  func.func @transform_4(%arg0: i32, %arg1: i32) -> (i32, i32, i32) {
    %c0_i32 = arith.constant 0 : i32
    %c0_i32_0 = arith.constant 0 : i32
    %c0_i32_1 = arith.constant 0 : i32
    %c0_i32_2 = arith.constant 0 : i32
    return %c0_i32, %c0_i32_0, %c0_i32_1 : i32, i32, i32
  }
  func.func @transform_5(%arg0: i32, %arg1: i32) -> (i32, i32) {
    %c0_i32 = arith.constant 0 : i32
    %c0_i32_0 = arith.constant 0 : i32
    %c0_i32_1 = arith.constant 0 : i32
    return %c0_i32, %c0_i32_0 : i32, i32
  }
  func.func @transform_6(%arg0: i32, %arg1: i32) -> (i32, i32) {
    %c0_i32 = arith.constant 0 : i32
    %c0_i32_0 = arith.constant 0 : i32
    %c0_i32_1 = arith.constant 0 : i32
    return %c0_i32, %c0_i32_0 : i32, i32
  }
  func.func @transform_7(%arg0: i32, %arg1: i32) -> (i32, i32, i32, i32) {
    %c0_i32 = arith.constant 0 : i32
    %c0_i32_0 = arith.constant 0 : i32
    %c0_i32_1 = arith.constant 0 : i32
    return %arg0, %arg1, %c0_i32, %c0_i32_0 : i32, i32, i32, i32
  }
}

</mosaic_0001>

<bundles_post_ra>
// kernel: tpu_custom_call.1
= control target key start
LH: loop header
LB: loop body
LE: loop exit
PB: predicated region body
PF: predicated region fallthrough
CT: control target
= control target key end

     0   :  { %6 = vsyncpa [#allocation3], 0  ;;  %s228_s0 = inlined_call_operand.hbm [shape: f32[8,16,128], index: 0, kind: input, shape index: {}]   ;;  %s229_s1 = inlined_call_operand.hbm [shape: f32[8,16,128], index: 1, kind: output, shape index: {}]  }
   0x1   :  { %7 = vsyncpa [#allocation4], 0  ;;  %s12_s8 = sshll.u32 %s228_s0, 4  ;;  %s167_s9 = smov [#allocation2]   ;;  %s13_s8 = int_to_ptr.hbm [resolvable:$true] %s12_s8 }
   0x2   :  { %s14_s10 = sshll.u32 %s167_s9, 4  ;;  %s168_s11 = smov 128   ;;  %s15_s10 = int_to_ptr.vmem [resolvable:$true] %s14_s10 }
   0x3   :  { %s169_s12 = smov 8  }
   0x4   :  { %20 = dma.hbm_to_vmem [thread:$0]  %s13_s8, 2048, %s15_s10, [#allocation3], %s168_s11, %s168_s11, %s169_s12  }
   0x5   :  { %163 = dma.done.wait [#allocation3], 2048  }
   0x6   :  { %164 = vsyncadd [#allocation3], 4294965248  ;;  %v57_v0 = vlaneseq  ;;  %v25_v2 = vld [vmem:[#allocation2] sm:$0xff]  ;;  %v26_v3 = vld [vmem:[#allocation2 + $0x8] sm:$0xff]  ;;  %s170_s0 = smov [#allocation5]   ;;  %s98_s16 = sshll.u32 %s229_s1, 4  ;;  %s99_s16 = int_to_ptr.hbm [resolvable:$true] %s98_s16 }
   0x7   :  { %v27_v4 = vld [vmem:[#allocation2 + $0x10] sm:$0xff]  ;;  %v41_v5 = vrot.slane %v25_v2, 1  ;;  %v49_v6 = vrot.slane %v26_v3, 1  ;;  %v28_v7 = vld [vmem:[#allocation2 + $0x18] sm:$0xff]  ;;  %v29_v9 = vld [vmem:[#allocation2 + $0x20] sm:$0xff]  ;;  %s96_s13 = sshll.u32 %s170_s0, 4  ;;  %s97_s13 = int_to_ptr.vmem [resolvable:$true] %s96_s13 }
   0x8   :  { %v187_v1 = vshrl.u32 %v57_v0, 7  ;;  %v42_v8 = vrot.slane %v27_v4, 1  ;;  %v30_v10 = vld [vmem:[#allocation2 + $0x28] sm:$0xff]  ;;  %v50_v11 = vrot.slane %v28_v7, 1  ;;  %v43_v12 = vrot.slane %v29_v9, 1  ;;  %v31_v14 = vld [vmem:[#allocation2 + $0x30] sm:$0xff] }
   0x9   :  { %v51_v13 = vrot.slane %v30_v10, 1  ;;  %v32_v15 = vld [vmem:[#allocation2 + $0x38] sm:$0xff]  ;;  %v33_v16 = vld [vmem:[#allocation2 + $0x40] sm:$0xff]  ;;  %v44_v19 = vrot.slane %v31_v14, 1  ;;  %v34_v21 = vld [vmem:[#allocation2 + $0x48] sm:$0xff] }
   0xa   :  { %vm59_vm0 = vcmp.lt.s32.totalorder %v187_v1, 7  ;;  %v52_v20 = vrot.slane %v32_v15, 1  ;;  %v35_v24 = vld [vmem:[#allocation2 + $0x50] sm:$0xff]  ;;  %v36_v25 = vld [vmem:[#allocation2 + $0x58] sm:$0xff]  ;;  %v45_v27 = vrot.slane %v33_v16, 1  ;;  %v53_v28 = vrot.slane %v34_v21, 1 }
   0xb   :  { %v60_v17 = vsel %vm59_vm0, %v41_v5, %v49_v6  ;;  %v68_v18 = vsel %vm59_vm0, %v49_v6, %v41_v5  ;;  %v61_v22 = vsel %vm59_vm0, %v42_v8, %v50_v11  ;;  %v69_v23 = vsel %vm59_vm0, %v50_v11, %v42_v8  ;;  %v37_v30 = vld [vmem:[#allocation2 + $0x60] sm:$0xff]  ;;  %v38_v31 = vld [vmem:[#allocation2 + $0x68] sm:$0xff]  ;;  %v39_v36 = vld [vmem:[#allocation2 + $0x70] sm:$0xff] }
   0xc   :  { %76 = vst [vmem:[#allocation5] sm:$0xff] %v60_v17  ;;  %v62_v26 = vsel %vm59_vm0, %v43_v12, %v51_v13  ;;  %v70_v29 = vsel %vm59_vm0, %v51_v13, %v43_v12  ;;  %v63_v32 = vsel %vm59_vm0, %v44_v19, %v52_v20  ;;  %v46_v33 = vrot.slane %v35_v24, 1  ;;  %v40_v37 = vld [vmem:[#allocation2 + $0x78] sm:$0xff] }
   0xd   :  { %77 = vst [vmem:[#allocation5 + $0x8] sm:$0xff] %v68_v18  ;;  %v54_v34 = vrot.slane %v36_v25, 1  ;;  %v71_v35 = vsel %vm59_vm0, %v52_v20, %v44_v19  ;;  %v64_v38 = vsel %vm59_vm0, %v45_v27, %v53_v28  ;;  %v47_v39 = vrot.slane %v37_v30, 1 }
   0xe   :  { %78 = vst [vmem:[#allocation5 + $0x10] sm:$0xff] %v61_v22  ;;  %v55_v40 = vrot.slane %v38_v31, 1  ;;  %v72_v41 = vsel %vm59_vm0, %v53_v28, %v45_v27  ;;  %v48_v43 = vrot.slane %v39_v36, 1  ;;  %v56_v44 = vrot.slane %v40_v37, 1 }
   0xf   :  { %79 = vst [vmem:[#allocation5 + $0x18] sm:$0xff] %v69_v23  ;;  %v65_v42 = vsel %vm59_vm0, %v46_v33, %v54_v34  ;;  %v73_v45 = vsel %vm59_vm0, %v54_v34, %v46_v33 }
  0x10   :  { %80 = vst [vmem:[#allocation5 + $0x20] sm:$0xff] %v62_v26  ;;  %v66_v46 = vsel %vm59_vm0, %v47_v39, %v55_v40  ;;  %v74_v47 = vsel %vm59_vm0, %v55_v40, %v47_v39  ;;  %v67_v48 = vsel %vm59_vm0, %v48_v43, %v56_v44  ;;  %v75_v49 = vsel %vm59_vm0, %v56_v44, %v48_v43 }
  0x11   :  { %81 = vst [vmem:[#allocation5 + $0x28] sm:$0xff] %v70_v29 }
  0x12   :  { %82 = vst [vmem:[#allocation5 + $0x30] sm:$0xff] %v63_v32 }
  0x13   :  { %83 = vst [vmem:[#allocation5 + $0x38] sm:$0xff] %v71_v35 }
  0x14   :  { %84 = vst [vmem:[#allocation5 + $0x40] sm:$0xff] %v64_v38 }
  0x15   :  { %85 = vst [vmem:[#allocation5 + $0x48] sm:$0xff] %v72_v41 }
  0x16   :  { %86 = vst [vmem:[#allocation5 + $0x50] sm:$0xff] %v65_v42 }
  0x17   :  { %87 = vst [vmem:[#allocation5 + $0x58] sm:$0xff] %v73_v45 }
  0x18   :  { %88 = vst [vmem:[#allocation5 + $0x60] sm:$0xff] %v66_v46 }
  0x19   :  { %89 = vst [vmem:[#allocation5 + $0x68] sm:$0xff] %v74_v47 }
  0x1a   :  { %90 = vst [vmem:[#allocation5 + $0x70] sm:$0xff] %v67_v48 }
  0x1b   :  { %91 = vst [vmem:[#allocation5 + $0x78] sm:$0xff] %v75_v49 }
  0x1c   :  { %104 = dma.vmem_to_hbm [thread:$0]  %s97_s13, 2048, %s99_s16, [#allocation4], %s168_s11, %s168_s11, %s169_s12  }
  0x1d   :  { %165 = dma.done.wait [#allocation4], 2048  }
  0x1e   :  { %166 = vsyncadd [#allocation4], 4294965248 }
  0x1f   :  { %109 = vsyncpa [#allocation3], 1 }
  0x20   :  { %110 = vsyncpa [#allocation4], 1 }

// kernel: tpu_custom_call.1
= control target key start
LH: loop header
LB: loop body
LE: loop exit
PB: predicated region body
PF: predicated region fallthrough
CT: control target
= control target key end

     0   :  { %s7217_s0 = inlined_call_operand.hbm [shape: f32[2,24,24,128], index: 0, kind: input, shape index: {}]   ;;  %s7218_s1 = inlined_call_operand.hbm [shape: f32[3,384,128], index: 1, kind: input, shape index: {}]   ;;  %s7219_s2 = inlined_call_operand.vmem [shape: f32[1,128], index: 2, kind: input, shape index: {}]   ;;  %s7220_s3 = inlined_call_operand.vmem [shape: f32[1,128], index: 3, kind: input, shape index: {}]   ;;  %s7221_s4 = inlined_call_operand.hbm [shape: f32[3,384,128], index: 4, kind: input, shape index: {}]   ;;  %s7222_s5 = inlined_call_operand.vmem [shape: f32[1,128], index: 5, kind: input, shape index: {}]   ;;  %s7223_s6 = inlined_call_operand.vmem [shape: f32[1,128], index: 6, kind: input, shape index: {}]   ;;  %s7224_s7 = inlined_call_operand.hbm [shape: f32[2,16,16,128], index: 7, kind: output, shape index: {}]  }
   0x1   :  { %7338 = sst [smem:[#allocation122_spill]] %s7218_s1 }
   0x2   :  { %7339 = sst [smem:[#allocation123_spill]] %s7221_s4 }
   0x3   :  { %7340 = sst [smem:[#allocation124_spill]] %s7223_s6 }
   0x4   :  { %7341 = sst [smem:[#allocation125_spill]] %s7224_s7 }
   0x5   :  { %12 = vsyncpa [#allocation4], 0 }
   0x6   :  { %14 = vsyncpa [#allocation4 + $0x1], 0 }
   0x7   :  { %15 = vsyncpa [#allocation7], 0 }
   0x8   :  { %16 = vsyncpa [#allocation5], 0 }
   0x9   :  { %18 = vsyncpa [#allocation5 + $0x1], 0  ;;  %s4999_s24 = smov 0   ;;  %s5001_s25 = smov 0  }
   0xa   :  { %s5003_s26 = smov 0   ;;  %s5005_s27 = smov 0  }
   0xb   :  { %s5007_s28 = smov 0   ;;  %s5009_s29 = smov 0  }
   0xc   :  { %s5011_s30 = smov 0   ;;  %s5013_s8 = smov 0  }
   0xd LB: > { %7342 = sst [smem:[#allocation13_spill]] %s4920_s24  ;;  %s4306_s9 = sadd.s32 4294967295, %s4948_s8   ;;  %s4948_s8 = sphi %s5013_s8, %s24_s8   ;;  %s4944_s30 = sphi %s5011_s30, %s7674_s30   ;;  %s4940_s29 = sphi %s5009_s29, %s7673_s29   ;;  %s4936_s28 = sphi %s5007_s28, %s7672_s28   ;;  %s4932_s27 = sphi %s5005_s27, %s7671_s27   ;;  %s4928_s26 = sphi %s5003_s26, %s7670_s26   ;;  %s4924_s25 = sphi %s5001_s25, %s7669_s25   ;;  %s4920_s24 = sphi %s4999_s24, %s7668_s24  }
   0xe   : > { %7343 = sst [smem:[#allocation14_spill]] %s4936_s28  ;;  %s4307_s10 = sadd.s32 4294967294, %s4948_s8  }
   0xf   : > { %7344 = sst [smem:[#allocation15_spill]] %s4948_s8  ;;  %p58_p0 = scmp.ne.s32.totalorder %s4924_s25, %s4920_s24 }
  0x10   : > { %p5045_p1 = scmp.eq.s32.totalorder %s4306_s9, 0  ;;  %p216_p2 = scmp.eq.s32.totalorder %s4307_s10, 3 }
  0x11   : > { %p4308_p4 = scmp.ge.s32.totalorder %s4948_s8, 1  ;;  %p223_p6 = scmp.lt.s32.totalorder %s4948_s8, 5 }
  0x12   : > { %p5051_p3 = por %p5045_p1, %p58_p0  ;;  %p5056_p5 = por %p216_p2, %p58_p0 }
  0x13   : > { %s7349_s1 = sld [smem:[#allocation122_spill]]  ;;  %p5064_p7 = pnand %p4308_p4, %p223_p6 }
  0x14   : > { %s7347_s13 = scalar_select %p5056_p5, 1, 0 }
  0x15   : > { %p4461_p8 = pneg %p5064_p7  ;;  %s4950_s18 = smov [#allocation6]  }
  0x16   : > { %7348 = sst [smem:[#allocation16_spill]] %s7347_s13  ;;  %s236_s19 = sshll.u32 %s4950_s18, 4  ;;  %s237_s19 = int_to_ptr.vmem [resolvable:$true] %s236_s19 }
  0x17   : > { %p4462_p9 = pnand %p4461_p8, %p5045_p1  ;;  %s7351_s4 = sld [smem:[#allocation123_spill]] }
  0x18   : > { %s7225_s23 = smov 128   ;;  %s7226_s10 = smov 8  }
  0x19   : > { %s234_s16 = sshll.u32 %s7349_s1, 4  ;;  %s4953_s14 = smov [#allocation8]   ;;  %s235_s16 = int_to_ptr.hbm [resolvable:$true] %s234_s16 }
  0x1a   : > { %4464 = dma.hbm_to_vmem [thread:$0]  (!%p4462_p9), %s235_s16, 18432, %s237_s19, [#allocation7], %s7225_s23, %s7225_s23, %s7226_s10  }
  0x1b   : > { %s256_s15 = sshll.u32 %s4953_s14, 4  ;;  %p210_p10 = scmp.eq.s32.totalorder %s4306_s9, 3  ;;  %s257_s15 = int_to_ptr.vmem [resolvable:$true] %s256_s15 }
  0x1c   : > { %s33_s18 = sadd.s32 1, %s4940_s29  ;;  %s36_s20 = sadd.s32 1, %s4944_s30 }
  0x1d   : > { %s254_s22 = sshll.u32 %s7351_s4, 4  ;;  %p34_p11 = scmp.ge.s32.totalorder %s33_s18, 2  ;;  %s255_s22 = int_to_ptr.hbm [resolvable:$true] %s254_s22 }
  0x1e   : > { %4467 = dma.hbm_to_vmem [thread:$0]  (!%p4462_p9), %s255_s22, 18432, %s257_s15, [#allocation7], %s7225_s23, %s7225_s23, %s7226_s10  }
  0x1f   : > { %p52_p12 = scmp.ne.s32.totalorder %s4928_s26, %s4924_s25  ;;  %p53_p13 = scmp.eq.s32.totalorder %s4948_s8, 0 }
  0x20   : > { %s7676_s18 = smov (%p34_p11, %s33_s18), 0  ;;  %s7678_s20 = smov (!%p34_p11, %s36_s20), %s4944_s30 }
  0x21   : > { %7352 = sst [smem:[#allocation17_spill]] %s7676_s18  ;;  %s41_s16 = ssub.s32 %s4940_s29, %s7676_s18 }
  0x22   : > { %s45_s19 = sadd.s32 1, %s4928_s26  ;;  %p38_p0 = scmp.ge.s32.totalorder %s7678_s20, 2 }
  0x23   : > { %p5094_p2 = por %p210_p10, %p52_p12  ;;  %p5098_p4 = por %p53_p13, %p52_p12 }
  0x24   : > { %s276_s22 = sand.u32 1, %s4928_s26   ;;  %s7680_s20 = smov (%p38_p0, %s7678_s20), 0 }
  0x25   : > { %s7353_s21 = scalar_select %p5094_p2, 1, 0 }
  0x26   : > { %7356 = sst [smem:[#allocation19_spill]] %s7680_s20  ;;  %p4478_p6 = scmp.lt.s32.totalorder %s4948_s8, 4 }
  0x27   : > { %7354 = sst [smem:[#allocation18_spill]] %s7353_s21  ;;  %s4445_s14 = smul.u32 288, %s276_s22 }
  0x28   : > { %s40_s15 = ssub.s32 %s4944_s30, %s7680_s20  ;;  %s4479_s10 = smul.u32 36, %s4940_s29 }
  0x29   : > { %s42_s23 = sor.u32 %s41_s16, %s40_s15  ;;  %s4447_s1 = smul.u32 72, %s4944_s30 }
  0x2a   : > { %p43_p8 = scmp.eq.s32.totalorder %s42_s23, 0  ;;  %s280_s4 = scalar_lea.vmem [#allocation3], %s4445_s14 }
  0x2b   : > { %s291_s18 = sshll.u32 %s280_s4, 4  ;;  %s286_s24 = sadd.s32 %s4479_s10, %s4447_s1  ;;  %s292_s18 = int_to_ptr.vmem [resolvable:$true] %s291_s18 }
  0x2c   : > { %s5111_s13 = scalar_select %p43_p8, %s4928_s26, %s45_s19  }
  0x2d   : > { %s4312_s21 = sshll.u32 %s286_s24, 3  ;;  %p4469_p9 = pnand %p4478_p6, %p5098_p4 }
  0x2e   : > { %s288_s6 = scalar_lea.hbm %s7217_s0, %s4312_s21  ;;  %s277_s20 = scalar_lea.sflag [#allocation4], %s276_s22 }
  0x2f   : > { %s289_s8 = sshll.u32 %s288_s6, 4  ;;  %s7357_s16 = smov 8   ;;  %s290_s8 = int_to_ptr.hbm [resolvable:$true] %s289_s8 }
  0x30   : > { %s7358_s23 = smov 128   ;;  %303 = sbr.rel (%p5064_p7) target bundleno = 1830 (0x726), region = 48 }
  0x31   : > { %4471 = dma.hbm_to_vmem [thread:$0]  (!%p4469_p9), %s290_s8, 4608, %s292_s18, %s277_s20, %s7358_s23, %s7358_s23, %s7357_s16  }
  0x35   : > { %s5124_s1 = sand.u32 1, %s4924_s25  }
  0x36   : > { %s4448_s4 = smul.u32 288, %s5124_s1  ;;  %s306_s7 = scalar_lea.sflag [#allocation4], %s5124_s1 }
  0x38   : > { %s5128_s24 = scalar_lea.vmem [#allocation3], %s4448_s4 }
  0x39   : > { %4907 = dma.done.wait (%p5051_p3), %s306_s7, 4608  }
  0x3a   : > { %4909 = vsyncadd (%p5051_p3), %s306_s7, 4294962688 }
  0x3b   : > { %4911 = dma.done.wait (%p5045_p1), [#allocation7], 36864  }
  0x3c   : > { %4913 = vsyncadd (%p5045_p1), [#allocation7], 4294930432  ;;  %s4316_s6 = sshll.u32 %s5124_s1, 7  ;;  %v733_v0 = vld [vmem:[#allocation6 + $0x1f8] sm:$0xff]  ;;  %v732_v2 = vld [vmem:[#allocation6 + $0x1f0] sm:$0xff]  ;;  %vm425_vm0 = vcmask 1046528  }
  0x3d   : > { %v749_v1 = vld [vmem:[#allocation6 + $0x278] sm:$0xff]  ;;  %766 = vmatpush.msra.mxu0 %v733_v0  ;;  %v748_v3 = vld [vmem:[#allocation6 + $0x270] sm:$0xff]  ;;  %v731_v4 = vld [vmem:[#allocation6 + $0x1e8] sm:$0xff]  ;;  %vm546_vm1 = vcmask 1045504   ;;  %s6412_s19 = scalar_lea.vmem [#allocation9], %s4316_s6  ;;  %p4347_p1 = scmp.ne.s32.totalorder %s4932_s27, 0 }
  0x3e   : > { %873 = vmatpush.msra.mxu1 %v749_v1  ;;  %4397 = vmatpush.msra.mxu3 %v749_v1  ;;  %v747_v5 = vld [vmem:[#allocation6 + $0x268] sm:$0xff]  ;;  %v730_v6 = vld [vmem:[#allocation6 + $0x1e0] sm:$0xff]  ;;  %v729_v8 = vld [vmem:[#allocation6 + $0x1d8] sm:$0xff] }
  0x3f   : > { %767 = vmatpush.msra.mxu0 %v732_v2  ;;  %v746_v7 = vld [vmem:[#allocation6 + $0x260] sm:$0xff]  ;;  %v745_v9 = vld [vmem:[#allocation6 + $0x258] sm:$0xff]  ;;  %v728_v10 = vld [vmem:[#allocation6 + $0x1d0] sm:$0xff] }
  0x40   : > { %874 = vmatpush.msra.mxu1 %v748_v3  ;;  %4398 = vmatpush.msra.mxu3 %v748_v3  ;;  %v744_v11 = vld [vmem:[#allocation6 + $0x250] sm:$0xff]  ;;  %v727_v12 = vld [vmem:[#allocation6 + $0x1c8] sm:$0xff]  ;;  %v726_v14 = vld [vmem:[#allocation6 + $0x1c0] sm:$0xff] }
  0x41   : > { %768 = vmatpush.msra.mxu0 %v731_v4  ;;  %v743_v13 = vld [vmem:[#allocation6 + $0x248] sm:$0xff]  ;;  %v742_v15 = vld [vmem:[#allocation6 + $0x240] sm:$0xff]  ;;  %v5139_v16 = vld [vmem:[#allocation6 + $0x2f8] sm:$0xff] }
  0x42   : > { %875 = vmatpush.msra.mxu1 %v747_v5  ;;  %4399 = vmatpush.msra.mxu3 %v747_v5  ;;  %v725_v17 = vld [vmem:[#allocation6 + $0x1b8] sm:$0xff]  ;;  %v5141_v18 = vld [vmem:[#allocation6 + $0x2f0] sm:$0xff]  ;;  %v723_v22 = vld [vmem:[#allocation6 + $0x1a8] sm:$0xff] }
  0x43   : > { %769 = vmatpush.msra.mxu0 %v730_v6  ;;  %v741_v19 = vld [vmem:[#allocation6 + $0x238] sm:$0xff]  ;;  %4413 = vmatpush.msra.mxu2 %v5139_v16  ;;  %v724_v20 = vld [vmem:[#allocation6 + $0x1b0] sm:$0xff]  ;;  %v739_v23 = vld [vmem:[#allocation6 + $0x228] sm:$0xff] }
  0x44   : > { %876 = vmatpush.msra.mxu1 %v746_v7  ;;  %4400 = vmatpush.msra.mxu3 %v746_v7  ;;  %v740_v21 = vld [vmem:[#allocation6 + $0x230] sm:$0xff]  ;;  %v722_v24 = vld [vmem:[#allocation6 + $0x1a0] sm:$0xff]  ;;  %v721_v26 = vld [vmem:[#allocation6 + $0x198] sm:$0xff] }
  0x45   : > { %770 = vmatpush.msra.mxu0 %v729_v8  ;;  %4414 = vmatpush.msra.mxu2 %v5141_v18  ;;  %v738_v25 = vld [vmem:[#allocation6 + $0x220] sm:$0xff]  ;;  %v737_v27 = vld [vmem:[#allocation6 + $0x218] sm:$0xff]  ;;  %v5152_v30 = vld [vmem:[%s5128_s24 + $0xa8] sm:$0xff] }
  0x46   : > { %877 = vmatpush.msra.mxu1 %v745_v9  ;;  %4401 = vmatpush.msra.mxu3 %v745_v9  ;;  %v5146_v28 = vld [vmem:[%s5128_s24 + $0x18] sm:$0xff]  ;;  %v5149_v29 = vld [vmem:[%s5128_s24 + $0x20] sm:$0xff]  ;;  %v720_v32 = vld [vmem:[#allocation6 + $0x190] sm:$0xff]  ;;  %v7240_v39 = vrot.slane %v5152_v30, 1 }
  0x47   : > { %771 = vmatpush.msra.mxu0 %v728_v10  ;;  %v5155_v31 = vld [vmem:[%s5128_s24 + $0xb8] sm:$0xff]  ;;  %v736_v33 = vld [vmem:[#allocation6 + $0x210] sm:$0xff]  ;;  %v763_v34 = vld [vmem:[#allocation6 + $0x2e8] sm:$0xff]  ;;  %v431_v37 = vrot.slane %v5146_v28, 1  ;;  %v432_v38 = vrot.slane %v5149_v29, 1 }
  0x48   : > { %878 = vmatpush.msra.mxu1 %v744_v11  ;;  %4402 = vmatpush.msra.mxu3 %v744_v11  ;;  %v719_v35 = vld [vmem:[#allocation6 + $0x188] sm:$0xff]  ;;  %v7239_v40 = vrot.slane %v5155_v31, 1  ;;  %v718_v41 = vld [vmem:[#allocation6 + $0x180] sm:$0xff]  ;;  %v5195_v53 = vld [vmem:[%s5128_s24 + $0xd0] sm:$0xff] }
  0x49   : > { %772 = vmatpush.msra.mxu0 %v727_v12  ;;  %v735_v36 = vld [vmem:[#allocation6 + $0x208] sm:$0xff]  ;;  %4415 = vmatpush.msra.mxu2 %v763_v34  ;;  %v734_v42 = vld [vmem:[#allocation6 + $0x200] sm:$0xff]  ;;  %v5162_v43 = vsel %vm425_vm0, %v431_v37, %v432_v38  ;;  %v469_v55 = vrot.slane %v5195_v53, 1  ;;  %v5208_v58 = vld [vmem:[%s5128_s24 + $0x30] sm:$0xff] }
  0x4a   : > { %879 = vmatpush.msra.mxu1 %v743_v13  ;;  %4403 = vmatpush.msra.mxu3 %v743_v13  ;;  %v5169_v44 = vsel %vm425_vm0, %v7239_v40, %v7240_v39  ;;  %v5172_v45 = vld [vmem:[%s5128_s24 + $0x28] sm:$0xff]  ;;  %v5175_v46 = vld [vmem:[%s5128_s24 + $0xc0] sm:$0xff]  ;;  %v5211_v59 = vld [vmem:[%s5128_s24 + $0x38] sm:$0xff]  ;;  %v436_v63 = vrot.slane %v5208_v58, 1 }
  0x4b   : > { %773 = vmatpush.msra.mxu0 %v726_v14  ;;  %7359 = vst [vmem:[#allocation20_spill] sm:$0xff] %v5169_v44  ;;  %v5178_v47 = vld [vmem:[%s5128_s24 + $0xc8] sm:$0xff]  ;;  %v434_v48 = vrot.slane %v5172_v45, 1  ;;  %v466_v49 = vrot.slane %v5175_v46, 1  ;;  %v762_v54 = vld [vmem:[#allocation6 + $0x2e0] sm:$0xff]  ;;  %v684_v60 = vld [vmem:[#allocation6 + $0x78] sm:$0xff] }
  0x4c   : > { %880 = vmatpush.msra.mxu1 %v742_v15  ;;  %4404 = vmatpush.msra.mxu3 %v742_v15  ;;  %v467_v50 = vrot.slane %v5178_v47, 1  ;;  %v683_v61 = vld [vmem:[#allocation6 + $0x70] sm:$0xff]  ;;  %v761_v62 = vld [vmem:[#allocation6 + $0x2d8] sm:$0xff]  ;;  %v437_v0 = vrot.slane %v5211_v59, 1  ;;  %v682_v2 = vld [vmem:[#allocation6 + $0x68] sm:$0xff] }
  0x4d   : > { %774 = vmatpush.msra.mxu0 %v725_v17  ;;  %v5189_v51 = vsel %vm425_vm0, %v432_v38, %v434_v48  ;;  %4416 = vmatpush.msra.mxu2 %v762_v54  ;;  %v5202_v56 = vsel %vm425_vm0, %v434_v48, %v431_v37  ;;  %v760_v1 = vld [vmem:[#allocation6 + $0x2d0] sm:$0xff]  ;;  %v681_v3 = vld [vmem:[#allocation6 + $0x60] sm:$0xff]  ;;  %v5222_v5 = vsel %vm425_vm0, %v469_v55, %v466_v49  ;;  %v5228_v7 = vld [vmem:[%s5128_s24 + $0xd8] sm:$0xff] }
  0x4e   : > { %881 = vmatpush.msra.mxu1 %v741_v19  ;;  %4405 = vmatpush.msra.mxu3 %v741_v19  ;;  %v5192_v52 = vsel %vm425_vm0, %v466_v49, %v467_v50  ;;  %v5205_v57 = vsel %vm425_vm0, %v467_v50, %v469_v55  ;;  %v5219_v4 = vsel %vm425_vm0, %v436_v63, %v437_v0  ;;  %v5225_v6 = vld [vmem:[%s5128_s24 + $0x40] sm:$0xff]  ;;  %v759_v9 = vld [vmem:[#allocation6 + $0x2c8] sm:$0xff]  ;;  %v680_v10 = vld [vmem:[#allocation6 + $0x58] sm:$0xff]  ;;  %v471_v13 = vrot.slane %v5228_v7, 1 }
  0x4f   : > { %775 = vmatpush.msra.mxu0 %v724_v20  ;;  %7360 = vst [vmem:[#allocation21_spill] sm:$0xff] %v5192_v52  ;;  %4417 = vmatpush.msra.mxu2 %v761_v62  ;;  %v5231_v8 = vld [vmem:[%s5128_s24 + $0xe0] sm:$0xff]  ;;  %v439_v12 = vrot.slane %v5225_v6, 1  ;;  %v679_v15 = vld [vmem:[#allocation6 + $0x50] sm:$0xff]  ;;  %v678_v17 = vld [vmem:[#allocation6 + $0x48] sm:$0xff] }
  0x50   : > { %882 = vmatpush.msra.mxu1 %v740_v21  ;;  %4406 = vmatpush.msra.mxu3 %v740_v21  ;;  %7361 = vst [vmem:[#allocation22_spill] sm:$0xff] %v5205_v57  ;;  %v758_v11 = vld [vmem:[#allocation6 + $0x2c0] sm:$0xff]  ;;  %v472_v14 = vrot.slane %v5231_v8, 1  ;;  %v5248_v21 = vld [vmem:[%s5128_s24 + $0xe8] sm:$0xff]  ;;  %v5264_v37 = vld [vmem:[%s5128_s24 + $0x50] sm:$0xff] }
  0x51   : > { %776 = vmatpush.msra.mxu0 %v723_v22  ;;  %4418 = vmatpush.msra.mxu2 %v760_v1  ;;  %7362 = vst [vmem:[#allocation23_spill] sm:$0xff] %v5222_v5  ;;  %v5240_v19 = vsel %vm425_vm0, %v437_v0, %v439_v12  ;;  %v677_v22 = vld [vmem:[#allocation6 + $0x40] sm:$0xff]  ;;  %v752_v38 = vld [vmem:[#allocation6 + $0x290] sm:$0xff]  ;;  %v751_v48 = vld [vmem:[#allocation6 + $0x288] sm:$0xff]  ;;  %v442_v55 = vrot.slane %v5264_v37, 1 }
  0x52   : > { %883 = vmatpush.msra.mxu1 %v739_v23  ;;  %4407 = vmatpush.msra.mxu3 %v739_v23  ;;  %v5245_v20 = vsel %vm425_vm0, %v471_v13, %v472_v14  ;;  %v755_v23 = vld [vmem:[#allocation6 + $0x2a8] sm:$0xff]  ;;  %v672_v49 = vld [vmem:[#allocation6 + $0x18] sm:$0xff]  ;;  %v5407_v40 = vld [vmem:[%s5128_s24 + $0xa0] sm:$0xff] }
  0x53   : > { %777 = vmatpush.msra.mxu0 %v722_v24  ;;  %4419 = vmatpush.msra.mxu2 %v759_v9  ;;  %7363 = vst [vmem:[#allocation24_spill] sm:$0xff] %v5245_v20  ;;  %v676_v24 = vld [vmem:[#allocation6 + $0x38] sm:$0xff] }
  0x54   : > { %884 = vmatpush.msra.mxu1 %v738_v25  ;;  %4408 = vmatpush.msra.mxu3 %v738_v25  ;;  %v754_v25 = vld [vmem:[#allocation6 + $0x2a0] sm:$0xff] }
  0x55   : > { %778 = vmatpush.msra.mxu0 %v721_v26  ;;  %4420 = vmatpush.msra.mxu2 %v758_v11  ;;  %v474_v26 = vrot.slane %v5248_v21, 1 }
  0x56   : > { %885 = vmatpush.msra.mxu1 %v737_v27  ;;  %4409 = vmatpush.msra.mxu3 %v737_v27  ;;  %v675_v27 = vld [vmem:[#allocation6 + $0x30] sm:$0xff] }
  0x57   : > { %779 = vmatpush.msra.mxu0 %v720_v32  ;;  %v753_v32 = vld [vmem:[#allocation6 + $0x298] sm:$0xff] }
  0x58   : > { %886 = vmatpush.msra.mxu1 %v736_v33  ;;  %4410 = vmatpush.msra.mxu3 %v736_v33  ;;  %v674_v33 = vld [vmem:[#allocation6 + $0x28] sm:$0xff] }
  0x59   : > { %780 = vmatpush.msra.mxu0 %v719_v35  ;;  %v5258_v35 = vsel %vm425_vm0, %v472_v14, %v474_v26  ;;  %v5304_v14 = vld [vmem:[%s5128_s24 + $0x60] sm:$0xff] }
  0x5a   : > { %887 = vmatpush.msra.mxu1 %v735_v36  ;;  %4411 = vmatpush.msra.mxu3 %v735_v36  ;;  %7364 = vst [vmem:[#allocation25_spill] sm:$0xff] %v5258_v35  ;;  %v5261_v36 = vld [vmem:[%s5128_s24 + $0x48] sm:$0xff] }
  0x5b   : > { %781 = vmatpush.msra.mxu0 %v718_v41  ;;  %v673_v41 = vld [vmem:[#allocation6 + $0x20] sm:$0xff] }
  0x5c   : > { %888 = vmatpush.msra.mxu1 %v734_v42  ;;  %4412 = vmatpush.msra.mxu3 %v734_v42  ;;  %v5268_v42 = vld [vmem:[%s5128_s24 + $0x68] sm:$0xff] }
  0x5d   : > { %782 = vmatmul.f32.vlgmr.msra.gmra.mxu0 %v5146_v28  ;;  %889 = vmatmul.f32.vlgmr.msra.gmra.mxu1 %v5162_v43  ;;  %v7238_v50 = vrot.slane %v5268_v42, 2 }
  0x5e   : > { %949 = vmatmul.f32.vlgmr.msra.gmra.mxu3 %v5169_v44  ;;  %980 = vmatpush.msrb.mxu0 %v5139_v16  ;;  %v757_v16 = vld [vmem:[#allocation6 + $0x2b8] sm:$0xff]  ;;  %v585_v44 = vrot.slane %v5155_v31, 2 }
  0x5f   : > { %1087 = vmatpush.msrb.mxu3 %v684_v60  ;;  %4421 = vmatpush.msra.mxu2 %v757_v16  ;;  %v5276_v60 = vld [vmem:[%s5128_s24 + $0x70] sm:$0xff] }
  0x60   : > { %981 = vmatpush.msrb.mxu0 %v5141_v18  ;;  %v756_v18 = vld [vmem:[#allocation6 + $0x2b0] sm:$0xff] }
  0x61   : > { %1088 = vmatpush.msrb.mxu3 %v683_v61  ;;  %4422 = vmatpush.msra.mxu2 %v756_v18  ;;  %v750_v61 = vld [vmem:[#allocation6 + $0x280] sm:$0xff] }
  0x62   : > { %982 = vmatpush.msrb.mxu0 %v763_v34  ;;  %v5255_v34 = vsel %vm425_vm0, %v439_v12, %v436_v63  ;;  %v570_v63 = vrot.slane %v5276_v60, 2  ;;  %v669_v12 = vld [vmem:[#allocation6] sm:$0xff] }
  0x63   : > { %1089 = vmatpush.msrb.mxu3 %v682_v2  ;;  %4423 = vmatpush.msra.mxu2 %v755_v23 }
  0x64   : > { %983 = vmatpush.msrb.mxu0 %v762_v54  ;;  %v441_v54 = vrot.slane %v5261_v36, 1  ;;  %v5282_v0 = vsel %vm546_vm1, %v7238_v50, %v570_v63  ;;  %v5400_v50 = vld [vmem:[%s5128_s24 + $0x8] sm:$0xff] }
  0x65   : > { %785 = vmatmul.f32.gmra.mxu0 %v5149_v29  ;;  %892 = vmatmul.f32.gmra.mxu1 %v5189_v51 }
  0x66   : > { %952 = vmatmul.f32.gmra.mxu3 %v5192_v52  ;;  %984 = vmatpush.msrb.mxu0 %v761_v62  ;;  %v671_v62 = vld [vmem:[#allocation6 + $0x10] sm:$0xff]  ;;  %v5285_v2 = vsel %vm425_vm0, %v441_v54, %v442_v55 }
  0x67   : > { %1090 = vmatpush.msrb.mxu3 %v681_v3  ;;  %4424 = vmatpush.msra.mxu2 %v754_v25  ;;  %v5290_v3 = vsel %vm425_vm0, %v474_v26, %v471_v13  ;;  %v7237_v13 = vrot.slane %v5304_v14, 2  ;;  %v5334_v26 = vld [vmem:[%s5128_s24 + $0x80] sm:$0xff] }
  0x68   : > { %985 = vmatpush.msrb.mxu0 %v760_v1  ;;  %v670_v1 = vld [vmem:[#allocation6 + $0x8] sm:$0xff]  ;;  %7365 = vst [vmem:[#allocation26_spill] sm:$0xff] %v5290_v3 }
  0x69   : > { %1091 = vmatpush.msrb.mxu3 %v680_v10  ;;  %4425 = vmatpush.msra.mxu2 %v753_v32  ;;  %v5296_v10 = vld [vmem:[%s5128_s24 + $0xf0] sm:$0xff] }
  0x6a   : > { %986 = vmatpush.msrb.mxu0 %v759_v9  ;;  %v5293_v9 = vld [vmem:[%s5128_s24 + $0x58] sm:$0xff] }
  0x6b   : > { %1092 = vmatpush.msrb.mxu3 %v679_v15  ;;  %4426 = vmatpush.msra.mxu2 %v752_v38  ;;  %v444_v15 = vrot.slane %v5293_v9, 1 }
  0x6c   : > { %987 = vmatpush.msrb.mxu0 %v758_v11  ;;  %v5299_v11 = vld [vmem:[%s5128_s24 + $0xf8] sm:$0xff] }
  0x6d   : > { %788 = vmatmul.f32.gmra.mxu0 %v5172_v45  ;;  %895 = vmatmul.f32.gmra.mxu1 %v5202_v56 }
  0x6e   : > { %955 = vmatmul.f32.gmra.mxu3 %v5205_v57  ;;  %988 = vmatpush.msrb.mxu0 %v757_v16  ;;  %v476_v16 = vrot.slane %v5296_v10, 1 }
  0x6f   : > { %1093 = vmatpush.msrb.mxu3 %v678_v17  ;;  %4427 = vmatpush.msra.mxu2 %v751_v48  ;;  %v477_v17 = vrot.slane %v5299_v11, 1 }
  0x70   : > { %989 = vmatpush.msrb.mxu0 %v756_v18  ;;  %v5315_v18 = vsel %vm546_vm1, %v570_v63, %v7237_v13 }
  0x71   : > { %1094 = vmatpush.msrb.mxu3 %v677_v22  ;;  %4428 = vmatpush.msra.mxu2 %v750_v61  ;;  %v5318_v22 = vsel %vm425_vm0, %v442_v55, %v444_v15  ;;  %v446_v55 = vrot.slane %v5304_v14, 1 }
  0x72   : > { %990 = vmatpush.msrb.mxu0 %v755_v23  ;;  %1026 = vmatmul.f32.vlgmr.msra.gmra.mxu2 %v5282_v0  ;;  %v5321_v23 = vsel %vm425_vm0, %v476_v16, %v477_v17 }
  0x73   : > { %1095 = vmatpush.msrb.mxu3 %v676_v24  ;;  %7366 = vst [vmem:[#allocation27_spill] sm:$0xff] %v5321_v23  ;;  %v5324_v24 = vld [vmem:[%s5128_s24 + $0x100] sm:$0xff] }
  0x74   : > { %991 = vmatpush.msrb.mxu0 %v754_v25  ;;  %v5331_v25 = vld [vmem:[%s5128_s24 + $0x78] sm:$0xff] }
  0x75   : > { %791 = vmatmul.f32.gmra.mxu0 %v5208_v58  ;;  %898 = vmatmul.f32.gmra.mxu1 %v5219_v4  ;;  %v451_v39 = vrot.slane %v5331_v25, 1 }
  0x76   : > { %958 = vmatmul.f32.gmra.mxu3 %v5222_v5  ;;  %992 = vmatpush.msrb.mxu0 %v753_v32  ;;  %v572_v32 = vrot.slane %v5331_v25, 2  ;;  %v582_v5 = vrot.slane %v5152_v30, 2 }
  0x77   : > { %1096 = vmatpush.msrb.mxu3 %v675_v27  ;;  %v479_v27 = vrot.slane %v5324_v24, 1 }
  0x78   : > { %993 = vmatpush.msrb.mxu0 %v752_v38 }
  0x79   : > { %1097 = vmatpush.msrb.mxu3 %v674_v33  ;;  %v573_v33 = vrot.slane %v5334_v26, 2 }
  0x7a   : > { %994 = vmatpush.msrb.mxu0 %v751_v48  ;;  %1029 = vmatmul.f32.gmra.mxu2 %v5315_v18  ;;  %v5346_v48 = vsel %vm425_vm0, %v477_v17, %v479_v27 }
  0x7b   : > { %1098 = vmatpush.msrb.mxu3 %v673_v41  ;;  %v5340_v38 = vsel %vm546_vm1, %v572_v32, %v573_v33  ;;  %v5343_v41 = vsel %vm425_vm0, %v444_v15, %v441_v54  ;;  %7367 = vst [vmem:[#allocation28_spill] sm:$0xff] %v5346_v48 }
  0x7c   : > { %995 = vmatpush.msrb.mxu0 %v750_v61  ;;  %v447_v61 = vrot.slane %v5268_v42, 1 }
  0x7d   : > { %794 = vmatmul.f32.gmra.mxu0 %v5211_v59  ;;  %901 = vmatmul.f32.gmra.mxu1 %v5240_v19 }
  0x7e   : > { %961 = vmatmul.f32.gmra.mxu3 %v5245_v20  ;;  %v5362_v63 = vsel %vm425_vm0, %v446_v55, %v447_v61  ;;  %v5437_v20 = vld [vmem:[%s5128_s24 + $0xb0] sm:$0xff] }
  0x7f   : > { %1099 = vmatpush.msrb.mxu3 %v672_v49  ;;  %v5353_v49 = vld [vmem:[%s5128_s24 + $0x88] sm:$0xff]  ;;  %v583_v57 = vrot.slane %v5437_v20, 2 }
  0x80   : > { %v575_v54 = vrot.slane %v5353_v49, 2 }
  0x81   : > { %1100 = vmatpush.msrb.mxu3 %v671_v62 }
  0x82   : > { %1032 = vmatmul.f32.gmra.mxu2 %v5340_v38  ;;  %v5359_v62 = vsel %vm546_vm1, %v573_v33, %v575_v54  ;;  %v5373_v15 = vsel %vm546_vm1, %v575_v54, %v572_v32  ;;  %v5379_v33 = vld [vmem:[%s5128_s24] sm:$0xff] }
  0x83   : > { %1101 = vmatpush.msrb.mxu3 %v670_v1  ;;  %v5365_v1 = vsel %vm425_vm0, %v479_v27, %v476_v16  ;;  %v5386_v16 = vld [vmem:[%s5128_s24 + $0x90] sm:$0xff]  ;;  %v5389_v27 = vld [vmem:[%s5128_s24 + $0x98] sm:$0xff] }
  0x84   : > { %7368 = vst [vmem:[#allocation29_spill] sm:$0xff] %v5365_v1  ;;  %v577_v32 = vrot.slane %v5386_v16, 2  ;;  %v457_v52 = vrot.slane %v5389_v27, 1 }
  0x85   : > { %797 = vmatmul.f32.gmra.mxu0 %v5225_v6  ;;  %904 = vmatmul.f32.gmra.mxu1 %v5255_v34 }
  0x86   : > { %964 = vmatmul.f32.gmra.mxu3 %v5258_v35 }
  0x87   : > { %1102 = vmatpush.msrb.mxu3 %v669_v12  ;;  %v449_v12 = vrot.slane %v5276_v60, 1 }
  0x89   : > { %v5376_v17 = vsel %vm425_vm0, %v447_v61, %v449_v12  ;;  %v578_v61 = vrot.slane %v5389_v27, 2  ;;  %v5397_v13 = vsel %vm425_vm0, %v449_v12, %v446_v55  ;;  %v580_v55 = vrot.slane %v5407_v40, 2 }
  0x8a   : > { %1035 = vmatmul.f32.gmra.mxu2 %v5359_v62 }
  0x8b   : > { %v5394_v54 = vsel %vm546_vm1, %v577_v32, %v578_v61  ;;  %v5413_v12 = vsel %vm546_vm1, %v578_v61, %v580_v55  ;;  %v5427_v35 = vsel %vm546_vm1, %v580_v55, %v577_v32  ;;  %v5442_v32 = vsel %vm546_vm1, %v582_v5, %v583_v57 }
  0x8c   : > { %7369 = vst [vmem:[#allocation30_spill] sm:$0xff] %v5427_v35  ;;  %v456_v55 = vrot.slane %v5386_v16, 1 }
  0x8d   : > { %800 = vmatmul.f32.gmra.mxu0 %v5261_v36  ;;  %907 = vmatmul.f32.gmra.mxu1 %v5285_v2  ;;  %7371 = vst [vmem:[#allocation32_spill] sm:$0xff] %v5442_v32 }
  0x8e   : > { %967 = vmatmul.f32.gmra.mxu3 %v5290_v3  ;;  %v454_v3 = vrot.slane %v5353_v49, 1 }
  0x92   : > { %1038 = vmatmul.f32.gmra.mxu2 %v5373_v15 }
  0x95   : > { %803 = vmatmul.f32.gmra.mxu0 %v5264_v37  ;;  %910 = vmatmul.f32.gmra.mxu1 %v5318_v22 }
  0x96   : > { %970 = vmatmul.f32.gmra.mxu3 %v5321_v23  ;;  %v5419_v23 = vld [vmem:[%s5128_s24 + $0x10] sm:$0xff] }
  0x9a   : > { %1041 = vmatmul.f32.gmra.mxu2 %v5394_v54 }
  0x9d   : > { %806 = vmatmul.f32.gmra.mxu0 %v5293_v9  ;;  %913 = vmatmul.f32.gmra.mxu1 %v5343_v41 }
  0x9e   : > { %973 = vmatmul.f32.gmra.mxu3 %v5346_v48 }
  0xa2   : > { %1044 = vmatmul.f32.gmra.mxu2 %v5413_v12 }
  0xa5   : > { %809 = vmatmul.f32.gmra.mxu0 %v5304_v14  ;;  %916 = vmatmul.f32.gmra.mxu1 %v5362_v63 }
  0xa6   : > { %976 = vmatmul.f32.gmra.mxu3 %v5365_v1  ;;  %v452_v1 = vrot.slane %v5334_v26, 1 }
  0xa8   : > { %v5416_v48 = vsel %vm425_vm0, %v451_v39, %v452_v1  ;;  %v5430_v61 = vsel %vm425_vm0, %v452_v1, %v454_v3  ;;  %v5445_v1 = vsel %vm425_vm0, %v454_v3, %v451_v39  ;;  %v5458_v39 = vsel %vm425_vm0, %v456_v55, %v457_v52 }
  0xa9   : > { %7370 = vst [vmem:[#allocation31_spill] sm:$0xff] %v5430_v61  ;;  %v459_v3 = vrot.slane %v5407_v40, 1 }
  0xaa   : > { %1047 = vmatmul.f32.gmra.mxu2 %v5427_v35  ;;  %7372 = vst [vmem:[#allocation33_spill] sm:$0xff] %v5445_v1  ;;  %v5455_v35 = vsel %vm546_vm1, %v583_v57, %v585_v44 }
  0xab   : > { %7373 = vst [vmem:[#allocation34_spill] sm:$0xff] %v5455_v35 }
  0xac   : > { %7374 = vst [vmem:[#allocation35_spill] sm:$0xff] %v5458_v39 }
  0xad   : > { %812 = vmatmul.f32.gmra.mxu0 %v5268_v42  ;;  %919 = vmatmul.f32.gmra.mxu1 %v5376_v17 }
  0xae   : > { %1103 = vmatmul.f32.vlgmr.msrb.gmra.mxu3 %v5379_v33 }
  0xb2   : > { %1050 = vmatmul.f32.gmra.mxu2 %v5442_v32  ;;  %v5466_v32 = vsel %vm546_vm1, %v585_v44, %v582_v5  ;;  %v588_v44 = vrot.slane %v5178_v47, 2 }
  0xb3   : > { %7375 = vst [vmem:[#allocation36_spill] sm:$0xff] %v5466_v32 }
  0xb5   : > { %815 = vmatmul.f32.gmra.mxu0 %v5276_v60  ;;  %922 = vmatmul.f32.gmra.mxu1 %v5397_v13 }
  0xb6   : > { %1106 = vmatmul.f32.gmra.mxu3 %v5400_v50 }
  0xba   : > { %1053 = vmatmul.f32.gmra.mxu2 %v5455_v35  ;;  %v587_v35 = vrot.slane %v5175_v46, 2 }
  0xbd   : > { %818 = vmatmul.f32.gmra.mxu0 %v5331_v25  ;;  %925 = vmatmul.f32.gmra.mxu1 %v5416_v48 }
  0xbe   : > { %1109 = vmatmul.f32.gmra.mxu3 %v5419_v23 }
  0xc2   : > { %1056 = vmatmul.f32.gmra.mxu2 %v5466_v32  ;;  %v5489_v32 = vsel %vm425_vm0, %v459_v3, %v456_v55 }
  0xc3   : > { %7382 = vst [vmem:[#allocation43_spill] sm:$0xff] %v5489_v32 }
  0xc5   : > { %821 = vmatmul.f32.gmra.mxu0 %v5334_v26  ;;  %928 = vmatmul.f32.gmra.mxu1 %v5430_v61  ;;  %v5473_v61 = vsel %vm425_vm0, %v457_v52, %v459_v3  ;;  %v7385_v3 = vrot.slane %v5152_v30, 1 }
  0xc6   : > { %1112 = vmatmul.f32.gmra.mxu3 %v5146_v28  ;;  %7378 = vst [vmem:[#allocation39_spill] sm:$0xff] %v5473_v61 }
  0xcd   : > { %824 = vmatmul.f32.gmra.mxu0 %v5353_v49  ;;  %931 = vmatmul.f32.gmra.mxu1 %v5445_v1 }
  0xce   : > { %1115 = vmatmul.f32.gmra.mxu3 %v5149_v29 }
  0xd5   : > { %827 = vmatmul.f32.gmra.mxu0 %v5386_v16  ;;  %934 = vmatmul.f32.gmra.mxu1 %v5458_v39 }
  0xd6   : > { %1118 = vmatmul.f32.gmra.mxu3 %v5172_v45 }
  0xda   : > { %v5468_v1 = vpop.f32.mrf.mxu0  ;;  %v5470_v57 = vpop.f32.mrf.mxu1 }
  0xdb   : > { %7376 = vst [vmem:[#allocation37_spill] sm:$0xff] %v5468_v1  ;;  %v5482_v1 = vsel %vm546_vm1, %v587_v35, %v588_v44 }
  0xdc   : > { %7377 = vst [vmem:[#allocation38_spill] sm:$0xff] %v5470_v57  ;;  %1059 = vmatmul.f32.gmra.mxu2 %v5482_v1 }
  0xdd   : > { %830 = vmatmul.f32.gmra.mxu0 %v5389_v27  ;;  %937 = vmatmul.f32.gmra.mxu1 %v5473_v61  ;;  %7379 = vst [vmem:[#allocation40_spill] sm:$0xff] %v5482_v1  ;;  %v590_v61 = vrot.slane %v5195_v53, 2 }
  0xde   : > { %1121 = vmatmul.f32.gmra.mxu3 %v5208_v58 }
  0xe1   : > { %v950_v5 = vpop.f32.mrf.mxu3 }
  0xe2   : > { %v5484_v57 = vpop.f32.mrf.mxu0  ;;  %v5486_v52 = vpop.f32.mrf.mxu1  ;;  %v462_v5 = vrot.slane %v5437_v20, 1 }
  0xe3   : > { %7380 = vst [vmem:[#allocation41_spill] sm:$0xff] %v5484_v57  ;;  %v5500_v57 = vsel %vm546_vm1, %v588_v44, %v590_v61  ;;  %v5514_v44 = vsel %vm546_vm1, %v590_v61, %v587_v35  ;;  %v592_v35 = vrot.slane %v5228_v7, 2  ;;  %v593_v61 = vrot.slane %v5231_v8, 2 }
  0xe4   : > { %7381 = vst [vmem:[#allocation42_spill] sm:$0xff] %v5486_v52  ;;  %v5505_v1 = vsel %vm425_vm0, %v7385_v3, %v462_v5  ;;  %1062 = vmatmul.f32.gmra.mxu2 %v5500_v57  ;;  %v7391_v3 = vrot.slane %v5155_v31, 1 }
  0xe5   : > { %833 = vmatmul.f32.gmra.mxu0 %v5407_v40  ;;  %940 = vmatmul.f32.gmra.mxu1 %v5489_v32  ;;  %7384 = vst [vmem:[#allocation45_spill] sm:$0xff] %v5500_v57 }
  0xe6   : > { %1124 = vmatmul.f32.gmra.mxu3 %v5211_v59  ;;  %7386 = vst [vmem:[#allocation46_spill] sm:$0xff] %v5505_v1 }
  0xe7   : > { %7388 = vst [vmem:[#allocation48_spill] sm:$0xff] %v5514_v44 }
  0xe9   : > { %v5497_v39 = vpop.f32.mrf.mxu3 }
  0xea   : > { %7383 = vst [vmem:[#allocation44_spill] sm:$0xff] %v5497_v39  ;;  %v789_v52 = vpop.f32.mrf.mxu0  ;;  %v896_v55 = vpop.f32.mrf.mxu1  ;;  %v5523_v39 = vsel %vm425_vm0, %v462_v5, %v7391_v3  ;;  %v595_v3 = vrot.slane %v5248_v21, 2 }
  0xeb   : > { %7392 = vst [vmem:[#allocation51_spill] sm:$0xff] %v5523_v39 }
  0xec   : > { %1065 = vmatmul.f32.gmra.mxu2 %v5514_v44 }
  0xed   : > { %836 = vmatmul.f32.gmra.mxu0 %v5152_v30  ;;  %943 = vmatmul.f32.gmra.mxu1 %v5505_v1 }
  0xee   : > { %1127 = vmatmul.f32.gmra.mxu3 %v5225_v6 }
  0xf1   : > { %v5511_v32 = vpop.f32.mrf.mxu3 }
  0xf2   : > { %7387 = vst [vmem:[#allocation47_spill] sm:$0xff] %v5511_v32  ;;  %v5516_v52 = vpop.f32.mrf.mxu0  ;;  %v5518_v55 = vpop.f32.mrf.mxu1 }
  0xf3   : > { %7389 = vst [vmem:[#allocation49_spill] sm:$0xff] %v5516_v52 }
  0xf4   : > { %7390 = vst [vmem:[#allocation50_spill] sm:$0xff] %v5518_v55  ;;  %v5532_v55 = vsel %vm546_vm1, %v592_v35, %v593_v61 }
  0xf5   : > { %839 = vmatmul.f32.gmra.mxu0 %v5437_v20  ;;  %946 = vmatmul.f32.gmra.mxu1 %v5523_v39  ;;  %7393 = vst [vmem:[#allocation52_spill] sm:$0xff] %v5532_v55  ;;  %v5545_v39 = vsel %vm546_vm1, %v593_v61, %v595_v3  ;;  %v597_v61 = vrot.slane %v5296_v10, 2 }
  0xf6   : > { %1130 = vmatmul.f32.gmra.mxu3 %v5261_v36  ;;  %1068 = vmatmul.f32.gmra.mxu2 %v5532_v55  ;;  %7397 = vst [vmem:[#allocation56_spill] sm:$0xff] %v5545_v39 }
  0xf9   : > { %v959_v32 = vpop.f32.mrf.mxu3 }
  0xfa   : > { %v5534_v52 = vpop.f32.mrf.mxu0  ;;  %v5536_v5 = vpop.f32.mrf.mxu1 }
  0xfb   : > { %7394 = vst [vmem:[#allocation53_spill] sm:$0xff] %v5534_v52  ;;  %v5553_v52 = vsel %vm546_vm1, %v595_v3, %v592_v35 }
  0xfc   : > { %7395 = vst [vmem:[#allocation54_spill] sm:$0xff] %v5536_v5 }
  0xfd   : > { %842 = vmatmul.f32.gmra.mxu0 %v5155_v31  ;;  %7399 = vst [vmem:[#allocation58_spill] sm:$0xff] %v5553_v52 }
  0xfe   : > { %1133 = vmatmul.f32.gmra.mxu3 %v5264_v37  ;;  %1071 = vmatmul.f32.gmra.mxu2 %v5545_v39 }
 0x101   : > { %v5542_v44 = vpop.f32.mrf.mxu3 }
 0x102   : > { %7396 = vst [vmem:[#allocation55_spill] sm:$0xff] %v5542_v44  ;;  %v798_v32 = vpop.f32.mrf.mxu0  ;;  %v905_v57 = vpop.f32.mrf.mxu1 }
 0x103   : > { %v5562_v57 = vpop.f32.mrf.mxu2  ;;  %v598_v32 = vrot.slane %v5299_v11, 2 }
 0x104   : > { %7402 = vst [vmem:[#allocation61_spill] sm:$0xff] %v5562_v57  ;;  %v600_v57 = vrot.slane %v5324_v24, 2 }
 0x105   : > { %845 = vmatmul.f32.gmra.mxu0 %v5175_v46  ;;  %v5567_v35 = vsel %vm546_vm1, %v597_v61, %v598_v32 }
 0x106   : > { %1136 = vmatmul.f32.gmra.mxu3 %v5293_v9  ;;  %1074 = vmatmul.f32.gmra.mxu2 %v5553_v52  ;;  %7403 = vst [vmem:[#allocation62_spill] sm:$0xff] %v5567_v35 }
 0x109   : > { %v5550_v5 = vpop.f32.mrf.mxu3 }
 0x10a   : > { %7398 = vst [vmem:[#allocation57_spill] sm:$0xff] %v5550_v5  ;;  %v5555_v55 = vpop.f32.mrf.mxu0  ;;  %v5557_v1 = vpop.f32.mrf.mxu1 }
 0x10b   : > { %7400 = vst [vmem:[#allocation59_spill] sm:$0xff] %v5555_v55 }
 0x10c   : > { %7401 = vst [vmem:[#allocation60_spill] sm:$0xff] %v5557_v1  ;;  %v1030_v1 = vpop.f32.mrf.mxu2 }
 0x10d   : > { %848 = vmatmul.f32.gmra.mxu0 %v5178_v47  ;;  %v5590_v1 = vsel %vm546_vm1, %v600_v57, %v597_v61 }
 0x10e   : > { %1139 = vmatmul.f32.gmra.mxu3 %v5304_v14  ;;  %1077 = vmatmul.f32.gmra.mxu2 %v5567_v35  ;;  %7410 = vst [vmem:[#allocation69_spill] sm:$0xff] %v5590_v1 }
 0x111   : > { %v968_v5 = vpop.f32.mrf.mxu3 }
 0x112   : > { %v5569_v3 = vpop.f32.mrf.mxu0  ;;  %v5571_v44 = vpop.f32.mrf.mxu1  ;;  %v5580_v5 = vsel %vm546_vm1, %v598_v32, %v600_v57  ;;  %v700_v57 = vld [vmem:[#allocation6 + $0xf8] sm:$0xff] }
 0x113   : > { %7404 = vst [vmem:[#allocation63_spill] sm:$0xff] %v5569_v3  ;;  %1194 = vmatpush.msra.mxu0 %v700_v57 }
 0x114   : > { %7405 = vst [vmem:[#allocation64_spill] sm:$0xff] %v5571_v44  ;;  %v5585_v35 = vpop.f32.mrf.mxu2 }
 0x115   : > { %851 = vmatmul.f32.gmra.mxu0 %v5195_v53  ;;  %7407 = vst [vmem:[#allocation66_spill] sm:$0xff] %v5580_v5 }
 0x116   : > { %1142 = vmatmul.f32.gmra.mxu3 %v5268_v42  ;;  %1080 = vmatmul.f32.gmra.mxu2 %v5580_v5  ;;  %7408 = vst [vmem:[#allocation67_spill] sm:$0xff] %v5585_v35  ;;  %v699_v5 = vld [vmem:[#allocation6 + $0xf0] sm:$0xff] }
 0x117   : > { %1195 = vmatpush.msra.mxu0 %v699_v5 }
 0x119   : > { %v5577_v55 = vpop.f32.mrf.mxu3 }
 0x11a   : > { %7406 = vst [vmem:[#allocation65_spill] sm:$0xff] %v5577_v55  ;;  %v807_v52 = vpop.f32.mrf.mxu0  ;;  %v914_v39 = vpop.f32.mrf.mxu1 }
 0x11c   : > { %v5599_v39 = vpop.f32.mrf.mxu2 }
 0x11d   : > { %854 = vmatmul.f32.gmra.mxu0 %v5228_v7  ;;  %7413 = vst [vmem:[#allocation72_spill] sm:$0xff] %v5599_v39 }
 0x11e   : > { %1145 = vmatmul.f32.gmra.mxu3 %v5276_v60  ;;  %1083 = vmatmul.f32.gmra.mxu2 %v5590_v1 }
 0x121   : > { %v5587_v44 = vpop.f32.mrf.mxu3 }
 0x122   : > { %7409 = vst [vmem:[#allocation68_spill] sm:$0xff] %v5587_v44  ;;  %v5592_v3 = vpop.f32.mrf.mxu0  ;;  %v5594_v55 = vpop.f32.mrf.mxu1 }
 0x123   : > { %7411 = vst [vmem:[#allocation70_spill] sm:$0xff] %v5592_v3  ;;  %v1411_v3 = vld [vmem:[#allocation6 + $0x310] sm:$0xff] }
 0x124   : > { %7412 = vst [vmem:[#allocation71_spill] sm:$0xff] %v5594_v55  ;;  %v1039_v61 = vpop.f32.mrf.mxu2 }
 0x125   : > { %857 = vmatmul.f32.gmra.mxu0 %v5231_v8 }
 0x126   : > { %1148 = vmatmul.f32.gmra.mxu3 %v5331_v25  ;;  %v698_v25 = vld [vmem:[#allocation6 + $0xe8] sm:$0xff] }
 0x127   : > { %1196 = vmatpush.msra.mxu0 %v698_v25  ;;  %v552_v25 = vrot.slane %v5146_v28, 2  ;;  %v555_v28 = vrot.slane %v5172_v45, 2 }
 0x129   : > { %v977_v60 = vpop.f32.mrf.mxu3 }
 0x12a   : > { %v5601_v52 = vpop.f32.mrf.mxu0  ;;  %v5603_v32 = vpop.f32.mrf.mxu1 }
 0x12b   : > { %7414 = vst [vmem:[#allocation73_spill] sm:$0xff] %v5601_v52  ;;  %v1443_v52 = vld [vmem:[#allocation6 + $0x410] sm:$0xff] }
 0x12c   : > { %7415 = vst [vmem:[#allocation74_spill] sm:$0xff] %v5603_v32  ;;  %v5611_v60 = vpop.f32.mrf.mxu2 }
 0x12d   : > { %860 = vmatmul.f32.gmra.mxu0 %v5248_v21  ;;  %7416 = vst [vmem:[#allocation75_spill] sm:$0xff] %v5611_v60 }
 0x12e   : > { %1151 = vmatmul.f32.gmra.mxu3 %v5334_v26 }
 0x131   : > { %v5607_v44 = vpop.f32.mrf.mxu3 }
 0x132   : > { %v816_v35 = vpop.f32.mrf.mxu0  ;;  %v923_v1 = vpop.f32.mrf.mxu1 }
 0x133   : > { %v697_v35 = vld [vmem:[#allocation6 + $0xe0] sm:$0xff] }
 0x134   : > { %v5621_v1 = vpop.f32.mrf.mxu2  ;;  %1197 = vmatpush.msra.mxu0 %v697_v35 }
 0x135   : > { %863 = vmatmul.f32.gmra.mxu0 %v5296_v10  ;;  %7419 = vst [vmem:[#allocation78_spill] sm:$0xff] %v5621_v1 }
 0x136   : > { %1154 = vmatmul.f32.gmra.mxu3 %v5353_v49  ;;  %v696_v49 = vld [vmem:[#allocation6 + $0xd8] sm:$0xff] }
 0x137   : > { %1198 = vmatpush.msra.mxu0 %v696_v49 }
 0x139   : > { %v5613_v39 = vpop.f32.mrf.mxu3 }
 0x13a   : > { %v5615_v26 = vpop.f32.mrf.mxu0  ;;  %v5617_v61 = vpop.f32.mrf.mxu1 }
 0x13b   : > { %7417 = vst [vmem:[#allocation76_spill] sm:$0xff] %v5615_v26 }
 0x13c   : > { %7418 = vst [vmem:[#allocation77_spill] sm:$0xff] %v5617_v61  ;;  %v1048_v60 = vpop.f32.mrf.mxu2 }
 0x13d   : > { %866 = vmatmul.f32.gmra.mxu0 %v5299_v11  ;;  %v553_v11 = vrot.slane %v5149_v29, 2 }
 0x13e   : > { %1157 = vmatmul.f32.gmra.mxu3 %v5386_v16  ;;  %v695_v16 = vld [vmem:[#allocation6 + $0xd0] sm:$0xff] }
 0x13f   : > { %1199 = vmatpush.msra.mxu0 %v695_v16  ;;  %v5646_v16 = vsel %vm546_vm1, %v553_v11, %v555_v28 }
 0x141   : > { %v1110_v10 = vpop.f32.mrf.mxu3 }
 0x142   : > { %v5623_v5 = vpop.f32.mrf.mxu0  ;;  %v5625_v57 = vpop.f32.mrf.mxu1  ;;  %v5634_v10 = vsel %vm546_vm1, %v552_v25, %v553_v11 }
 0x143   : > { %7420 = vst [vmem:[#allocation79_spill] sm:$0xff] %v5623_v5  ;;  %v694_v5 = vld [vmem:[#allocation6 + $0xc8] sm:$0xff] }
 0x144   : > { %7421 = vst [vmem:[#allocation80_spill] sm:$0xff] %v5625_v57  ;;  %1200 = vmatpush.msra.mxu0 %v694_v5  ;;  %v706_v57 = vld [vmem:[#allocation6 + $0x128] sm:$0xff] }
 0x145   : > { %869 = vmatmul.f32.gmra.mxu0 %v5324_v24  ;;  %v5639_v24 = vpop.f32.mrf.mxu2 }
 0x146   : > { %1160 = vmatmul.f32.gmra.mxu3 %v5389_v27  ;;  %7422 = vst [vmem:[#allocation81_spill] sm:$0xff] %v5639_v24  ;;  %v693_v27 = vld [vmem:[#allocation6 + $0xc0] sm:$0xff]  ;;  %v5657_v24 = vsel %vm546_vm1, %v555_v28, %v552_v25 }
 0x147   : > { %1201 = vmatpush.msra.mxu0 %v693_v27  ;;  %v558_v27 = vrot.slane %v5211_v59, 2  ;;  %v560_v59 = vrot.slane %v5225_v6, 2  ;;  %v687_v6 = vld [vmem:[#allocation6 + $0x90] sm:$0xff] }
 0x149   : > { %v5631_v1 = vpop.f32.mrf.mxu3 }
 0x14a   : > { %v825_v35 = vpop.f32.mrf.mxu0  ;;  %v932_v49 = vpop.f32.mrf.mxu1 }
 0x14d   : > { %996 = vmatmul.f32.vlgmr.msrb.gmra.mxu0 %v5634_v10  ;;  %v5652_v45 = vpop.f32.mrf.mxu2 }
 0x14e   : > { %1163 = vmatmul.f32.gmra.mxu3 %v5407_v40  ;;  %v692_v40 = vld [vmem:[#allocation6 + $0xb8] sm:$0xff]  ;;  %7425 = vst [vmem:[#allocation84_spill] sm:$0xff] %v5652_v45  ;;  %v690_v45 = vld [vmem:[#allocation6 + $0xa8] sm:$0xff] }
 0x14f   : > { %1202 = vmatpush.msra.mxu0 %v692_v40 }
 0x151   : > { %v5641_v29 = vpop.f32.mrf.mxu3 }
 0x152   : > { %v5643_v60 = vpop.f32.mrf.mxu0  ;;  %v5648_v35 = vpop.f32.mrf.mxu1 }
 0x153   : > { %7423 = vst [vmem:[#allocation82_spill] sm:$0xff] %v5643_v60  ;;  %v691_v60 = vld [vmem:[#allocation6 + $0xb0] sm:$0xff] }
 0x154   : > { %7424 = vst [vmem:[#allocation83_spill] sm:$0xff] %v5648_v35  ;;  %1203 = vmatpush.msra.mxu0 %v691_v60  ;;  %v715_v60 = vld [vmem:[#allocation6 + $0x170] sm:$0xff]  ;;  %v714_v35 = vld [vmem:[#allocation6 + $0x168] sm:$0xff] }
 0x155   : > { %999 = vmatmul.f32.gmra.mxu0 %v5646_v16  ;;  %v1057_v40 = vpop.f32.mrf.mxu2 }
 0x156   : > { %1166 = vmatmul.f32.gmra.mxu3 %v5152_v30  ;;  %v557_v30 = vrot.slane %v5208_v58, 2  ;;  %1204 = vmatpush.msra.mxu0 %v690_v45  ;;  %v689_v58 = vld [vmem:[#allocation6 + $0xa0] sm:$0xff]  ;;  %v712_v40 = vld [vmem:[#allocation6 + $0x158] sm:$0xff] }
 0x158   : > { %v5668_v28 = vsel %vm546_vm1, %v557_v30, %v558_v27  ;;  %1205 = vmatpush.msra.mxu0 %v689_v58  ;;  %v709_v58 = vld [vmem:[#allocation6 + $0x140] sm:$0xff] }
 0x159   : > { %v1119_v5 = vpop.f32.mrf.mxu3 }
 0x15a   : > { %v5654_v49 = vpop.f32.mrf.mxu0  ;;  %v5659_v11 = vpop.f32.mrf.mxu1  ;;  %v716_v5 = vld [vmem:[#allocation6 + $0x178] sm:$0xff] }
 0x15b   : > { %7426 = vst [vmem:[#allocation85_spill] sm:$0xff] %v5654_v49  ;;  %1301 = vmatpush.msrb.mxu1 %v716_v5 }
 0x15c   : > { %7427 = vst [vmem:[#allocation86_spill] sm:$0xff] %v5659_v11 }
 0x15d   : > { %1002 = vmatmul.f32.gmra.mxu0 %v5657_v24  ;;  %1302 = vmatpush.msrb.mxu1 %v715_v60  ;;  %v5680_v60 = vsel %vm546_vm1, %v558_v27, %v560_v59 }
 0x15e   : > { %1169 = vmatmul.f32.gmra.mxu3 %v5437_v20  ;;  %v713_v20 = vld [vmem:[#allocation6 + $0x160] sm:$0xff] }
 0x15f   : > { %1303 = vmatpush.msrb.mxu1 %v714_v35  ;;  %v5673_v45 = vpop.f32.mrf.mxu2  ;;  %v711_v35 = vld [vmem:[#allocation6 + $0x150] sm:$0xff] }
 0x160   : > { %7429 = vst [vmem:[#allocation88_spill] sm:$0xff] %v5673_v45 }
 0x161   : > { %v5665_v49 = vpop.f32.mrf.mxu3  ;;  %1304 = vmatpush.msrb.mxu1 %v713_v20 }
 0x162   : > { %7428 = vst [vmem:[#allocation87_spill] sm:$0xff] %v5665_v49  ;;  %v834_v25 = vpop.f32.mrf.mxu0  ;;  %v941_v11 = vpop.f32.mrf.mxu1  ;;  %v1409_v49 = vld [vmem:[#allocation6 + $0x300] sm:$0xff] }
 0x163   : > { %1305 = vmatpush.msrb.mxu1 %v712_v40  ;;  %v688_v11 = vld [vmem:[#allocation6 + $0x98] sm:$0xff] }
 0x164   : > { %1206 = vmatpush.msra.mxu0 %v688_v11  ;;  %v708_v40 = vld [vmem:[#allocation6 + $0x138] sm:$0xff]  ;;  %v5689_v11 = vsel %vm546_vm1, %v560_v59, %v557_v30  ;;  %v426_v59 = vrot.slane %v5379_v33, 1 }
 0x165   : > { %1005 = vmatmul.f32.gmra.mxu0 %v5668_v28  ;;  %1306 = vmatpush.msrb.mxu1 %v711_v35  ;;  %v707_v35 = vld [vmem:[#allocation6 + $0x130] sm:$0xff]  ;;  %v704_v30 = vld [vmem:[#allocation6 + $0x118] sm:$0xff] }
 0x166   : > { %1172 = vmatmul.f32.gmra.mxu3 %v5155_v31  ;;  %v710_v31 = vld [vmem:[#allocation6 + $0x148] sm:$0xff]  ;;  %1207 = vmatpush.msra.mxu0 %v687_v6  ;;  %v705_v6 = vld [vmem:[#allocation6 + $0x120] sm:$0xff] }
 0x167   : > { %1307 = vmatpush.msrb.mxu1 %v710_v31  ;;  %v5684_v20 = vpop.f32.mrf.mxu2  ;;  %v1440_v31 = vld [vmem:[#allocation6 + $0x3f8] sm:$0xff] }
 0x168   : > { %7432 = vst [vmem:[#allocation91_spill] sm:$0xff] %v5684_v20  ;;  %1564 = vmatpush.msra.mxu3 %v1440_v31  ;;  %v702_v31 = vld [vmem:[#allocation6 + $0x108] sm:$0xff]  ;;  %v701_v20 = vld [vmem:[#allocation6 + $0x100] sm:$0xff] }
 0x169   : > { %v5675_v5 = vpop.f32.mrf.mxu3  ;;  %1308 = vmatpush.msrb.mxu1 %v709_v58 }
 0x16a   : > { %7430 = vst [vmem:[#allocation89_spill] sm:$0xff] %v5675_v5  ;;  %v5677_v25 = vpop.f32.mrf.mxu0 }
 0x16b   : > { %7431 = vst [vmem:[#allocation90_spill] sm:$0xff] %v5677_v25  ;;  %1309 = vmatpush.msrb.mxu1 %v708_v40  ;;  %v686_v25 = vld [vmem:[#allocation6 + $0x88] sm:$0xff]  ;;  %v547_v40 = vrot.slane %v5379_v33, 2 }
 0x16c   : > { %1208 = vmatpush.msra.mxu0 %v686_v25  ;;  %v427_v25 = vrot.slane %v5400_v50, 1 }
 0x16d   : > { %1008 = vmatmul.f32.gmra.mxu0 %v5680_v60  ;;  %1310 = vmatpush.msrb.mxu1 %v707_v35 }
 0x16e   : > { %1175 = vmatmul.f32.gmra.mxu3 %v5175_v46  ;;  %v562_v46 = vrot.slane %v5261_v36, 2  ;;  %v428_v33 = vsel %vm425_vm0, %v426_v59, %v427_v25 }
 0x16f   : > { %1311 = vmatpush.msrb.mxu1 %v706_v57  ;;  %v1066_v58 = vpop.f32.mrf.mxu2  ;;  %v548_v57 = vrot.slane %v5400_v50, 2 }
 0x170   : > { %v703_v58 = vld [vmem:[#allocation6 + $0x110] sm:$0xff] }
 0x171   : > { %v1128_v45 = vpop.f32.mrf.mxu3  ;;  %1312 = vmatpush.msrb.mxu1 %v705_v6  ;;  %v1456_v6 = vld [vmem:[#allocation6 + $0x478] sm:$0xff]  ;;  %v549_v50 = vsel %vm546_vm1, %v547_v40, %v548_v57 }
 0x172   : > { %v5686_v27 = vpop.f32.mrf.mxu0  ;;  %v563_v45 = vrot.slane %v5264_v37, 2  ;;  %v685_v37 = vld [vmem:[#allocation6 + $0x80] sm:$0xff] }
 0x173   : > { %7433 = vst [vmem:[#allocation92_spill] sm:$0xff] %v5686_v27  ;;  %1313 = vmatpush.msrb.mxu1 %v704_v30  ;;  %1209 = vmatpush.msra.mxu0 %v685_v37  ;;  %v565_v30 = vrot.slane %v5293_v9, 2  ;;  %v429_v37 = vrot.slane %v5419_v23, 1 }
 0x174   : > { %v5702_v36 = vsel %vm546_vm1, %v562_v46, %v563_v45 }
 0x175   : > { %1011 = vmatmul.f32.gmra.mxu0 %v5689_v11  ;;  %1314 = vmatpush.msrb.mxu1 %v703_v58  ;;  %v550_v58 = vrot.slane %v5419_v23, 2  ;;  %v5718_v61 = vsel %vm546_vm1, %v563_v45, %v565_v30  ;;  %v430_v9 = vsel %vm425_vm0, %v427_v25, %v429_v37  ;;  %v1455_v45 = vld [vmem:[#allocation6 + $0x470] sm:$0xff] }
 0x176   : > { %1178 = vmatmul.f32.gmra.mxu3 %v5178_v47  ;;  %1671 = vmatpush.msrb.mxu0 %v1456_v6 }
 0x177   : > { %1315 = vmatpush.msrb.mxu1 %v702_v31  ;;  %v551_v6 = vsel %vm546_vm1, %v548_v57, %v550_v58  ;;  %v655_v25 = vsel %vm546_vm1, %v550_v58, %v547_v40 }
 0x178   : > { %1672 = vmatpush.msrb.mxu0 %v1455_v45  ;;  %v1437_v45 = vld [vmem:[#allocation6 + $0x3e0] sm:$0xff] }
 0x179   : > { %v5699_v35 = vpop.f32.mrf.mxu3  ;;  %1316 = vmatpush.msrb.mxu1 %v701_v20 }
 0x17a   : > { %7434 = vst [vmem:[#allocation93_spill] sm:$0xff] %v5699_v35  ;;  %v843_v47 = vpop.f32.mrf.mxu0  ;;  %1317 = vmatmul.f32.vlgmr.msrb.gmra.mxu1 %v549_v50  ;;  %v7476_v35 = vld [vmem:[#allocation40_spill] sm:$0xff] }
 0x17b   : > { %v5709_v47 = vpop.f32.mrf.mxu2 }
 0x17c   : > { %7435 = vst [vmem:[#allocation94_spill] sm:$0xff] %v5709_v47  ;;  %v5729_v47 = vsel %vm546_vm1, %v565_v30, %v562_v46  ;;  %v7442_v46 = vrot.slane %v5304_v14, 2 }
 0x17d   : > { %1014 = vmatmul.f32.gmra.mxu0 %v5702_v36 }
 0x17e   : > { %1181 = vmatmul.f32.gmra.mxu3 %v5195_v53  ;;  %v1439_v53 = vld [vmem:[#allocation6 + $0x3f0] sm:$0xff] }
 0x17f   : > { %1565 = vmatpush.msra.mxu3 %v1439_v53 }
 0x181   : > { %v5713_v31 = vpop.f32.mrf.mxu3 }
 0x182   : > { %7436 = vst [vmem:[#allocation95_spill] sm:$0xff] %v5713_v31  ;;  %v5715_v27 = vpop.f32.mrf.mxu0  ;;  %1320 = vmatmul.f32.gmra.mxu1 %v551_v6  ;;  %v7441_v6 = vrot.slane %v5268_v42, 2  ;;  %v1454_v42 = vld [vmem:[#allocation6 + $0x468] sm:$0xff]  ;;  %v7475_v31 = vld [vmem:[#allocation43_spill] sm:$0xff] }
 0x183   : > { %7437 = vst [vmem:[#allocation96_spill] sm:$0xff] %v5715_v27  ;;  %v5724_v20 = vpop.f32.mrf.mxu2  ;;  %v534_v27 = vsel %vm425_vm0, %v429_v37, %v426_v59  ;;  %v1438_v59 = vld [vmem:[#allocation6 + $0x3e8] sm:$0xff]  ;;  %1673 = vmatpush.msrb.mxu0 %v1454_v42  ;;  %v1424_v42 = vld [vmem:[#allocation6 + $0x378] sm:$0xff] }
 0x184   : > { %7438 = vst [vmem:[#allocation97_spill] sm:$0xff] %v5724_v20  ;;  %v5742_v30 = vsel %vm546_vm1, %v7442_v46, %v7441_v6  ;;  %1566 = vmatpush.msra.mxu3 %v1438_v59  ;;  %v1452_v6 = vld [vmem:[#allocation6 + $0x458] sm:$0xff]  ;;  %v1435_v59 = vld [vmem:[#allocation6 + $0x3d0] sm:$0xff]  ;;  %1457 = vmatpush.msrb.mxu2 %v1424_v42 }
 0x185   : > { %1017 = vmatmul.f32.gmra.mxu0 %v5718_v61 }
 0x186   : > { %1184 = vmatmul.f32.gmra.mxu3 %v5228_v7 }
 0x187   : > { %1567 = vmatpush.msra.mxu3 %v1437_v45 }
 0x189   : > { %v1137_v23 = vpop.f32.mrf.mxu3 }
 0x18a   : > { %v5726_v50 = vpop.f32.mrf.mxu0  ;;  %1323 = vmatmul.f32.gmra.mxu1 %v655_v25 }
 0x18b   : > { %7439 = vst [vmem:[#allocation98_spill] sm:$0xff] %v5726_v50  ;;  %v1075_v7 = vpop.f32.mrf.mxu2  ;;  %v1415_v50 = vld [vmem:[#allocation6 + $0x330] sm:$0xff] }
 0x18c   : > { %v1453_v7 = vld [vmem:[#allocation6 + $0x460] sm:$0xff] }
 0x18d   : > { %1020 = vmatmul.f32.gmra.mxu0 %v5729_v47 }
 0x18e   : > { %1187 = vmatmul.f32.gmra.mxu3 %v5231_v8  ;;  %1674 = vmatpush.msrb.mxu0 %v1453_v7  ;;  %v1450_v7 = vld [vmem:[#allocation6 + $0x448] sm:$0xff] }
 0x190   : > { %1675 = vmatpush.msrb.mxu0 %v1452_v6  ;;  %v1422_v6 = vld [vmem:[#allocation6 + $0x368] sm:$0xff] }
 0x191   : > { %v5735_v57 = vpop.f32.mrf.mxu3 }
 0x192   : > { %7440 = vst [vmem:[#allocation99_spill] sm:$0xff] %v5735_v57  ;;  %v852_v53 = vpop.f32.mrf.mxu0  ;;  %1326 = vmatmul.f32.gmra.mxu1 %v5634_v10 }
 0x193   : > { %v5746_v40 = vpop.f32.mrf.mxu2 }
 0x194   : > { %7443 = vst [vmem:[#allocation100_spill] sm:$0xff] %v5746_v40 }
 0x195   : > { %1023 = vmatmul.f32.gmra.mxu0 %v5742_v30 }
 0x196   : > { %1190 = vmatmul.f32.gmra.mxu3 %v5248_v21 }
 0x199   : > { %v5749_v8 = vpop.f32.mrf.mxu3 }
 0x19a   : > { %7444 = vst [vmem:[#allocation101_spill] sm:$0xff] %v5749_v8  ;;  %v5751_v37 = vpop.f32.mrf.mxu0  ;;  %1329 = vmatmul.f32.gmra.mxu1 %v5646_v16  ;;  %v1436_v16 = vld [vmem:[#allocation6 + $0x3d8] sm:$0xff]  ;;  %v7471_v8 = vld [vmem:[#allocation34_spill] sm:$0xff] }
 0x19b   : > { %7445 = vst [vmem:[#allocation102_spill] sm:$0xff] %v5751_v37  ;;  %v5753_v14 = vpop.f32.mrf.mxu2  ;;  %1568 = vmatpush.msra.mxu3 %v1436_v16  ;;  %v1430_v37 = vld [vmem:[#allocation6 + $0x3a8] sm:$0xff] }
 0x19c   : > { %7446 = vst [vmem:[#allocation103_spill] sm:$0xff] %v5753_v14 }
 0x19d   : > { %1210 = vmatmul.f32.vlgmr.msra.gmra.mxu0 %v428_v33  ;;  %1569 = vmatpush.msra.mxu3 %v1435_v59 }
 0x1a1   : > { %v1146_v58 = vpop.f32.mrf.mxu3 }
 0x1a2   : > { %v5756_v23 = vpop.f32.mrf.mxu0  ;;  %1332 = vmatmul.f32.gmra.mxu1 %v5657_v24  ;;  %v1451_v58 = vld [vmem:[#allocation6 + $0x450] sm:$0xff] }
 0x1a3   : > { %7447 = vst [vmem:[#allocation104_spill] sm:$0xff] %v5756_v23  ;;  %v1084_v21 = vpop.f32.mrf.mxu2  ;;  %1676 = vmatpush.msrb.mxu0 %v1451_v58  ;;  %v1421_v58 = vld [vmem:[#allocation6 + $0x360] sm:$0xff] }
 0x1a4   : > { %v1434_v21 = vld [vmem:[#allocation6 + $0x3c8] sm:$0xff] }
 0x1a5   : > { %1213 = vmatmul.f32.gmra.mxu0 %v430_v9  ;;  %1570 = vmatpush.msra.mxu3 %v1434_v21 }
 0x1a6   : > { %1677 = vmatpush.msrb.mxu0 %v1450_v7  ;;  %v5798_v7 = vpop.f32.mrf.mxu1 }
 0x1a7   : > { %7456 = vst [vmem:[#allocation113_spill] sm:$0xff] %v5798_v7 }
 0x1a9   : > { %v5759_v10 = vpop.f32.mrf.mxu3 }
 0x1aa   : > { %7448 = vst [vmem:[#allocation105_spill] sm:$0xff] %v5759_v10  ;;  %v861_v25 = vpop.f32.mrf.mxu0  ;;  %1335 = vmatmul.f32.gmra.mxu1 %v5668_v28 }
 0x1ad   : > { %1216 = vmatmul.f32.gmra.mxu0 %v534_v27 }
 0x1ae   : > { %v5804_v14 = vpop.f32.mrf.mxu1 }
 0x1af   : > { %7458 = vst [vmem:[#allocation115_spill] sm:$0xff] %v5804_v14 }
 0x1b1   : > { %v5762_v33 = vpop.f32.mrf.mxu3 }
 0x1b2   : > { %7449 = vst [vmem:[#allocation106_spill] sm:$0xff] %v5762_v33  ;;  %v5764_v53 = vpop.f32.mrf.mxu0  ;;  %1338 = vmatmul.f32.gmra.mxu1 %v5680_v60  ;;  %v7469_v33 = vld [vmem:[#allocation35_spill] sm:$0xff] }
 0x1b3   : > { %7450 = vst [vmem:[#allocation107_spill] sm:$0xff] %v5764_v53 }
 0x1b5   : > { %1219 = vmatmul.f32.gmra.mxu0 %v5162_v43 }
 0x1b9   : > { %v1155_v9 = vpop.f32.mrf.mxu3 }
 0x1ba   : > { %v5768_v24 = vpop.f32.mrf.mxu0  ;;  %1341 = vmatmul.f32.gmra.mxu1 %v5689_v11 }
 0x1bb   : > { %7451 = vst [vmem:[#allocation108_spill] sm:$0xff] %v5768_v24 }
 0x1bd   : > { %1222 = vmatmul.f32.gmra.mxu0 %v5189_v51  ;;  %v1423_v51 = vld [vmem:[#allocation6 + $0x370] sm:$0xff] }
 0x1be   : > { %1458 = vmatpush.msrb.mxu2 %v1423_v51  ;;  %v1449_v51 = vld [vmem:[#allocation6 + $0x440] sm:$0xff] }
 0x1bf   : > { %1678 = vmatpush.msrb.mxu0 %v1449_v51  ;;  %v1448_v51 = vld [vmem:[#allocation6 + $0x438] sm:$0xff] }
 0x1c0   : > { %1459 = vmatpush.msrb.mxu2 %v1422_v6  ;;  %v1432_v6 = vld [vmem:[#allocation6 + $0x3b8] sm:$0xff] }
 0x1c1   : > { %v5772_v27 = vpop.f32.mrf.mxu3  ;;  %1679 = vmatpush.msrb.mxu0 %v1448_v51 }
 0x1c2   : > { %7452 = vst [vmem:[#allocation109_spill] sm:$0xff] %v5772_v27  ;;  %v870_v46 = vpop.f32.mrf.mxu0  ;;  %1344 = vmatmul.f32.gmra.mxu1 %v5702_v36  ;;  %1460 = vmatpush.msrb.mxu2 %v1421_v58  ;;  %v1428_v27 = vld [vmem:[#allocation6 + $0x398] sm:$0xff] }
 0x1c3   : > { %v1433_v46 = vld [vmem:[#allocation6 + $0x3c0] sm:$0xff] }
 0x1c4   : > { %1571 = vmatpush.msra.mxu3 %v1433_v46 }
 0x1c5   : > { %1225 = vmatmul.f32.gmra.mxu0 %v5202_v56 }
 0x1c6   : > { %1572 = vmatpush.msra.mxu3 %v1432_v6  ;;  %v1431_v6 = vld [vmem:[#allocation6 + $0x3b0] sm:$0xff] }
 0x1c8   : > { %1573 = vmatpush.msra.mxu3 %v1431_v6 }
 0x1c9   : > { %v5776_v43 = vpop.f32.mrf.mxu3 }
 0x1ca   : > { %7453 = vst [vmem:[#allocation110_spill] sm:$0xff] %v5776_v43  ;;  %v5778_v45 = vpop.f32.mrf.mxu0  ;;  %1347 = vmatmul.f32.gmra.mxu1 %v5718_v61  ;;  %1574 = vmatpush.msra.mxu3 %v1430_v37  ;;  %v1445_v43 = vld [vmem:[#allocation6 + $0x420] sm:$0xff] }
 0x1cd   : > { %1228 = vmatmul.f32.gmra.mxu0 %v5219_v4 }
 0x1d1   : > { %v1164_v25 = vpop.f32.mrf.mxu3 }
 0x1d2   : > { %v5782_v56 = vpop.f32.mrf.mxu0  ;;  %1350 = vmatmul.f32.gmra.mxu1 %v5729_v47 }
 0x1d5   : > { %1231 = vmatmul.f32.gmra.mxu0 %v5240_v19 }
 0x1d9   : > { %v5786_v16 = vpop.f32.mrf.mxu3 }
 0x1da   : > { %7454 = vst [vmem:[#allocation111_spill] sm:$0xff] %v5786_v16  ;;  %v1003_v9 = vpop.f32.mrf.mxu0  ;;  %1353 = vmatmul.f32.gmra.mxu1 %v5742_v30 }
 0x1db   : > { %v1420_v9 = vld [vmem:[#allocation6 + $0x358] sm:$0xff] }
 0x1dc   : > { %1461 = vmatpush.msrb.mxu2 %v1420_v9 }
 0x1dd   : > { %1234 = vmatmul.f32.gmra.mxu0 %v5255_v34 }
 0x1e1   : > { %v5790_v59 = vpop.f32.mrf.mxu3 }
 0x1e2   : > { %7455 = vst [vmem:[#allocation112_spill] sm:$0xff] %v5790_v59  ;;  %v5792_v42 = vpop.f32.mrf.mxu0  ;;  %1356 = vmatmul.f32.gmra.mxu1 %v5282_v0  ;;  %v1446_v59 = vld [vmem:[#allocation6 + $0x428] sm:$0xff] }
 0x1e5   : > { %1237 = vmatmul.f32.gmra.mxu0 %v5285_v2 }
 0x1e9   : > { %v1173_v21 = vpop.f32.mrf.mxu3 }
 0x1ea   : > { %v5796_v25 = vpop.f32.mrf.mxu0  ;;  %1359 = vmatmul.f32.gmra.mxu1 %v5315_v18  ;;  %v1419_v21 = vld [vmem:[#allocation6 + $0x350] sm:$0xff] }
 0x1eb   : > { %1462 = vmatpush.msrb.mxu2 %v1419_v21  ;;  %v1447_v21 = vld [vmem:[#allocation6 + $0x430] sm:$0xff] }
 0x1ec   : > { %1680 = vmatpush.msrb.mxu0 %v1447_v21 }
 0x1ed   : > { %1240 = vmatmul.f32.gmra.mxu0 %v5318_v22 }
 0x1ee   : > { %1681 = vmatpush.msrb.mxu0 %v1446_v59  ;;  %v7466_v59 = vld [vmem:[#allocation30_spill] sm:$0xff] }
 0x1f0   : > { %1682 = vmatpush.msrb.mxu0 %v1445_v43  ;;  %v1413_v43 = vld [vmem:[#allocation6 + $0x320] sm:$0xff] }
 0x1f1   : > { %v5802_v46 = vpop.f32.mrf.mxu3 }
 0x1f2   : > { %7457 = vst [vmem:[#allocation114_spill] sm:$0xff] %v5802_v46  ;;  %v1012_v58 = vpop.f32.mrf.mxu0  ;;  %1362 = vmatmul.f32.gmra.mxu1 %v5340_v38  ;;  %v1417_v46 = vld [vmem:[#allocation6 + $0x340] sm:$0xff] }
 0x1f3   : > { %v1418_v58 = vld [vmem:[#allocation6 + $0x348] sm:$0xff] }
 0x1f4   : > { %1463 = vmatpush.msrb.mxu2 %v1418_v58 }
 0x1f5   : > { %1243 = vmatmul.f32.gmra.mxu0 %v5343_v41 }
 0x1f6   : > { %1464 = vmatpush.msrb.mxu2 %v1417_v46 }
 0x1f7   : > { %v5813_v9 = vpop.f32.mrf.mxu1 }
 0x1f9   : > { %v5808_v24 = vpop.f32.mrf.mxu3 }
 0x1fa   : > { %7459 = vst [vmem:[#allocation116_spill] sm:$0xff] %v5808_v24  ;;  %v5810_v40 = vpop.f32.mrf.mxu0  ;;  %1365 = vmatmul.f32.gmra.mxu1 %v5359_v62 }
 0x1fb   : > { %7460 = vst [vmem:[#allocation117_spill] sm:$0xff] %v5810_v40  ;;  %v1441_v40 = vld [vmem:[#allocation6 + $0x400] sm:$0xff] }
 0x1fd   : > { %1246 = vmatmul.f32.gmra.mxu0 %v5362_v63 }
 0x1ff   : > { %v5819_v51 = vpop.f32.mrf.mxu1 }
 0x201   : > { %v1182_v53 = vpop.f32.mrf.mxu3 }
 0x202   : > { %v5816_v20 = vpop.f32.mrf.mxu0  ;;  %1368 = vmatmul.f32.gmra.mxu1 %v5373_v15 }
 0x203   : > { %7461 = vst [vmem:[#allocation118_spill] sm:$0xff] %v5816_v20  ;;  %v7485_v20 = vld [vmem:[#allocation20_spill] sm:$0xff] }
 0x205   : > { %1249 = vmatmul.f32.gmra.mxu0 %v5376_v17 }
 0x207   : > { %v1324_v53 = vpop.f32.mrf.mxu1 }
 0x208   : > { %v1429_v53 = vld [vmem:[#allocation6 + $0x3a0] sm:$0xff] }
 0x209   : > { %v5822_v24 = vpop.f32.mrf.mxu3  ;;  %1575 = vmatpush.msra.mxu3 %v1429_v53  ;;  %v7468_v53 = vld [vmem:[#allocation32_spill] sm:$0xff] }
 0x20a   : > { %7462 = vst [vmem:[#allocation119_spill] sm:$0xff] %v5822_v24  ;;  %v1021_v23 = vpop.f32.mrf.mxu0  ;;  %1371 = vmatmul.f32.gmra.mxu1 %v5394_v54  ;;  %v7465_v24 = vld [vmem:[#allocation31_spill] sm:$0xff] }
 0x20b   : > { %v1416_v23 = vld [vmem:[#allocation6 + $0x338] sm:$0xff]  ;;  %1576 = vmatpush.msra.mxu3 %v1428_v27  ;;  %v1427_v27 = vld [vmem:[#allocation6 + $0x390] sm:$0xff] }
 0x20c   : > { %1465 = vmatpush.msrb.mxu2 %v1416_v23  ;;  %v7467_v23 = vld [vmem:[#allocation33_spill] sm:$0xff] }
 0x20d   : > { %1252 = vmatmul.f32.gmra.mxu0 %v5397_v13  ;;  %1577 = vmatpush.msra.mxu3 %v1427_v27  ;;  %v1426_v27 = vld [vmem:[#allocation6 + $0x388] sm:$0xff] }
 0x20e   : > { %1466 = vmatpush.msrb.mxu2 %v1415_v50  ;;  %v1444_v50 = vld [vmem:[#allocation6 + $0x418] sm:$0xff] }
 0x20f   : > { %v5831_v21 = vpop.f32.mrf.mxu1  ;;  %1683 = vmatpush.msrb.mxu0 %v1444_v50  ;;  %v1412_v50 = vld [vmem:[#allocation6 + $0x318] sm:$0xff]  ;;  %1578 = vmatpush.msra.mxu3 %v1426_v27  ;;  %v1425_v27 = vld [vmem:[#allocation6 + $0x380] sm:$0xff] }
 0x211   : > { %v5826_v6 = vpop.f32.mrf.mxu3  ;;  %1684 = vmatpush.msrb.mxu0 %v1443_v52  ;;  %v1442_v52 = vld [vmem:[#allocation6 + $0x408] sm:$0xff]  ;;  %1579 = vmatpush.msra.mxu3 %v1425_v27  ;;  %v7491_v27 = vld [vmem:[#allocation22_spill] sm:$0xff] }
 0x212   : > { %7463 = vst [vmem:[#allocation120_spill] sm:$0xff] %v5826_v6  ;;  %v5828_v58 = vpop.f32.mrf.mxu0  ;;  %1374 = vmatmul.f32.gmra.mxu1 %v5413_v12  ;;  %1580 = vmatmul.f32.vlgmr.msra.gmra.mxu3 %v5219_v4 }
 0x213   : > { %7464 = vst [vmem:[#allocation121_spill] sm:$0xff] %v5828_v58  ;;  %v7477_v58 = vld [vmem:[#allocation46_spill] sm:$0xff]  ;;  %1685 = vmatpush.msrb.mxu0 %v1442_v52  ;;  %v7487_v52 = vld [vmem:[#allocation21_spill] sm:$0xff] }
 0x215   : > { %1255 = vmatmul.f32.gmra.mxu0 %v5416_v48 }
 0x216   : > { %1686 = vmatpush.msrb.mxu0 %v1441_v40  ;;  %v7495_v40 = vld [vmem:[#allocation23_spill] sm:$0xff] }
 0x217   : > { %v5837_v6 = vpop.f32.mrf.mxu1 }
 0x219   : > { %v1191_v37 = vpop.f32.mrf.mxu3 }
 0x21a   : > { %v5834_v46 = vpop.f32.mrf.mxu0  ;;  %1377 = vmatmul.f32.gmra.mxu1 %v7466_v59  ;;  %v1414_v37 = vld [vmem:[#allocation6 + $0x328] sm:$0xff]  ;;  %1583 = vmatmul.f32.gmra.mxu3 %v5240_v19 }
 0x21b   : > { %1467 = vmatpush.msrb.mxu2 %v1414_v37  ;;  %v7474_v37 = vld [vmem:[#allocation36_spill] sm:$0xff] }
 0x21d   : > { %1258 = vmatmul.f32.gmra.mxu0 %v7465_v24  ;;  %1468 = vmatpush.msrb.mxu2 %v1413_v43 }
 0x21f   : > { %v1333_v14 = vpop.f32.mrf.mxu1  ;;  %1469 = vmatpush.msrb.mxu2 %v1412_v50  ;;  %v1410_v50 = vld [vmem:[#allocation6 + $0x308] sm:$0xff] }
 0x220   : > { %v7472_v14 = vld [vmem:[#allocation39_spill] sm:$0xff] }
 0x221   : > { %1470 = vmatpush.msrb.mxu2 %v1411_v3 }
 0x222   : > { %v5840_v16 = vpop.f32.mrf.mxu0  ;;  %1380 = vmatmul.f32.gmra.mxu1 %v7468_v53  ;;  %1586 = vmatmul.f32.gmra.mxu3 %v5255_v34 }
 0x223   : > { %1471 = vmatpush.msrb.mxu2 %v1410_v50 }
 0x225   : > { %1261 = vmatmul.f32.gmra.mxu0 %v7467_v23  ;;  %1472 = vmatpush.msrb.mxu2 %v1409_v49  ;;  %v4639_v49 = vld [vmem:[%s5128_s24 + $0x38] sm:$0xff] }
 0x227   : > { %v5845_v10 = vpop.f32.mrf.mxu1 }
 0x228   : > { %7470 = vst [vmem:[#allocation31_spill] sm:$0xff] %v5845_v10 }
 0x22a   : > { %v1217_v7 = vpop.f32.mrf.mxu0  ;;  %1383 = vmatmul.f32.gmra.mxu1 %v7471_v8  ;;  %1589 = vmatmul.f32.gmra.mxu3 %v5285_v2 }
 0x22d   : > { %1264 = vmatmul.f32.gmra.mxu0 %v7469_v33 }
 0x22f   : > { %v5851_v26 = vpop.f32.mrf.mxu1 }
 0x230   : > { %7473 = vst [vmem:[#allocation30_spill] sm:$0xff] %v5851_v26  ;;  %v7479_v26 = vld [vmem:[#allocation45_spill] sm:$0xff] }
 0x232   : > { %v5848_v57 = vpop.f32.mrf.mxu0  ;;  %1386 = vmatmul.f32.gmra.mxu1 %v7474_v37  ;;  %1592 = vmatmul.f32.gmra.mxu3 %v5318_v22 }
 0x235   : > { %1267 = vmatmul.f32.gmra.mxu0 %v7472_v14 }
 0x237   : > { %v1342_v32 = vpop.f32.mrf.mxu1 }
 0x238   : > { %v7481_v32 = vld [vmem:[#allocation51_spill] sm:$0xff] }
 0x23a   : > { %v5854_v7 = vpop.f32.mrf.mxu0  ;;  %1389 = vmatmul.f32.gmra.mxu1 %v7476_v35  ;;  %1595 = vmatmul.f32.gmra.mxu3 %v5343_v41 }
 0x23d   : > { %1270 = vmatmul.f32.gmra.mxu0 %v7475_v31 }
 0x23f   : > { %v5859_v55 = vpop.f32.mrf.mxu1 }
 0x240   : > { %7478 = vst [vmem:[#allocation33_spill] sm:$0xff] %v5859_v55 }
 0x242   : > { %v1226_v43 = vpop.f32.mrf.mxu0  ;;  %1392 = vmatmul.f32.gmra.mxu1 %v7479_v26  ;;  %1598 = vmatmul.f32.gmra.mxu3 %v5362_v63 }
 0x243   : > { %v7483_v43 = vld [vmem:[#allocation48_spill] sm:$0xff] }
 0x245   : > { %1273 = vmatmul.f32.gmra.mxu0 %v7477_v58 }
 0x247   : > { %v5865_v10 = vpop.f32.mrf.mxu1 }
 0x248   : > { %7482 = vst [vmem:[#allocation35_spill] sm:$0xff] %v5865_v10 }
 0x24a   : > { %v5862_v5 = vpop.f32.mrf.mxu0  ;;  %1395 = vmatmul.f32.gmra.mxu1 %v7483_v43  ;;  %1601 = vmatmul.f32.gmra.mxu3 %v5376_v17 }
 0x24b   : > { %7480 = vst [vmem:[#allocation32_spill] sm:$0xff] %v5862_v5  ;;  %v7486_v5 = vld [vmem:[#allocation52_spill] sm:$0xff] }
 0x24d   : > { %1276 = vmatmul.f32.gmra.mxu0 %v7481_v32 }
 0x24f   : > { %v1351_v3 = vpop.f32.mrf.mxu1 }
 0x250   : > { %v7489_v3 = vld [vmem:[#allocation56_spill] sm:$0xff] }
 0x252   : > { %v5868_v55 = vpop.f32.mrf.mxu0  ;;  %1398 = vmatmul.f32.gmra.mxu1 %v7486_v5  ;;  %v7496_v5 = vld [vmem:[#allocation24_spill] sm:$0xff]  ;;  %1604 = vmatmul.f32.gmra.mxu3 %v5397_v13 }
 0x253   : > { %7484 = vst [vmem:[#allocation34_spill] sm:$0xff] %v5868_v55  ;;  %v4638_v55 = vld [vmem:[%s5128_s24 + $0x30] sm:$0xff] }
 0x254   : > { %1473 = vmatmul.f32.vlgmr.msrb.gmra.mxu2 %v4638_v55 }
 0x255   : > { %1279 = vmatmul.f32.gmra.mxu0 %v7485_v20 }
 0x257   : > { %v5874_v50 = vpop.f32.mrf.mxu1 }
 0x258   : > { %7488 = vst [vmem:[#allocation39_spill] sm:$0xff] %v5874_v50  ;;  %v7493_v50 = vld [vmem:[#allocation58_spill] sm:$0xff] }
 0x25a   : > { %v1235_v10 = vpop.f32.mrf.mxu0  ;;  %1401 = vmatmul.f32.gmra.mxu1 %v7489_v3  ;;  %v4640_v3 = vld [vmem:[%s5128_s24 + $0x40] sm:$0xff]  ;;  %1607 = vmatmul.f32.gmra.mxu3 %v5416_v48 }
 0x25c   : > { %1476 = vmatmul.f32.gmra.mxu2 %v4639_v49  ;;  %v4641_v49 = vld [vmem:[%s5128_s24 + $0x48] sm:$0xff] }
 0x25d   : > { %1282 = vmatmul.f32.gmra.mxu0 %v7487_v52 }
 0x25f   : > { %v5882_v10 = vpop.f32.mrf.mxu1 }
 0x260   : > { %7492 = vst [vmem:[#allocation43_spill] sm:$0xff] %v5882_v10 }
 0x262   : > { %v5879_v4 = vpop.f32.mrf.mxu0  ;;  %1404 = vmatmul.f32.gmra.mxu1 %v7493_v50  ;;  %1610 = vmatmul.f32.gmra.mxu3 %v7465_v24 }
 0x263   : > { %7490 = vst [vmem:[#allocation36_spill] sm:$0xff] %v5879_v4 }
 0x264   : > { %1479 = vmatmul.f32.gmra.mxu2 %v4640_v3  ;;  %v4642_v3 = vld [vmem:[%s5128_s24 + $0x50] sm:$0xff] }
 0x265   : > { %1285 = vmatmul.f32.gmra.mxu0 %v7491_v27 }
 0x267   : > { %v1360_v19 = vpop.f32.mrf.mxu1 }
 0x26a   : > { %v5887_v55 = vpop.f32.mrf.mxu0  ;;  %1613 = vmatmul.f32.gmra.mxu3 %v7467_v23 }
 0x26b   : > { %7494 = vst [vmem:[#allocation40_spill] sm:$0xff] %v5887_v55  ;;  %v7499_v55 = vld [vmem:[#allocation25_spill] sm:$0xff] }
 0x26c   : > { %1482 = vmatmul.f32.gmra.mxu2 %v4641_v49  ;;  %v4643_v49 = vld [vmem:[%s5128_s24 + $0x58] sm:$0xff] }
 0x26d   : > { %1288 = vmatmul.f32.gmra.mxu0 %v7495_v40 }
 0x26f   : > { %v5893_v10 = vpop.f32.mrf.mxu1 }
 0x270   : > { %7497 = vst [vmem:[#allocation46_spill] sm:$0xff] %v5893_v10 }
 0x272   : > { %v1244_v4 = vpop.f32.mrf.mxu0  ;;  %1616 = vmatmul.f32.gmra.mxu3 %v7469_v33 }
 0x273   : > { %v7501_v4 = vld [vmem:[#allocation26_spill] sm:$0xff] }
 0x274   : > { %1485 = vmatmul.f32.gmra.mxu2 %v4642_v3  ;;  %v4645_v3 = vld [vmem:[%s5128_s24 + $0x68] sm:$0xff] }
 0x275   : > { %1291 = vmatmul.f32.gmra.mxu0 %v7496_v5 }
 0x277   : > { %v5900_v19 = vpop.f32.mrf.mxu1 }
 0x278   : > { %7500 = vst [vmem:[#allocation51_spill] sm:$0xff] %v5900_v19  ;;  %v4644_v19 = vld [vmem:[%s5128_s24 + $0x60] sm:$0xff] }
 0x27a   : > { %v5897_v34 = vpop.f32.mrf.mxu0  ;;  %1619 = vmatmul.f32.gmra.mxu3 %v7472_v14 }
 0x27b   : > { %7498 = vst [vmem:[#allocation45_spill] sm:$0xff] %v5897_v34 }
 0x27c   : > { %1488 = vmatmul.f32.gmra.mxu2 %v4643_v49  ;;  %v4647_v49 = vld [vmem:[%s5128_s24 + $0x78] sm:$0xff] }
 0x27d   : > { %1294 = vmatmul.f32.gmra.mxu0 %v7499_v55 }
 0x27f   : > { %v1369_v10 = vpop.f32.mrf.mxu1 }
 0x282   : > { %v5904_v2 = vpop.f32.mrf.mxu0  ;;  %1622 = vmatmul.f32.gmra.mxu3 %v7475_v31 }
 0x284   : > { %1491 = vmatmul.f32.gmra.mxu2 %v4644_v19  ;;  %v4646_v19 = vld [vmem:[%s5128_s24 + $0x70] sm:$0xff] }
 0x285   : > { %1297 = vmatmul.f32.gmra.mxu0 %v7501_v4 }
 0x287   : > { %v5910_v34 = vpop.f32.mrf.mxu1 }
 0x28a   : > { %v1253_v22 = vpop.f32.mrf.mxu0  ;;  %1625 = vmatmul.f32.gmra.mxu3 %v7477_v58 }
 0x28b   : > { %v4648_v22 = vld [vmem:[%s5128_s24 + $0x80] sm:$0xff] }
 0x28c   : > { %1494 = vmatmul.f32.gmra.mxu2 %v4645_v3  ;;  %v4649_v3 = vld [vmem:[%s5128_s24 + $0x88] sm:$0xff] }
 0x28d   : > { %1687 = vmatmul.f32.vlgmr.msrb.gmra.mxu0 %v5668_v28 }
 0x28f   : > { %v5917_v10 = vpop.f32.mrf.mxu1 }
 0x292   : > { %v5914_v41 = vpop.f32.mrf.mxu0  ;;  %1628 = vmatmul.f32.gmra.mxu3 %v7481_v32 }
 0x294   : > { %1497 = vmatmul.f32.gmra.mxu2 %v4646_v19  ;;  %v4651_v19 = vld [vmem:[%s5128_s24 + $0x98] sm:$0xff] }
 0x295   : > { %1690 = vmatmul.f32.gmra.mxu0 %v5680_v60 }
 0x297   : > { %v1378_v28 = vpop.f32.mrf.mxu1 }
 0x298   : > { %v4650_v28 = vld [vmem:[%s5128_s24 + $0x90] sm:$0xff] }
 0x29a   : > { %v5921_v63 = vpop.f32.mrf.mxu0  ;;  %1631 = vmatmul.f32.gmra.mxu3 %v7485_v20 }
 0x29c   : > { %1500 = vmatmul.f32.gmra.mxu2 %v4647_v49  ;;  %v4653_v49 = vld [vmem:[%s5128_s24 + $0xa8] sm:$0xff] }
 0x29d   : > { %1693 = vmatmul.f32.gmra.mxu0 %v5689_v11 }
 0x29f   : > { %v5927_v60 = vpop.f32.mrf.mxu1 }
 0x2a2   : > { %v1262_v17 = vpop.f32.mrf.mxu0  ;;  %1634 = vmatmul.f32.gmra.mxu3 %v7487_v52 }
 0x2a3   : > { %v4652_v17 = vld [vmem:[%s5128_s24 + $0xa0] sm:$0xff] }
 0x2a4   : > { %1503 = vmatmul.f32.gmra.mxu2 %v4648_v22  ;;  %v4654_v22 = vld [vmem:[%s5128_s24 + $0xb0] sm:$0xff] }
 0x2a5   : > { %1696 = vmatmul.f32.gmra.mxu0 %v5702_v36 }
 0x2a7   : > { %v5934_v11 = vpop.f32.mrf.mxu1 }
 0x2aa   : > { %v5931_v13 = vpop.f32.mrf.mxu0  ;;  %1637 = vmatmul.f32.gmra.mxu3 %v7491_v27  ;;  %v7502_v27 = vld [vmem:[#allocation37_spill] sm:$0xff] }
 0x2ac   : > { %1506 = vmatmul.f32.gmra.mxu2 %v4649_v3  ;;  %v1581_v3 = vpop.f32.mrf.mxu3 }
 0x2ad   : > { %1699 = vmatmul.f32.gmra.mxu0 %v5718_v61 }
 0x2af   : > { %v1387_v36 = vpop.f32.mrf.mxu1 }
 0x2b0   : > { %v4655_v36 = vld [vmem:[%s5128_s24 + $0xb8] sm:$0xff] }
 0x2b2   : > { %v5938_v48 = vpop.f32.mrf.mxu0  ;;  %1640 = vmatmul.f32.gmra.mxu3 %v7495_v40 }
 0x2b4   : > { %1509 = vmatmul.f32.gmra.mxu2 %v4650_v28  ;;  %v1584_v28 = vpop.f32.mrf.mxu3 }
 0x2b5   : > { %1702 = vmatmul.f32.gmra.mxu0 %v5729_v47 }
 0x2b7   : > { %v5944_v61 = vpop.f32.mrf.mxu1 }
 0x2ba   : > { %v1271_v24 = vpop.f32.mrf.mxu0  ;;  %1643 = vmatmul.f32.gmra.mxu3 %v7496_v5 }
 0x2bc   : > { %1512 = vmatmul.f32.gmra.mxu2 %v4651_v19 }
 0x2bd   : > { %1705 = vmatmul.f32.gmra.mxu0 %v5742_v30 }
 0x2bf   : > { %v5951_v47 = vpop.f32.mrf.mxu1 }
 0x2c2   : > { %v5948_v23 = vpop.f32.mrf.mxu0  ;;  %1646 = vmatmul.f32.gmra.mxu3 %v7499_v55  ;;  %v4660_v55 = vld [vmem:[%s5128_s24 + $0xe0] sm:$0xff] }
 0x2c4   : > { %1515 = vmatmul.f32.gmra.mxu2 %v4652_v17 }
 0x2c5   : > { %1708 = vmatmul.f32.gmra.mxu0 %v5282_v0 }
 0x2c7   : > { %v1396_v30 = vpop.f32.mrf.mxu1 }
 0x2c8   : > { %v1587_v30 = vpop.f32.mrf.mxu3 }
 0x2ca   : > { %v5955_v33 = vpop.f32.mrf.mxu0  ;;  %1649 = vmatmul.f32.gmra.mxu3 %v7501_v4 }
 0x2cc   : > { %1518 = vmatmul.f32.gmra.mxu2 %v4653_v49 }
 0x2cd   : > { %1711 = vmatmul.f32.gmra.mxu0 %v5315_v18 }
 0x2cf   : > { %v5961_v0 = vpop.f32.mrf.mxu1 }
 0x2d2   : > { %v1280_v14 = vpop.f32.mrf.mxu0 }
 0x2d3   : > { %v7503_v14 = vld [vmem:[#allocation38_spill] sm:$0xff] }
 0x2d4   : > { %1521 = vmatmul.f32.gmra.mxu2 %v4654_v22  ;;  %v891_v49 = vadd.f32 %v7503_v14, %v7502_v27  ;;  %v6013_v14 = vld [vmem:[%s7219_s2] ss:$0 sm:$0xff] }
 0x2d5   : > { %1714 = vmatmul.f32.gmra.mxu0 %v5340_v38 }
 0x2d7   : > { %v5968_v18 = vpop.f32.mrf.mxu1  ;;  %v1474_v32 = vpop.f32.mrf.mxu2 }
 0x2d8   : > { %v1582_v5 = vadd.f32 %v1581_v3, %v1474_v32 }
 0x2da   : > { %v5965_v31 = vpop.f32.mrf.mxu0 }
 0x2dc   : > { %1524 = vmatmul.f32.gmra.mxu2 %v4655_v36 }
 0x2dd   : > { %1717 = vmatmul.f32.gmra.mxu0 %v5359_v62  ;;  %v4656_v62 = vld [vmem:[%s5128_s24 + $0xc0] sm:$0xff] }
 0x2df   : > { %v1405_v38 = vpop.f32.mrf.mxu1  ;;  %v1477_v20 = vpop.f32.mrf.mxu2 }
 0x2e0   : > { %v5995_v38 = vpop.f32.mrf.mxu3 }
 0x2e2   : > { %v5972_v58 = vpop.f32.mrf.mxu0 }
 0x2e4   : > { %1527 = vmatmul.f32.gmra.mxu2 %v4656_v62  ;;  %v7505_v62 = vld [vmem:[#allocation42_spill] sm:$0xff] }
 0x2e5   : > { %1720 = vmatmul.f32.gmra.mxu0 %v5373_v15  ;;  %v4657_v15 = vld [vmem:[%s5128_s24 + $0xc8] sm:$0xff] }
 0x2e7   : > { %v1480_v52 = vpop.f32.mrf.mxu2 }
 0x2ea   : > { %v1289_v24 = vpop.f32.mrf.mxu0 }
 0x2eb   : > { %v4659_v24 = vld [vmem:[%s5128_s24 + $0xd8] sm:$0xff] }
 0x2ec   : > { %1530 = vmatmul.f32.gmra.mxu2 %v4657_v15 }
 0x2ed   : > { %1723 = vmatmul.f32.gmra.mxu0 %v5394_v54  ;;  %v4658_v54 = vld [vmem:[%s5128_s24 + $0xd0] sm:$0xff] }
 0x2ef   : > { %v5993_v22 = vpop.f32.mrf.mxu2 }
 0x2f2   : > { %v5980_v19 = vpop.f32.mrf.mxu0 }
 0x2f4   : > { %1533 = vmatmul.f32.gmra.mxu2 %v4658_v54  ;;  %v6007_v54 = vpop.f32.mrf.mxu3 }
 0x2f5   : > { %1726 = vmatmul.f32.gmra.mxu0 %v5413_v12  ;;  %v998_v12 = vadd.f32 %v5778_v45, %v891_v49  ;;  %v1585_v49 = vadd.f32 %v1584_v28, %v1477_v20  ;;  %v7506_v20 = vld [vmem:[#allocation49_spill] sm:$0xff]  ;;  %v7507_v28 = vld [vmem:[#allocation50_spill] sm:$0xff] }
 0x2f6   : > { %v900_v4 = vadd.f32 %v7507_v28, %v7506_v20  ;;  %v4663_v28 = vld [vmem:[%s5128_s24 + $0xf8] sm:$0xff] }
 0x2f7   : > { %v1105_v36 = vadd.f32 %v5607_v44, %v998_v12  ;;  %v6005_v30 = vpop.f32.mrf.mxu2 }
 0x2f9   : > { %v1212_v52 = vadd.f32 %v5834_v46, %v1105_v36 }
 0x2fa   : > { %v5985_v17 = vpop.f32.mrf.mxu0 }
 0x2fc   : > { %1536 = vmatmul.f32.gmra.mxu2 %v4659_v24 }
 0x2fd   : > { %1729 = vmatmul.f32.gmra.mxu0 %v7466_v59  ;;  %v7504_v59 = vld [vmem:[#allocation41_spill] sm:$0xff] }
 0x2fe   : > { %v894_v15 = vadd.f32 %v7505_v62, %v7504_v59 }
 0x2ff   : > { %v1489_v12 = vpop.f32.mrf.mxu2 }
 0x300   : > { %v1001_v45 = vadd.f32 %v5782_v56, %v894_v15  ;;  %v6019_v56 = vld [vmem:[%s7220_s3] ss:$0 sm:$0xff]  ;;  %v7510_v12 = vld [vmem:[#allocation53_spill] sm:$0xff] }
 0x302   : > { %v1298_v40 = vpop.f32.mrf.mxu0  ;;  %v1108_v46 = vadd.f32 %v5613_v39, %v1001_v45 }
 0x303   : > { %v1596_v40 = vpop.f32.mrf.mxu3 }
 0x304   : > { %1539 = vmatmul.f32.gmra.mxu2 %v4660_v55  ;;  %v7511_v40 = vld [vmem:[#allocation54_spill] sm:$0xff] }
 0x305   : > { %1732 = vmatmul.f32.gmra.mxu0 %v7468_v53  ;;  %v1319_v53 = vadd.f32 %v5813_v9, %v1212_v52  ;;  %v1215_v9 = vadd.f32 %v5840_v16, %v1108_v46  ;;  %v4661_v16 = vld [vmem:[%s5128_s24 + $0xe8] sm:$0xff]  ;;  %v7508_v52 = vld [vmem:[#allocation27_spill] sm:$0xff] }
 0x306   : > { %1652 = vmatmul.f32.gmra.mxu3 %v7508_v52  ;;  %v7512_v52 = vld [vmem:[#allocation29_spill] sm:$0xff] }
 0x307   : > { %v1322_v24 = vadd.f32 %v5819_v51, %v1215_v9 }
 0x30a   : > { %v1688_v44 = vpop.f32.mrf.mxu0 }
 0x30b   : > { %v1689_v27 = vadd.f32 %v1688_v44, %v1582_v5  ;;  %v1007_v5 = vadd.f32 %v5792_v42, %v900_v4  ;;  %v4954_v44 = vmov 0.0   ;;  %v6044_v46 = vpop.f32.mrf.mxu3  ;;  %v4662_v42 = vld [vmem:[%s5128_s24 + $0xf0] sm:$0xff] }
 0x30c   : > { %1542 = vmatmul.f32.gmra.mxu2 %v4661_v16  ;;  %2504 = vst [vmem:[#allocation2 + $0xd8] sm:$0xff] %v4954_v44 }
 0x30d   : > { %v1778_v32 = vadd.f32 %v1689_v27, %v1319_v53  ;;  %1735 = vmatmul.f32.gmra.mxu0 %v7471_v8  ;;  %v6041_v53 = vpop.f32.mrf.mxu2  ;;  %2505 = vst [vmem:[#allocation2 + $0x68] sm:$0xff] %v4954_v44  ;;  %v1114_v55 = vadd.f32 %v5631_v1, %v1007_v5 }
 0x30e   : > { %2506 = vst [vmem:[#allocation2 + $0x80] sm:$0xff] %v4954_v44 }
 0x30f   : > { %v1811_v3 = vmul.f32 %v6013_v14, %v1778_v32  ;;  %2507 = vst [vmem:[#allocation2 + $0xb8] sm:$0xff] %v4954_v44  ;;  %v1221_v9 = vadd.f32 %v5848_v57, %v1114_v55 }
 0x310   : > { %2508 = vst [vmem:[#allocation2 + $0x70] sm:$0xff] %v4954_v44 }
 0x311   : > { %v6027_v39 = vadd.f32 %v6019_v56, %v1811_v3  ;;  %v1591_v3 = vadd.f32 %v5995_v38, %v5993_v22  ;;  %2509 = vst [vmem:[#allocation2 + $0x78] sm:$0xff] %v4954_v44  ;;  %v1328_v57 = vadd.f32 %v5831_v21, %v1221_v9  ;;  %v1594_v21 = vadd.f32 %v6007_v54, %v6005_v30 }
 0x312   : > { %v1691_v36 = vpop.f32.mrf.mxu0  ;;  %2510 = vst [vmem:[#allocation2 + $0x38] sm:$0xff] %v4954_v44 }
 0x313   : > { %v4317_v8 = vmul.f32 -1.442695, %v6027_v39  ;;  %v1692_v59 = vadd.f32 %v1691_v36, %v1585_v49  ;;  %v7509_v49 = vld [vmem:[#allocation28_spill] sm:$0xff]  ;;  %v903_v36 = vadd.f32 %v7511_v40, %v7510_v12  ;;  %2511 = vst [vmem:[#allocation2 + $0xa0] sm:$0xff] %v4954_v44  ;;  %v6059_v22 = vpop.f32.mrf.mxu3 }
 0x314   : > { %1545 = vmatmul.f32.gmra.mxu2 %v4662_v42  ;;  %1655 = vmatmul.f32.gmra.mxu3 %v7509_v49  ;;  %2512 = vst [vmem:[#allocation2 + $0x98] sm:$0xff] %v4954_v44  ;;  %v4664_v40 = vld [vmem:[%s5128_s24 + $0x100] sm:$0xff] }
 0x315   : > { %4558 = vpow2.f32 %v4317_v8  ;;  %v1779_v62 = vadd.f32 %v1692_v59, %v1322_v24  ;;  %1738 = vmatmul.f32.gmra.mxu0 %v7474_v37  ;;  %v1010_v1 = vadd.f32 %v5796_v25, %v903_v36  ;;  %v6056_v24 = vpop.f32.mrf.mxu2  ;;  %2513 = vst [vmem:[#allocation2 + $0x20] sm:$0xff] %v4954_v44 }
 0x317   : > { %v1812_v15 = vmul.f32 %v6013_v14, %v1779_v62  ;;  %v1117_v25 = vadd.f32 %v5641_v29, %v1010_v1 }
 0x319   : > { %v6039_v51 = vadd.f32 %v6019_v56, %v1812_v15  ;;  %v1224_v5 = vadd.f32 %v5854_v7, %v1117_v25 }
 0x31a   : > { %v1694_v45 = vpop.f32.mrf.mxu0 }
 0x31b   : > { %v4559_v37 = vpop.eup %4558  ;;  %v4318_v27 = vmul.f32 -1.442695, %v6039_v51  ;;  %v1605_v30 = vpop.f32.mrf.mxu3 }
 0x31c   : > { %v1964_v32 = vadd.f32 1.0, %v4559_v37  ;;  %1548 = vmatmul.f32.gmra.mxu2 %v4663_v28  ;;  %1658 = vmatmul.f32.gmra.mxu3 %v7512_v52 }
 0x31d   : > { %4560 = vpow2.f32 %v4318_v27  ;;  %1741 = vmatmul.f32.gmra.mxu0 %v7476_v35  ;;  %v1498_v29 = vpop.f32.mrf.mxu2 }
 0x31e   : > { %4562 = vrcp.f32 %v1964_v32  ;;  %v2005_v45 = vand.u32 2147483648, %v1964_v32  ;;  %v2003_v37 = vand.u32 2147483647, %v1964_v32  ;;  %vm1999_vm3 = vweird.f32 %v1964_v32 }
 0x320   : > { %v2006_v7 = vor.u32 1.1754944e-38, %v2005_v45  ;;  %vm2004_vm5 = vcmp.eq.f32.partialorder %v2003_v37, 8.507059e+37  ;;  %v7516_v37 = vld [vmem:[#allocation87_spill] sm:$0xff] }
 0x322   : > { %v1697_v35 = vpop.f32.mrf.mxu0 }
 0x323   : > { %v4561_v8 = vpop.eup %4560  ;;  %v1698_v59 = vadd.f32 %v1697_v35, %v1591_v3  ;;  %v1331_v3 = vadd.f32 %v5837_v6, %v1224_v5  ;;  %v7514_v35 = vld [vmem:[#allocation60_spill] sm:$0xff] }
 0x324   : > { %v4563_v38 = vpop.eup %4562  ;;  %v1965_v62 = vadd.f32 1.0, %v4561_v8  ;;  %1551 = vmatmul.f32.gmra.mxu2 %v4664_v40  ;;  %v7521_v40 = vld [vmem:[#allocation118_spill] sm:$0xff] }
 0x325   : > { %v1995_v16 = vmul.f32 %v4563_v38, %v1964_v32  ;;  %v1781_v20 = vadd.f32 %v1698_v59, %v1328_v57  ;;  %1744 = vmatmul.f32.gmra.mxu0 %v7479_v26  ;;  %vm2000_vm2 = vweird.f32 %v4563_v38  ;;  %v7513_v32 = vld [vmem:[#allocation59_spill] sm:$0xff] }
 0x326   : > { %4564 = vrcp.f32 %v1965_v62  ;;  %vm2001_vm4 = vmor %vm1999_vm3, %vm2000_vm2  ;;  %v909_v8 = vadd.f32 %v7514_v35, %v7513_v32  ;;  %v2018_v25 = vand.u32 2147483647, %v1965_v62  ;;  %vm2014_vm7 = vweird.f32 %v1965_v62  ;;  %v7522_v32 = vld [vmem:[#allocation31_spill] sm:$0xff] }
 0x327   : > { %v1996_v4 = vsub.f32 1.0, %v1995_v16  ;;  %v1814_v15 = vmul.f32 %v6013_v14, %v1781_v20  ;;  %v2020_v16 = vand.u32 2147483648, %v1965_v62  ;;  %v7515_v20 = vld [vmem:[#allocation117_spill] sm:$0xff] }
 0x328   : > { %vm2019_vm9 = vcmp.eq.f32.partialorder %v2018_v25, 8.507059e+37 }
 0x329   : > { %v1997_v44 = vmul.f32 %v4563_v38, %v1996_v4  ;;  %v6070_v26 = vadd.f32 %v6019_v56, %v1814_v15  ;;  %v6084_v15 = vpop.f32.mrf.mxu2  ;;  %v2021_v5 = vor.u32 1.1754944e-38, %v2020_v16  ;;  %v6107_v16 = vld [vmem:[%s5128_s24 + $0x110] sm:$0xff] }
 0x32a   : > { %v1700_v27 = vpop.f32.mrf.mxu0 }
 0x32b   : > { %v1998_v55 = vadd.f32 %v4563_v38, %v1997_v44  ;;  %v4320_v42 = vmul.f32 -1.442695, %v6070_v26  ;;  %v1701_v9 = vadd.f32 %v1700_v27, %v1594_v21 }
 0x32c   : > { %v4565_v54 = vpop.eup %4564 }
 0x32d   : > { %v2002_v49 = vsel %vm2001_vm4, %v4563_v38, %v1998_v55  ;;  %v2010_v12 = vmul.f32 %v4565_v54, %v1965_v62  ;;  %4566 = vpow2.f32 %v4320_v42  ;;  %1747 = vmatmul.f32.gmra.mxu0 %v7483_v43  ;;  %v1782_v1 = vadd.f32 %v1701_v9, %v1331_v3  ;;  %v7517_v55 = vld [vmem:[#allocation52_spill] sm:$0xff]  ;;  %v7518_v42 = vld [vmem:[#allocation63_spill] sm:$0xff] }
 0x32e   : > { %v2007_v36 = vsel %vm2004_vm5, %v2006_v7, %v2002_v49  ;;  %v1016_v38 = vadd.f32 %v7515_v20, %v909_v8  ;;  %vm2015_vm6 = vweird.f32 %v4565_v54  ;;  %v7519_v9 = vld [vmem:[#allocation64_spill] sm:$0xff] }
 0x32f   : > { %v2444_v57 = vmul.f32 %v2007_v36, %v6027_v39  ;;  %v2011_v59 = vsub.f32 1.0, %v2010_v12  ;;  %v1815_v6 = vmul.f32 %v6013_v14, %v1782_v1  ;;  %v6086_v39 = vpop.f32.mrf.mxu3  ;;  %vm2016_vm8 = vmor %vm2014_vm7, %vm2015_vm6  ;;  %v912_v30 = vadd.f32 %v7519_v9, %v7518_v42  ;;  %v7520_v62 = vld [vmem:[#allocation32_spill] sm:$0xff] }
 0x330   : > { %v1123_v27 = vadd.f32 %v7516_v37, %v1016_v38  ;;  %v1600_v12 = vadd.f32 %v6044_v46, %v6041_v53  ;;  %v482_v46 = vrot.slane %v6107_v16, 1 }
 0x331   : > { %2474 = vst [vmem:[#allocation2 + $0xb0] sm:$0xff] %v2444_v57  ;;  %v2012_v28 = vmul.f32 %v4565_v54, %v2011_v59  ;;  %v6082_v43 = vadd.f32 %v6019_v56, %v1815_v6  ;;  %v6098_v1 = vpop.f32.mrf.mxu2  ;;  %v6104_v59 = vld [vmem:[%s5128_s24 + $0x108] sm:$0xff] }
 0x332   : > { %v1703_v4 = vpop.f32.mrf.mxu0  ;;  %v1230_v7 = vadd.f32 %v7520_v62, %v1123_v27  ;;  %v7523_v6 = vld [vmem:[#allocation89_spill] sm:$0xff]  ;;  %v481_v53 = vrot.slane %v6104_v59, 1  ;;  %1554 = vmatmul.f32.gmra.mxu2 %v6104_v59 }
 0x333   : > { %v4567_v21 = vpop.eup %4566  ;;  %v2013_v52 = vadd.f32 %v4565_v54, %v2012_v28  ;;  %v4321_v44 = vmul.f32 -1.442695, %v6082_v43  ;;  %v7524_v4 = vld [vmem:[#allocation56_spill] sm:$0xff] }
 0x334   : > { %v1967_v45 = vadd.f32 1.0, %v4567_v21  ;;  %v1337_v35 = vadd.f32 %v7522_v32, %v1230_v7  ;;  %v7525_v21 = vld [vmem:[#allocation34_spill] sm:$0xff] }
 0x335   : > { %v2017_v29 = vsel %vm2016_vm8, %v4565_v54, %v2013_v52  ;;  %1750 = vmatmul.f32.gmra.mxu0 %v7517_v55  ;;  %v1019_v54 = vadd.f32 %v7521_v40, %v912_v30 }
 0x336   : > { %v2022_v3 = vsel %vm2019_vm9, %v2021_v5, %v2017_v29  ;;  %4568 = vrcp.f32 %v1967_v45  ;;  %v1603_v29 = vadd.f32 %v6059_v22, %v6056_v24  ;;  %v2050_v55 = vand.u32 2147483648, %v1967_v45 }
 0x337   : > { %v2445_v49 = vmul.f32 %v2022_v3, %v6039_v51  ;;  %4570 = vpow2.f32 %v4321_v44  ;;  %v6101_v57 = vpop.f32.mrf.mxu3  ;;  %v1126_v20 = vadd.f32 %v7523_v6, %v1019_v54  ;;  %v483_v44 = vsel %vm425_vm0, %v481_v53, %v482_v46  ;;  %v7526_v3 = vld [vmem:[#allocation30_spill] sm:$0xff]  ;;  %v6130_v54 = vld [vmem:[%s5128_s24 + $0x118] sm:$0xff] }
 0x338   : > { %1661 = vmatmul.f32.gmra.mxu3 %v483_v44  ;;  %v2048_v9 = vand.u32 2147483647, %v1967_v45  ;;  %vm2044_vm11 = vweird.f32 %v1967_v45  ;;  %v484_v32 = vrot.slane %v6130_v54, 1 }
 0x339   : > { %2475 = vst [vmem:[#allocation2] sm:$0xff] %v2445_v49  ;;  %v1233_v52 = vadd.f32 %v7525_v21, %v1126_v20  ;;  %v1507_v49 = vpop.f32.mrf.mxu2 }
 0x33a   : > { %v1706_v36 = vpop.f32.mrf.mxu0  ;;  %1557 = vmatmul.f32.gmra.mxu2 %v6107_v16  ;;  %vm2049_vm13 = vcmp.eq.f32.partialorder %v2048_v9, 8.507059e+37  ;;  %v485_v20 = vsel %vm425_vm0, %v482_v46, %v484_v32 }
 0x33b   : > { %v1707_v8 = vadd.f32 %v1706_v36, %v1600_v12  ;;  %v1340_v62 = vadd.f32 %v7526_v3, %v1233_v52  ;;  %v2051_v36 = vor.u32 1.1754944e-38, %v2050_v55  ;;  %v7529_v52 = vld [vmem:[#allocation121_spill] sm:$0xff] }
 0x33c   : > { %v4569_v51 = vpop.eup %4568 }
 0x33d   : > { %v4571_v38 = vpop.eup %4570  ;;  %v2040_v28 = vmul.f32 %v4569_v51, %v1967_v45  ;;  %v1784_v25 = vadd.f32 %v1707_v8, %v1337_v35  ;;  %1753 = vmatmul.f32.gmra.mxu0 %v7524_v4  ;;  %vm2045_vm10 = vweird.f32 %v4569_v51 }
 0x33e   : > { %v6115_v5 = vadd.f32 1.0, %v4571_v38  ;;  %vm2046_vm12 = vmor %vm2044_vm11, %vm2045_vm10  ;;  %v7527_v38 = vld [vmem:[#allocation70_spill] sm:$0xff] }
 0x33f   : > { %v2041_v37 = vsub.f32 1.0, %v2040_v28  ;;  %v1817_v27 = vmul.f32 %v6013_v14, %v1784_v25  ;;  %v1614_v22 = vpop.f32.mrf.mxu3  ;;  %v7528_v28 = vld [vmem:[#allocation71_spill] sm:$0xff] }
 0x340   : > { %4572 = vrcp.f32 %v6115_v5  ;;  %v918_v25 = vadd.f32 %v7528_v28, %v7527_v38  ;;  %1664 = vmatmul.f32.gmra.mxu3 %v485_v20  ;;  %vm2059_vm15 = vweird.f32 %v6115_v5  ;;  %v7532_v22 = vld [vmem:[#allocation36_spill] sm:$0xff]  ;;  %v7534_v20 = vld [vmem:[#allocation74_spill] sm:$0xff] }
 0x341   : > { %v2042_v42 = vmul.f32 %v4569_v51, %v2041_v37  ;;  %v6125_v30 = vadd.f32 %v6019_v56, %v1817_v27  ;;  %v2065_v27 = vand.u32 2147483648, %v6115_v5 }
 0x342   : > { %v1709_v7 = vpop.f32.mrf.mxu0  ;;  %v1025_v44 = vadd.f32 %v7529_v52, %v918_v25  ;;  %1560 = vmatmul.f32.gmra.mxu2 %v6130_v54 }
 0x343   : > { %v2043_v12 = vadd.f32 %v4569_v51, %v2042_v42  ;;  %v4323_v40 = vmul.f32 -1.442695, %v6125_v30  ;;  %v1710_v24 = vadd.f32 %v1709_v7, %v1603_v29  ;;  %v6148_v29 = vpop.f32.mrf.mxu2  ;;  %v7530_v7 = vld [vmem:[#allocation93_spill] sm:$0xff] }
 0x344   : > { %v1132_v49 = vadd.f32 %v7530_v7, %v1025_v44 }
 0x345   : > { %v2047_v35 = vsel %vm2046_vm12, %v4569_v51, %v2043_v12  ;;  %4574 = vpow2.f32 %v4323_v40  ;;  %v1785_v8 = vadd.f32 %v1710_v24, %v1340_v62  ;;  %1756 = vmatmul.f32.gmra.mxu0 %v7493_v50  ;;  %v7531_v40 = vld [vmem:[#allocation62_spill] sm:$0xff]  ;;  %v2066_v24 = vor.u32 1.1754944e-38, %v2065_v27  ;;  %v7536_v27 = vld [vmem:[#allocation61_spill] sm:$0xff] }
 0x346   : > { %v4573_v6 = vpop.eup %4572  ;;  %v2052_v45 = vsel %vm2049_vm13, %v2051_v36, %v2047_v35  ;;  %v1239_v36 = vadd.f32 %v7532_v22, %v1132_v49  ;;  %v1612_v49 = vadd.f32 %v6101_v57, %v6098_v1 }
 0x347   : > { %v2447_v4 = vmul.f32 %v2052_v45, %v6070_v26  ;;  %v2055_v21 = vmul.f32 %v4573_v6, %v6115_v5  ;;  %v1818_v51 = vmul.f32 %v6013_v14, %v1785_v8  ;;  %vm2060_vm14 = vweird.f32 %v4573_v6  ;;  %v6152_v3 = vpop.f32.mrf.mxu3  ;;  %v7533_v45 = vld [vmem:[#allocation73_spill] sm:$0xff] }
 0x348   : > { %v2063_v26 = vand.u32 2147483647, %v6115_v5  ;;  %vm2061_vm2 = vmor %vm2059_vm15, %vm2060_vm14  ;;  %v1609_v8 = vadd.f32 %v6086_v39, %v6084_v15  ;;  %v921_v38 = vadd.f32 %v7534_v20, %v7533_v45 }
 0x349   : > { %2477 = vst [vmem:[#allocation2 + $0x18] sm:$0xff] %v2447_v4  ;;  %v2056_v50 = vsub.f32 1.0, %v2055_v21  ;;  %v6145_v37 = vadd.f32 %v6019_v56, %v1818_v51  ;;  %v7535_v51 = vld [vmem:[#allocation33_spill] sm:$0xff] }
 0x34a   : > { %v1712_v46 = vpop.f32.mrf.mxu0  ;;  %vm2064_vm3 = vcmp.eq.f32.partialorder %v2063_v26, 8.507059e+37  ;;  %v1346_v52 = vadd.f32 %v7535_v51, %v1239_v36  ;;  %v7538_v26 = vld [vmem:[#allocation95_spill] sm:$0xff] }
 0x34b   : > { %v4575_v55 = vpop.eup %4574  ;;  %v2057_v42 = vmul.f32 %v4573_v6, %v2056_v50  ;;  %v4324_v9 = vmul.f32 -1.442695, %v6145_v37  ;;  %v6164_v4 = vpop.f32.mrf.mxu2  ;;  %v1028_v46 = vadd.f32 %v7536_v27, %v921_v38 }
 0x34c   : > { %v1970_v62 = vadd.f32 1.0, %v4575_v55 }
 0x34d   : > { %v2058_v12 = vadd.f32 %v4573_v6, %v2057_v42  ;;  %4576 = vpow2.f32 %v4324_v9  ;;  %1759 = vmatmul.f32.gmra.mxu0 %v7531_v40  ;;  %v7537_v42 = vld [vmem:[#allocation66_spill] sm:$0xff] }
 0x34e   : > { %4578 = vrcp.f32 %v1970_v62  ;;  %v2093_v36 = vand.u32 2147483647, %v1970_v62  ;;  %vm2089_vm5 = vweird.f32 %v1970_v62 }
 0x34f   : > { %v2062_v35 = vsel %vm2061_vm2, %v4573_v6, %v2058_v12  ;;  %v6167_v50 = vpop.f32.mrf.mxu3  ;;  %v7539_v12 = vld [vmem:[#allocation40_spill] sm:$0xff] }
 0x350   : > { %v2067_v28 = vsel %vm2064_vm3, %v2066_v24, %v2062_v35  ;;  %v2095_v24 = vand.u32 2147483648, %v1970_v62  ;;  %vm2094_vm7 = vcmp.eq.f32.partialorder %v2093_v36, 8.507059e+37 }
 0x351   : > { %v2448_v25 = vmul.f32 %v2067_v28, %v6082_v43  ;;  %v1135_v43 = vadd.f32 %v7538_v26, %v1028_v46 }
 0x352   : > { %v1715_v5 = vpop.f32.mrf.mxu0  ;;  %v2096_v57 = vor.u32 1.1754944e-38, %v2095_v24 }
 0x353   : > { %v4577_v21 = vpop.eup %4576  ;;  %2478 = vst [vmem:[#allocation2 + $0x50] sm:$0xff] %v2448_v25  ;;  %v1716_v44 = vadd.f32 %v1715_v5, %v1609_v8  ;;  %v1242_v40 = vadd.f32 %v7539_v12, %v1135_v43  ;;  %v1516_v45 = vpop.f32.mrf.mxu2 }
 0x354   : > { %v4579_v6 = vpop.eup %4578  ;;  %v1971_v15 = vadd.f32 1.0, %v4577_v21  ;;  %v7540_v21 = vld [vmem:[#allocation35_spill] sm:$0xff] }
 0x355   : > { %v2085_v39 = vmul.f32 %v4579_v6, %v1970_v62  ;;  %v1787_v55 = vadd.f32 %v1716_v44, %v1346_v52  ;;  %1762 = vmatmul.f32.gmra.mxu0 %v7537_v42  ;;  %vm2090_vm4 = vweird.f32 %v4579_v6  ;;  %v1349_v1 = vadd.f32 %v7540_v21, %v1242_v40  ;;  %v7541_v44 = vld [vmem:[#allocation69_spill] sm:$0xff]  ;;  %v7545_v21 = vld [vmem:[#allocation99_spill] sm:$0xff] }
 0x356   : > { %4580 = vrcp.f32 %v1971_v15  ;;  %vm2091_vm6 = vmor %vm2089_vm5, %vm2090_vm4  ;;  %v603_v62 = vrot.slane %v6107_v16, 2  ;;  %v7543_v42 = vld [vmem:[#allocation77_spill] sm:$0xff]  ;;  %v2108_v12 = vand.u32 2147483647, %v1971_v15  ;;  %vm2104_vm9 = vweird.f32 %v1971_v15 }
 0x357   : > { %v2086_v9 = vsub.f32 1.0, %v2085_v39  ;;  %v1820_v7 = vmul.f32 %v6013_v14, %v1787_v55  ;;  %v1623_v25 = vpop.f32.mrf.mxu3  ;;  %v602_v39 = vrot.slane %v6104_v59, 2  ;;  %v7542_v55 = vld [vmem:[#allocation76_spill] sm:$0xff] }
 0x358   : > { %v927_v26 = vadd.f32 %v7543_v42, %v7542_v55  ;;  %vm2109_vm11 = vcmp.eq.f32.partialorder %v2108_v12, 8.507059e+37 }
 0x359   : > { %v2087_v22 = vmul.f32 %v4579_v6, %v2086_v9  ;;  %v6177_v35 = vadd.f32 %v6019_v56, %v1820_v7  ;;  %v2110_v7 = vand.u32 2147483648, %v1971_v15  ;;  %v604_v16 = vsel %vm546_vm1, %v602_v39, %v603_v62 }
 0x35a   : > { %v1718_v8 = vpop.f32.mrf.mxu0 }
 0x35b   : > { %v2088_v20 = vadd.f32 %v4579_v6, %v2087_v22  ;;  %v4326_v38 = vmul.f32 -1.442695, %v6177_v35  ;;  %v1719_v28 = vadd.f32 %v1718_v8, %v1612_v49  ;;  %v6194_v22 = vpop.f32.mrf.mxu2 }
 0x35c   : > { %v4581_v5 = vpop.eup %4580 }
 0x35d   : > { %v2092_v51 = vsel %vm2091_vm6, %v4579_v6, %v2088_v20  ;;  %v2100_v52 = vmul.f32 %v4581_v5, %v1971_v15  ;;  %4582 = vpow2.f32 %v4326_v38  ;;  %1765 = vmatmul.f32.gmra.mxu0 %v7541_v44  ;;  %v1788_v46 = vadd.f32 %v1719_v28, %v1349_v1  ;;  %v7548_v15 = vld [vmem:[#allocation45_spill] sm:$0xff] }
 0x35e   : > { %v2097_v27 = vsel %vm2094_vm7, %v2096_v57, %v2092_v51  ;;  %vm2105_vm8 = vweird.f32 %v4581_v5  ;;  %v2111_v38 = vor.u32 1.1754944e-38, %v2110_v7  ;;  %v7546_v51 = vld [vmem:[#allocation79_spill] sm:$0xff] }
 0x35f   : > { %v2450_v43 = vmul.f32 %v2097_v27, %v6125_v30  ;;  %v2101_v9 = vsub.f32 1.0, %v2100_v52  ;;  %v1821_v6 = vmul.f32 %v6013_v14, %v1788_v46  ;;  %v7544_v30 = vld [vmem:[#allocation67_spill] sm:$0xff]  ;;  %v6197_v20 = vpop.f32.mrf.mxu3  ;;  %vm2106_vm10 = vmor %vm2104_vm9, %vm2105_vm8  ;;  %v7547_v52 = vld [vmem:[#allocation80_spill] sm:$0xff]  ;;  %v605_v46 = vrot.slane %v6130_v54, 2 }
 0x360   : > { %v1034_v8 = vadd.f32 %v7544_v30, %v927_v26  ;;  %v930_v44 = vadd.f32 %v7547_v52, %v7546_v51  ;;  %v1618_v26 = vadd.f32 %v6152_v3, %v6148_v29  ;;  %v7551_v30 = vld [vmem:[#allocation101_spill] sm:$0xff] }
 0x361   : > { %2480 = vst [vmem:[#allocation2 + $0x30] sm:$0xff] %v2450_v43  ;;  %v2102_v49 = vmul.f32 %v4581_v5, %v2101_v9  ;;  %v6189_v40 = vadd.f32 %v6019_v56, %v1821_v6  ;;  %v7549_v43 = vld [vmem:[#allocation72_spill] sm:$0xff]  ;;  %v606_v7 = vsel %vm546_vm1, %v603_v62, %v605_v46 }
 0x362   : > { %v1721_v24 = vpop.f32.mrf.mxu0  ;;  %v1141_v1 = vadd.f32 %v7545_v21, %v1034_v8  ;;  %v545_v21 = vsel %vm425_vm0, %v484_v32, %v481_v53 }
 0x363   : > { %v4583_v36 = vpop.eup %4582  ;;  %v2103_v45 = vadd.f32 %v4581_v5, %v2102_v49  ;;  %v4327_v25 = vmul.f32 -1.442695, %v6189_v40  ;;  %v6210_v6 = vpop.f32.mrf.mxu2  ;;  %v7550_v49 = vld [vmem:[#allocation39_spill] sm:$0xff]  ;;  %1667 = vmatmul.f32.gmra.mxu3 %v545_v21 }
 0x364   : > { %v1973_v28 = vadd.f32 1.0, %v4583_v36  ;;  %v1248_v55 = vadd.f32 %v7548_v15, %v1141_v1  ;;  %v1621_v1 = vadd.f32 %v6167_v50, %v6164_v4 }
 0x365   : > { %v2107_v57 = vsel %vm2106_vm10, %v4581_v5, %v2103_v45  ;;  %1768 = vmatmul.f32.gmra.mxu0 %v604_v16  ;;  %v1037_v5 = vadd.f32 %v7549_v43, %v930_v44  ;;  %v7552_v44 = vld [vmem:[#allocation43_spill] sm:$0xff]  ;;  %v666_v43 = vsel %vm546_vm1, %v605_v46, %v602_v39 }
 0x366   : > { %v2112_v27 = vsel %vm2109_vm11, %v2111_v38, %v2107_v57  ;;  %4584 = vrcp.f32 %v1973_v28  ;;  %v1355_v12 = vadd.f32 %v7550_v49, %v1248_v55  ;;  %v2138_v57 = vand.u32 2147483647, %v1973_v28 }
 0x367   : > { %v2451_v42 = vmul.f32 %v2112_v27, %v6145_v37  ;;  %4586 = vpow2.f32 %v4327_v25  ;;  %v6213_v16 = vpop.f32.mrf.mxu3  ;;  %v1144_v37 = vadd.f32 %v7551_v30, %v1037_v5  ;;  %v2140_v51 = vand.u32 2147483648, %v1973_v28 }
 0x368   : > { %vm2134_vm13 = vweird.f32 %v1973_v28  ;;  %vm2139_vm15 = vcmp.eq.f32.partialorder %v2138_v57, 8.507059e+37 }
 0x369   : > { %2481 = vst [vmem:[#allocation2 + $0x48] sm:$0xff] %v2451_v42  ;;  %v1251_v29 = vadd.f32 %v5904_v2, %v1144_v37  ;;  %v2141_v4 = vor.u32 1.1754944e-38, %v2140_v51 }
 0x36a   : > { %v1724_v9 = vpop.f32.mrf.mxu0 }
 0x36b   : > { %v1725_v24 = vadd.f32 %v1724_v9, %v1618_v26  ;;  %v1358_v27 = vadd.f32 %v7552_v44, %v1251_v29  ;;  %v1525_v55 = vpop.f32.mrf.mxu2  ;;  %v7553_v9 = vld [vmem:[#allocation82_spill] sm:$0xff] }
 0x36c   : > { %v4585_v36 = vpop.eup %4584  ;;  %v7557_v55 = vld [vmem:[#allocation85_spill] sm:$0xff] }
 0x36d   : > { %v4587_v8 = vpop.eup %4586  ;;  %v2130_v45 = vmul.f32 %v4585_v36, %v1973_v28  ;;  %v1790_v38 = vadd.f32 %v1725_v24, %v1355_v12  ;;  %1771 = vmatmul.f32.gmra.mxu0 %v606_v7  ;;  %vm2135_vm12 = vweird.f32 %v4585_v36  ;;  %v7554_v7 = vld [vmem:[#allocation83_spill] sm:$0xff] }
 0x36e   : > { %v1974_v3 = vadd.f32 1.0, %v4587_v8  ;;  %vm2136_vm14 = vmor %vm2134_vm13, %vm2135_vm12  ;;  %v936_v49 = vadd.f32 %v7554_v7, %v7553_v9  ;;  %v7555_v8 = vld [vmem:[#allocation75_spill] sm:$0xff]  ;;  %v7560_v7 = vld [vmem:[#allocation78_spill] sm:$0xff] }
 0x36f   : > { %v2131_v25 = vsub.f32 1.0, %v2130_v45  ;;  %v1823_v62 = vmul.f32 %v6013_v14, %v1790_v38  ;;  %v1632_v32 = vpop.f32.mrf.mxu3 }
 0x370   : > { %4588 = vrcp.f32 %v1974_v3  ;;  %v1043_v59 = vadd.f32 %v7555_v8, %v936_v49  ;;  %v2155_v45 = vand.u32 2147483648, %v1974_v3  ;;  %vm2149_vm2 = vweird.f32 %v1974_v3 }
 0x371   : > { %v2132_v52 = vmul.f32 %v4585_v36, %v2131_v25  ;;  %v6226_v2 = vadd.f32 %v6019_v56, %v1823_v62  ;;  %v2153_v25 = vand.u32 2147483647, %v1974_v3 }
 0x372   : > { %v1727_v15 = vpop.f32.mrf.mxu0 }
 0x373   : > { %v2133_v42 = vadd.f32 %v4585_v36, %v2132_v52  ;;  %v4329_v53 = vmul.f32 -1.442695, %v6226_v2  ;;  %v1728_v54 = vadd.f32 %v1727_v15, %v1621_v1  ;;  %v6241_v46 = vpop.f32.mrf.mxu2  ;;  %v7556_v1 = vld [vmem:[#allocation105_spill] sm:$0xff]  ;;  %v2156_v52 = vor.u32 1.1754944e-38, %v2155_v45 }
 0x374   : > { %v1150_v57 = vadd.f32 %v7556_v1, %v1043_v59  ;;  %vm2154_vm4 = vcmp.eq.f32.partialorder %v2153_v25, 8.507059e+37  ;;  %v1627_v15 = vadd.f32 %v6197_v20, %v6194_v22 }
 0x375   : > { %v2137_v50 = vsel %vm2136_vm14, %v4585_v36, %v2133_v42  ;;  %4590 = vpow2.f32 %v4329_v53  ;;  %v1791_v26 = vadd.f32 %v1728_v54, %v1358_v27  ;;  %1774 = vmatmul.f32.gmra.mxu0 %v666_v43  ;;  %v7558_v42 = vld [vmem:[#allocation86_spill] sm:$0xff] }
 0x376   : > { %v4589_v5 = vpop.eup %4588  ;;  %v2142_v12 = vsel %vm2139_vm15, %v2141_v4, %v2137_v50  ;;  %v1257_v44 = vadd.f32 %v5914_v41, %v1150_v57  ;;  %v939_v53 = vadd.f32 %v7558_v42, %v7557_v55  ;;  %v7563_v42 = vld [vmem:[#allocation90_spill] sm:$0xff] }
 0x377   : > { %v2453_v28 = vmul.f32 %v2142_v12, %v6177_v35  ;;  %v2145_v24 = vmul.f32 %v4589_v5, %v1974_v3  ;;  %v1824_v30 = vmul.f32 %v6013_v14, %v1791_v26  ;;  %vm2150_vm1 = vweird.f32 %v4589_v5  ;;  %v6244_v62 = vpop.f32.mrf.mxu3  ;;  %v7559_v26 = vld [vmem:[#allocation46_spill] sm:$0xff] }
 0x378   : > { %vm2151_vm3 = vmor %vm2149_vm2, %vm2150_vm1  ;;  %v1364_v43 = vadd.f32 %v7559_v26, %v1257_v44  ;;  %v1046_v49 = vadd.f32 %v7560_v7, %v939_v53  ;;  %v7562_v44 = vld [vmem:[#allocation51_spill] sm:$0xff]  ;;  %v7564_v53 = vld [vmem:[#allocation113_spill] sm:$0xff] }
 0x379   : > { %2483 = vst [vmem:[#allocation2 + $0x88] sm:$0xff] %v2453_v28  ;;  %v2146_v37 = vsub.f32 1.0, %v2145_v24  ;;  %v6238_v36 = vadd.f32 %v6019_v56, %v1824_v30  ;;  %v7561_v28 = vld [vmem:[#allocation106_spill] sm:$0xff] }
 0x37a   : > { %v1730_v39 = vpop.f32.mrf.mxu0  ;;  %v1153_v24 = vadd.f32 %v7561_v28, %v1046_v49 }
 0x37b   : > { %v4591_v38 = vpop.eup %4590  ;;  %v2147_v29 = vmul.f32 %v4589_v5, %v2146_v37  ;;  %v4330_v35 = vmul.f32 -1.442695, %v6238_v36  ;;  %v6253_v50 = vpop.f32.mrf.mxu2  ;;  %v1630_v37 = vadd.f32 %v6213_v16, %v6210_v6 }
 0x37c   : > { %v1976_v21 = vadd.f32 1.0, %v4591_v38  ;;  %v1260_v8 = vadd.f32 %v5921_v63, %v1153_v24 }
 0x37d   : > { %v2148_v51 = vadd.f32 %v4589_v5, %v2147_v29  ;;  %4592 = vpow2.f32 %v4330_v35 }
 0x37e   : > { %4594 = vrcp.f32 %v1976_v21  ;;  %v2185_v59 = vand.u32 2147483648, %v1976_v21  ;;  %v2183_v39 = vand.u32 2147483647, %v1976_v21  ;;  %vm2179_vm6 = vweird.f32 %v1976_v21 }
 0x37f   : > { %v2152_v27 = vsel %vm2151_vm3, %v4589_v5, %v2148_v51  ;;  %v6256_v41 = vpop.f32.mrf.mxu3  ;;  %v1367_v6 = vadd.f32 %v7562_v44, %v1260_v8 }
 0x380   : > { %v2157_v54 = vsel %vm2154_vm4, %v2156_v52, %v2152_v27  ;;  %v2186_v63 = vor.u32 1.1754944e-38, %v2185_v59  ;;  %vm2184_vm8 = vcmp.eq.f32.partialorder %v2183_v39, 8.507059e+37  ;;  %v7568_v39 = vld [vmem:[#allocation115_spill] sm:$0xff] }
 0x381   : > { %v2454_v32 = vmul.f32 %v2157_v54, %v6189_v40  ;;  %v945_v54 = vadd.f32 %v7564_v53, %v7563_v42 }
 0x382   : > { %v1733_v4 = vpop.f32.mrf.mxu0 }
 0x383   : > { %v4593_v3 = vpop.eup %4592  ;;  %2484 = vst [vmem:[#allocation2 + $0xe8] sm:$0xff] %v2454_v32  ;;  %v1734_v9 = vadd.f32 %v1733_v4, %v1627_v15  ;;  %v1534_v25 = vpop.f32.mrf.mxu2 }
 0x384   : > { %v4595_v5 = vpop.eup %4594  ;;  %v1977_v22 = vadd.f32 1.0, %v4593_v3 }
 0x385   : > { %v2175_v20 = vmul.f32 %v4595_v5, %v1976_v21  ;;  %v1793_v12 = vadd.f32 %v1734_v9, %v1364_v43  ;;  %vm2180_vm5 = vweird.f32 %v4595_v5 }
 0x386   : > { %4596 = vrcp.f32 %v1977_v22  ;;  %vm2181_vm7 = vmor %vm2179_vm6, %vm2180_vm5  ;;  %v2200_v4 = vand.u32 2147483648, %v1977_v22  ;;  %v2198_v43 = vand.u32 2147483647, %v1977_v22  ;;  %vm2194_vm10 = vweird.f32 %v1977_v22 }
 0x387   : > { %v2176_v40 = vsub.f32 1.0, %v2175_v20  ;;  %v1826_v30 = vmul.f32 %v6013_v14, %v1793_v12  ;;  %v1641_v51 = vpop.f32.mrf.mxu3  ;;  %v7565_v20 = vld [vmem:[#allocation81_spill] sm:$0xff] }
 0x388   : > { %v1052_v12 = vadd.f32 %v7565_v20, %v945_v54  ;;  %v2201_v24 = vor.u32 1.1754944e-38, %v2200_v4  ;;  %vm2199_vm12 = vcmp.eq.f32.partialorder %v2198_v43, 8.507059e+37 }
 0x389   : > { %v2177_v45 = vmul.f32 %v4595_v5, %v2176_v40  ;;  %v6265_v38 = vadd.f32 %v6019_v56, %v1826_v30 }
 0x38a   : > { %v1736_v29 = vpop.f32.mrf.mxu0 }
 0x38b   : > { %v2178_v35 = vadd.f32 %v4595_v5, %v2177_v45  ;;  %v4332_v1 = vmul.f32 -1.442695, %v6265_v38  ;;  %v1737_v57 = vadd.f32 %v1736_v29, %v1630_v37  ;;  %v6276_v7 = vpop.f32.mrf.mxu2  ;;  %v7566_v37 = vld [vmem:[#allocation109_spill] sm:$0xff]  ;;  %v7567_v45 = vld [vmem:[#allocation92_spill] sm:$0xff] }
 0x38c   : > { %v4597_v52 = vpop.eup %4596  ;;  %v1159_v8 = vadd.f32 %v7566_v37, %v1052_v12  ;;  %v948_v29 = vadd.f32 %v7568_v39, %v7567_v45  ;;  %v7572_v37 = vld [vmem:[#allocation44_spill] sm:$0xff] }
 0x38d   : > { %v2182_v16 = vsel %vm2181_vm7, %v4595_v5, %v2178_v35  ;;  %v2190_v27 = vmul.f32 %v4597_v52, %v1977_v22  ;;  %4598 = vpow2.f32 %v4332_v1  ;;  %v1794_v55 = vadd.f32 %v1737_v57, %v1367_v6  ;;  %v7569_v57 = vld [vmem:[#allocation84_spill] sm:$0xff] }
 0x38e   : > { %v2187_v15 = vsel %vm2184_vm8, %v2186_v63, %v2182_v16  ;;  %vm2195_vm9 = vweird.f32 %v4597_v52  ;;  %v1266_v35 = vadd.f32 %v5931_v13, %v1159_v8  ;;  %v1636_v1 = vadd.f32 %v6244_v62, %v6241_v46 }
 0x38f   : > { %v2456_v21 = vmul.f32 %v2187_v15, %v6226_v2  ;;  %v2191_v32 = vsub.f32 1.0, %v2190_v27  ;;  %v1827_v3 = vmul.f32 %v6013_v14, %v1794_v55  ;;  %v6279_v2 = vpop.f32.mrf.mxu3  ;;  %vm2196_vm11 = vmor %vm2194_vm10, %vm2195_vm9  ;;  %v1055_v51 = vadd.f32 %v7569_v57, %v948_v29  ;;  %v7570_v15 = vld [vmem:[#allocation110_spill] sm:$0xff] }
 0x391   : > { %2486 = vst [vmem:[#allocation2 + $0x60] sm:$0xff] %v2456_v21  ;;  %v2192_v26 = vmul.f32 %v4597_v52, %v2191_v32  ;;  %v6274_v9 = vadd.f32 %v6019_v56, %v1827_v3  ;;  %v1162_v13 = vadd.f32 %v7570_v15, %v1055_v51  ;;  %v1639_v21 = vadd.f32 %v6256_v41, %v6253_v50 }
 0x392   : > { %v1739_v5 = vpop.f32.mrf.mxu0 }
 0x393   : > { %v4599_v49 = vpop.eup %4598  ;;  %v2193_v28 = vadd.f32 %v4597_v52, %v2192_v26  ;;  %v4333_v30 = vmul.f32 -1.442695, %v6274_v9  ;;  %v6290_v6 = vpop.f32.mrf.mxu2  ;;  %v1269_v53 = vadd.f32 %v5938_v48, %v1162_v13 }
 0x394   : > { %v1979_v40 = vadd.f32 1.0, %v4599_v49 }
 0x395   : > { %v2197_v59 = vsel %vm2196_vm11, %v4597_v52, %v2193_v28  ;;  %v1373_v52 = vadd.f32 %v5910_v34, %v1266_v35  ;;  %v1376_v26 = vadd.f32 %v5917_v10, %v1269_v53  ;;  %v7575_v53 = vld [vmem:[#allocation98_spill] sm:$0xff] }
 0x396   : > { %v2202_v25 = vsel %vm2199_vm12, %v2201_v24, %v2197_v59  ;;  %4600 = vrcp.f32 %v1979_v40  ;;  %v2230_v32 = vand.u32 2147483648, %v1979_v40  ;;  %v2228_v4 = vand.u32 2147483647, %v1979_v40 }
 0x397   : > { %v2457_v22 = vmul.f32 %v2202_v25, %v6238_v36  ;;  %4602 = vpow2.f32 %v4333_v30  ;;  %v6293_v16 = vpop.f32.mrf.mxu3  ;;  %vm2224_vm14 = vweird.f32 %v1979_v40  ;;  %v7571_v30 = vld [vmem:[#allocation96_spill] sm:$0xff] }
 0x398   : > { %v2231_v50 = vor.u32 1.1754944e-38, %v2230_v32  ;;  %vm2229_vm1 = vcmp.eq.f32.partialorder %v2228_v4, 8.507059e+37  ;;  %v954_v8 = vadd.f32 %v7572_v37, %v7571_v30  ;;  %v7573_v25 = vld [vmem:[#allocation88_spill] sm:$0xff] }
 0x399   : > { %2487 = vst [vmem:[#allocation2 + $0xa8] sm:$0xff] %v2457_v22 }
 0x39a   : > { %v1742_v44 = vpop.f32.mrf.mxu0  ;;  %v1061_v35 = vadd.f32 %v7573_v25, %v954_v8 }
 0x39b   : > { %v1743_v63 = vadd.f32 %v1742_v44, %v1636_v1  ;;  %v1543_v5 = vpop.f32.mrf.mxu2 }
 0x39c   : > { %v4601_v27 = vpop.eup %4600 }
 0x39d   : > { %v4603_v55 = vpop.eup %4602  ;;  %v2220_v36 = vmul.f32 %v4601_v27, %v1979_v40  ;;  %v1796_v42 = vadd.f32 %v1743_v63, %v1373_v52  ;;  %vm2225_vm13 = vweird.f32 %v4601_v27 }
 0x39e   : > { %v1980_v46 = vadd.f32 1.0, %v4603_v55  ;;  %vm2226_vm15 = vmor %vm2224_vm14, %vm2225_vm13 }
 0x39f   : > { %v2221_v62 = vsub.f32 1.0, %v2220_v36  ;;  %v1829_v54 = vmul.f32 %v6013_v14, %v1796_v42  ;;  %v1650_v12 = vpop.f32.mrf.mxu3  ;;  %v1645_v42 = vadd.f32 %v6279_v2, %v6276_v7 }
 0x3a0   : > { %4604 = vrcp.f32 %v1980_v46  ;;  %v2245_v22 = vand.u32 2147483648, %v1980_v46  ;;  %v2243_v52 = vand.u32 2147483647, %v1980_v46  ;;  %vm2239_vm3 = vweird.f32 %v1980_v46  ;;  %v7578_v12 = vld [vmem:[#allocation112_spill] sm:$0xff] }
 0x3a1   : > { %v2222_v34 = vmul.f32 %v4601_v27, %v2221_v62  ;;  %v6301_v3 = vadd.f32 %v6019_v56, %v1829_v54  ;;  %v7576_v62 = vld [vmem:[#allocation47_spill] sm:$0xff] }
 0x3a2   : > { %v1745_v43 = vpop.f32.mrf.mxu0  ;;  %vm2244_vm5 = vcmp.eq.f32.partialorder %v2243_v52, 8.507059e+37  ;;  %v957_v54 = vadd.f32 %v7576_v62, %v7575_v53 }
 0x3a3   : > { %v2223_v48 = vadd.f32 %v4601_v27, %v2222_v34  ;;  %v4335_v49 = vmul.f32 -1.442695, %v6301_v3  ;;  %v1746_v20 = vadd.f32 %v1745_v43, %v1639_v21  ;;  %v6313_v57 = vpop.f32.mrf.mxu2 }
 0x3a5   : > { %v2227_v41 = vsel %vm2226_vm15, %v4601_v27, %v2223_v48  ;;  %4606 = vpow2.f32 %v4335_v49  ;;  %v1797_v28 = vadd.f32 %v1746_v20, %v1376_v26  ;;  %v7574_v27 = vld [vmem:[#allocation111_spill] sm:$0xff] }
 0x3a6   : > { %v4605_v24 = vpop.eup %4604  ;;  %v2232_v59 = vsel %vm2229_vm1, %v2231_v50, %v2227_v41  ;;  %v1168_v15 = vadd.f32 %v7574_v27, %v1061_v35  ;;  %v7577_v48 = vld [vmem:[#allocation91_spill] sm:$0xff]  ;;  %v6335_v41 = vld [vmem:[%s7219_s2] ss:$0 sm:$0xff] }
 0x3a7   : > { %v2459_v10 = vmul.f32 %v2232_v59, %v6265_v38  ;;  %v2235_v45 = vmul.f32 %v4605_v24, %v1980_v46  ;;  %v1830_v40 = vmul.f32 %v6013_v14, %v1797_v28  ;;  %vm2240_vm2 = vweird.f32 %v4605_v24  ;;  %v6316_v63 = vpop.f32.mrf.mxu3  ;;  %v6344_v59 = vld [vmem:[%s7220_s3] ss:$0 sm:$0xff]  ;;  %v7580_v27 = vld [vmem:[#allocation55_spill] sm:$0xff] }
 0x3a8   : > { %vm2241_vm4 = vmor %vm2239_vm3, %vm2240_vm2  ;;  %v1275_v55 = vadd.f32 %v5948_v23, %v1168_v15  ;;  %v1064_v49 = vadd.f32 %v7577_v48, %v957_v54  ;;  %v1648_v28 = vadd.f32 %v6293_v16, %v6290_v6 }
 0x3a9   : > { %2489 = vst [vmem:[#allocation2 + $0x40] sm:$0xff] %v2459_v10  ;;  %v2236_v39 = vsub.f32 1.0, %v2235_v45  ;;  %v6310_v29 = vadd.f32 %v6019_v56, %v1830_v40  ;;  %v2246_v56 = vor.u32 1.1754944e-38, %v2245_v22 }
 0x3aa   : > { %v1748_v1 = vpop.f32.mrf.mxu0  ;;  %v1382_v26 = vadd.f32 %v5927_v60, %v1275_v55  ;;  %v1171_v50 = vadd.f32 %v7578_v12, %v1064_v49  ;;  %v7583_v49 = vld [vmem:[#allocation104_spill] sm:$0xff] }
 0x3ab   : > { %v4607_v51 = vpop.eup %4606  ;;  %v2237_v44 = vmul.f32 %v4605_v24, %v2236_v39  ;;  %v4336_v38 = vmul.f32 -1.442695, %v6310_v29  ;;  %v6325_v4 = vpop.f32.mrf.mxu2 }
 0x3ac   : > { %v1982_v14 = vadd.f32 1.0, %v4607_v51 }
 0x3ad   : > { %v2238_v13 = vadd.f32 %v4605_v24, %v2237_v44  ;;  %4608 = vpow2.f32 %v4336_v38  ;;  %v7579_v38 = vld [vmem:[#allocation102_spill] sm:$0xff] }
 0x3ae   : > { %4610 = vrcp.f32 %v1982_v14  ;;  %v2275_v30 = vand.u32 2147483648, %v1982_v14  ;;  %v2273_v8 = vand.u32 2147483647, %v1982_v14  ;;  %vm2269_vm7 = vweird.f32 %v1982_v14 }
 0x3af   : > { %v2242_v36 = vsel %vm2241_vm4, %v4605_v24, %v2238_v13  ;;  %v6328_v23 = vpop.f32.mrf.mxu3  ;;  %v1278_v24 = vadd.f32 %v5955_v33, %v1171_v50  ;;  %v963_v15 = vadd.f32 %v7580_v27, %v7579_v38 }
 0x3b0   : > { %v2247_v21 = vsel %vm2244_vm5, %v2246_v56, %v2242_v36  ;;  %v2276_v22 = vor.u32 1.1754944e-38, %v2275_v30  ;;  %vm2274_vm9 = vcmp.eq.f32.partialorder %v2273_v8, 8.507059e+37 }
 0x3b1   : > { %v2460_v32 = vmul.f32 %v2247_v21, %v6274_v9  ;;  %v1385_v35 = vadd.f32 %v5934_v11, %v1278_v24  ;;  %v7581_v21 = vld [vmem:[#allocation94_spill] sm:$0xff] }
 0x3b2   : > { %v1751_v34 = vpop.f32.mrf.mxu0 }
 0x3b3   : > { %v4609_v46 = vpop.eup %4608  ;;  %2490 = vst [vmem:[#allocation2 + $0x8] sm:$0xff] %v2460_v32  ;;  %v1752_v43 = vadd.f32 %v1751_v34, %v1645_v42  ;;  %v1552_v40 = vpop.f32.mrf.mxu2  ;;  %v1070_v32 = vadd.f32 %v7581_v21, %v963_v15 }
 0x3b4   : > { %v4611_v5 = vpop.eup %4610  ;;  %v1983_v7 = vadd.f32 1.0, %v4609_v46  ;;  %v7586_v40 = vld [vmem:[#allocation116_spill] sm:$0xff] }
 0x3b5   : > { %v2265_v2 = vmul.f32 %v4611_v5, %v1982_v14  ;;  %v1799_v20 = vadd.f32 %v1752_v43, %v1382_v26  ;;  %vm2270_vm6 = vweird.f32 %v4611_v5  ;;  %v7582_v43 = vld [vmem:[#allocation114_spill] sm:$0xff] }
 0x3b6   : > { %4612 = vrcp.f32 %v1983_v7  ;;  %vm2271_vm8 = vmor %vm2269_vm7, %vm2270_vm6  ;;  %v2290_v56 = vand.u32 2147483648, %v1983_v7  ;;  %v2288_v11 = vand.u32 2147483647, %v1983_v7  ;;  %vm2284_vm11 = vweird.f32 %v1983_v7 }
 0x3b7   : > { %v2266_v9 = vsub.f32 1.0, %v2265_v2  ;;  %v1832_v60 = vmul.f32 %v6335_v41, %v1799_v20  ;;  %v1659_v33 = vpop.f32.mrf.mxu3  ;;  %v7584_v2 = vld [vmem:[#allocation57_spill] sm:$0xff] }
 0x3b8   : > { %vm2289_vm13 = vcmp.eq.f32.partialorder %v2288_v11, 8.507059e+37  ;;  %v966_v20 = vadd.f32 %v7584_v2, %v7583_v49  ;;  %v7590_v2 = vld [vmem:[#allocation119_spill] sm:$0xff] }
 0x3b9   : > { %v2267_v37 = vmul.f32 %v4611_v5, %v2266_v9  ;;  %v6347_v10 = vadd.f32 %v6344_v59, %v1832_v60  ;;  %v7585_v60 = vld [vmem:[#allocation97_spill] sm:$0xff] }
 0x3ba   : > { %v1754_v45 = vpop.f32.mrf.mxu0 }
 0x3bb   : > { %v2268_v39 = vadd.f32 %v4611_v5, %v2267_v37  ;;  %v4338_v6 = vmul.f32 -1.442695, %v6347_v10  ;;  %v1755_v16 = vadd.f32 %v1754_v45, %v1648_v28  ;;  %v6358_v62 = vpop.f32.mrf.mxu2  ;;  %v1073_v28 = vadd.f32 %v7585_v60, %v966_v20 }
 0x3bc   : > { %v4613_v25 = vpop.eup %4612 }
 0x3bd   : > { %v2272_v1 = vsel %vm2271_vm8, %v4611_v5, %v2268_v39  ;;  %v2280_v51 = vmul.f32 %v4613_v25, %v1983_v7  ;;  %4614 = vpow2.f32 %v4338_v6  ;;  %v1800_v52 = vadd.f32 %v1755_v16, %v1385_v35 }
 0x3be   : > { %v2277_v44 = vsel %vm2274_vm9, %v2276_v22, %v2272_v1  ;;  %vm2285_vm10 = vweird.f32 %v4613_v25  ;;  %v1177_v5 = vadd.f32 %v7582_v43, %v1070_v32  ;;  %v1654_v7 = vadd.f32 %v6316_v63, %v6313_v57  ;;  %v7589_v32 = vld [vmem:[#allocation100_spill] sm:$0xff] }
 0x3bf   : > { %v2462_v14 = vmul.f32 %v2277_v44, %v6301_v3  ;;  %v2281_v13 = vsub.f32 1.0, %v2280_v51  ;;  %v1833_v55 = vmul.f32 %v6335_v41, %v1800_v52  ;;  %vm2286_vm12 = vmor %vm2284_vm11, %vm2285_vm10  ;;  %v2291_v3 = vor.u32 1.1754944e-38, %v2290_v56  ;;  %v7588_v56 = vld [vmem:[#allocation65_spill] sm:$0xff] }
 0x3c0   : > { %v1284_v50 = vadd.f32 %v5965_v31, %v1177_v5  ;;  %v1180_v39 = vadd.f32 %v7586_v40, %v1073_v28  ;;  %v1657_v63 = vadd.f32 %v6328_v23, %v6325_v4  ;;  %v7591_v28 = vld [vmem:[#allocation108_spill] sm:$0xff] }
 0x3c1   : > { %2492 = vst [vmem:[#allocation2 + $0xc0] sm:$0xff] %v2462_v14  ;;  %v2282_v36 = vmul.f32 %v4613_v25, %v2281_v13  ;;  %v6356_v42 = vadd.f32 %v6344_v59, %v1833_v55  ;;  %v7587_v13 = vld [vmem:[#allocation107_spill] sm:$0xff] }
 0x3c2   : > { %v1757_v53 = vpop.f32.mrf.mxu0  ;;  %v1391_v37 = vadd.f32 %v5944_v61, %v1284_v50  ;;  %v972_v55 = vadd.f32 %v7588_v56, %v7587_v13 }
 0x3c3   : > { %v4615_v54 = vpop.eup %4614  ;;  %v2283_v34 = vadd.f32 %v4613_v25, %v2282_v36  ;;  %v4339_v26 = vmul.f32 -1.442695, %v6356_v42  ;;  %v6370_v30 = vpop.f32.mrf.mxu2 }
 0x3c4   : > { %v1985_v46 = vadd.f32 1.0, %v4615_v54 }
 0x3c5   : > { %v2287_v48 = vsel %vm2286_vm12, %v4613_v25, %v2283_v34  ;;  %v1079_v34 = vadd.f32 %v7589_v32, %v972_v55 }
 0x3c6   : > { %v2292_v12 = vsel %vm2289_vm13, %v2291_v3, %v2287_v48  ;;  %4616 = vrcp.f32 %v1985_v46  ;;  %v2320_v35 = vand.u32 2147483648, %v1985_v46  ;;  %v2318_v61 = vand.u32 2147483647, %v1985_v46 }
 0x3c7   : > { %v2463_v9 = vmul.f32 %v2292_v12, %v6310_v29  ;;  %4618 = vpow2.f32 %v4339_v26  ;;  %v1287_v29 = vadd.f32 %v5972_v58, %v1180_v39  ;;  %vm2314_vm15 = vweird.f32 %v1985_v46  ;;  %v1662_v26 = vpop.f32.mrf.mxu3 }
 0x3c8   : > { %v2321_v15 = vor.u32 1.1754944e-38, %v2320_v35  ;;  %vm2319_vm2 = vcmp.eq.f32.partialorder %v2318_v61, 8.507059e+37  ;;  %v1186_v20 = vadd.f32 %v7590_v2, %v1079_v34  ;;  %v1663_v60 = vadd.f32 %v1662_v26, %v6358_v62  ;;  %v7594_v62 = vld [vmem:[#allocation120_spill] sm:$0xff] }
 0x3c9   : > { %2493 = vst [vmem:[#allocation2 + $0x10] sm:$0xff] %v2463_v9  ;;  %v1394_v51 = vadd.f32 %v5951_v47, %v1287_v29  ;;  %v7593_v29 = vld [vmem:[#allocation103_spill] sm:$0xff] }
 0x3ca   : > { %v1760_v24 = vpop.f32.mrf.mxu0  ;;  %v1293_v9 = vadd.f32 %v5980_v19, %v1186_v20 }
 0x3cb   : > { %v1761_v8 = vadd.f32 %v1760_v24, %v1654_v7  ;;  %v1561_v52 = vpop.f32.mrf.mxu2  ;;  %v7592_v24 = vld [vmem:[#allocation68_spill] sm:$0xff] }
 0x3cc   : > { %v4617_v45 = vpop.eup %4616 }
 0x3cd   : > { %v4619_v6 = vpop.eup %4618  ;;  %v2310_v31 = vmul.f32 %v4617_v45, %v1985_v46  ;;  %v1802_v16 = vadd.f32 %v1761_v8, %v1391_v37  ;;  %vm2315_vm14 = vweird.f32 %v4617_v45  ;;  %v975_v37 = vadd.f32 %v7592_v24, %v7591_v28 }
 0x3ce   : > { %v1986_v33 = vadd.f32 1.0, %v4619_v6  ;;  %vm2316_vm1 = vmor %vm2314_vm15, %vm2315_vm14  ;;  %v1400_v6 = vadd.f32 %v5961_v0, %v1293_v9 }
 0x3cf   : > { %v2311_v25 = vsub.f32 1.0, %v2310_v31  ;;  %v1835_v57 = vmul.f32 %v6335_v41, %v1802_v16 }
 0x3d0   : > { %4620 = vrcp.f32 %v1986_v33  ;;  %v2335_v3 = vand.u32 2147483648, %v1986_v33  ;;  %v2333_v48 = vand.u32 2147483647, %v1986_v33  ;;  %vm2329_vm4 = vweird.f32 %v1986_v33 }
 0x3d1   : > { %v2312_v22 = vmul.f32 %v4617_v45, %v2311_v25  ;;  %v6379_v1 = vadd.f32 %v6344_v59, %v1835_v57  ;;  %v1665_v25 = vpop.f32.mrf.mxu3 }
 0x3d2   : > { %v1763_v44 = vpop.f32.mrf.mxu0  ;;  %v2336_v50 = vor.u32 1.1754944e-38, %v2335_v3  ;;  %vm2334_vm6 = vcmp.eq.f32.partialorder %v2333_v48, 8.507059e+37 }
 0x3d3   : > { %v2313_v58 = vadd.f32 %v4617_v45, %v2312_v22  ;;  %v4341_v38 = vmul.f32 -1.442695, %v6379_v1  ;;  %v1764_v27 = vadd.f32 %v1763_v44, %v1657_v63 }
 0x3d5   : > { %v2317_v4 = vsel %vm2316_vm1, %v4617_v45, %v2313_v58  ;;  %4622 = vpow2.f32 %v4341_v38  ;;  %v1803_v23 = vadd.f32 %v1764_v27, %v1394_v51 }
 0x3d6   : > { %v4621_v14 = vpop.eup %4620  ;;  %v2322_v36 = vsel %vm2319_vm2, %v2321_v15, %v2317_v4 }
 0x3d7   : > { %v2465_v47 = vmul.f32 %v2322_v36, %v6347_v10  ;;  %v2325_v11 = vmul.f32 %v4621_v14, %v1986_v33  ;;  %v1836_v53 = vmul.f32 %v6335_v41, %v1803_v23  ;;  %vm2330_vm3 = vweird.f32 %v4621_v14 }
 0x3d8   : > { %vm2331_vm5 = vmor %vm2329_vm4, %vm2330_vm3  ;;  %v1082_v33 = vadd.f32 %v7593_v29, %v975_v37 }
 0x3d9   : > { %2495 = vst [vmem:[#allocation2 + $0x28] sm:$0xff] %v2465_v47  ;;  %v2326_v54 = vsub.f32 1.0, %v2325_v11  ;;  %v6388_v21 = vadd.f32 %v6344_v59, %v1836_v53 }
 0x3da   : > { %v1766_v46 = vpop.f32.mrf.mxu0  ;;  %v1189_v35 = vadd.f32 %v7594_v62, %v1082_v33 }
 0x3db   : > { %v4623_v43 = vpop.eup %4622  ;;  %v2327_v5 = vmul.f32 %v4621_v14, %v2326_v54  ;;  %v4342_v49 = vmul.f32 -1.442695, %v6388_v21 }
 0x3dc   : > { %v1988_v10 = vadd.f32 1.0, %v4623_v43  ;;  %v1296_v51 = vadd.f32 %v5985_v17, %v1189_v35 }
 0x3dd   : > { %v2328_v12 = vadd.f32 %v4621_v14, %v2327_v5  ;;  %4624 = vpow2.f32 %v4342_v49 }
 0x3de   : > { %4626 = vrcp.f32 %v1988_v10  ;;  %v2365_v0 = vand.u32 2147483648, %v1988_v10  ;;  %v2363_v52 = vand.u32 2147483647, %v1988_v10  ;;  %vm2359_vm8 = vweird.f32 %v1988_v10 }
 0x3df   : > { %v2332_v7 = vsel %vm2331_vm5, %v4621_v14, %v2328_v12  ;;  %v1403_v14 = vadd.f32 %v5968_v18, %v1296_v51 }
 0x3e0   : > { %v2337_v8 = vsel %vm2334_vm6, %v2336_v50, %v2332_v7  ;;  %v2366_v13 = vor.u32 1.1754944e-38, %v2365_v0  ;;  %vm2364_vm10 = vcmp.eq.f32.partialorder %v2363_v52, 8.507059e+37 }
 0x3e1   : > { %v2466_v45 = vmul.f32 %v2337_v8, %v6356_v42  ;;  %v1666_v42 = vadd.f32 %v1665_v25, %v6370_v30 }
 0x3e2   : > { %v1769_v40 = vpop.f32.mrf.mxu0 }
 0x3e3   : > { %v4625_v39 = vpop.eup %4624  ;;  %2496 = vst [vmem:[#allocation2 + $0x90] sm:$0xff] %v2466_v45  ;;  %v1770_v31 = vadd.f32 %v1769_v40, %v1663_v60 }
 0x3e4   : > { %v4627_v16 = vpop.eup %4626  ;;  %v1989_v19 = vadd.f32 1.0, %v4625_v39 }
 0x3e5   : > { %v2355_v57 = vmul.f32 %v4627_v16, %v1988_v10  ;;  %v1805_v63 = vadd.f32 %v1770_v31, %v1400_v6  ;;  %vm2360_vm7 = vweird.f32 %v4627_v16 }
 0x3e6   : > { %4628 = vrcp.f32 %v1989_v19  ;;  %vm2361_vm9 = vmor %vm2359_vm8, %vm2360_vm7  ;;  %v2380_v11 = vand.u32 2147483648, %v1989_v19  ;;  %v2378_v32 = vand.u32 2147483647, %v1989_v19  ;;  %vm2374_vm12 = vweird.f32 %v1989_v19  ;;  %v1668_v46 = vpop.f32.mrf.mxu3 }
 0x3e7   : > { %v2356_v22 = vsub.f32 1.0, %v2355_v57  ;;  %v1838_v61 = vmul.f32 %v6335_v41, %v1805_v63 }
 0x3e8   : > { %v2381_v43 = vor.u32 1.1754944e-38, %v2380_v11  ;;  %vm2379_vm14 = vcmp.eq.f32.partialorder %v2378_v32, 8.507059e+37 }
 0x3e9   : > { %v2357_v44 = vmul.f32 %v4627_v16, %v2356_v22  ;;  %v1871_v58 = vadd.f32 %v6344_v59, %v1838_v61 }
 0x3ea   : > { %v1772_v38 = vpop.f32.mrf.mxu0 }
 0x3eb   : > { %v2358_v27 = vadd.f32 %v4627_v16, %v2357_v44  ;;  %v4344_v15 = vmul.f32 -1.442695, %v1871_v58  ;;  %v1773_v4 = vadd.f32 %v1772_v38, %v1666_v42 }
 0x3ec   : > { %v4629_v23 = vpop.eup %4628 }
 0x3ed   : > { %v2362_v56 = vsel %vm2361_vm9, %v4627_v16, %v2358_v27  ;;  %v2370_v30 = vmul.f32 %v4629_v23, %v1989_v19  ;;  %4630 = vpow2.f32 %v4344_v15  ;;  %v1806_v55 = vadd.f32 %v1773_v4, %v1403_v14 }
 0x3ee   : > { %v2367_v17 = vsel %vm2364_vm10, %v2366_v13, %v2362_v56  ;;  %vm2375_vm11 = vweird.f32 %v4629_v23 }
 0x3ef   : > { %v2468_v36 = vmul.f32 %v2367_v17, %v6379_v1  ;;  %v2371_v47 = vsub.f32 1.0, %v2370_v30  ;;  %v1839_v53 = vmul.f32 %v6335_v41, %v1806_v55  ;;  %vm2376_vm13 = vmor %vm2374_vm12, %vm2375_vm11 }
 0x3f1   : > { %2498 = vst [vmem:[#allocation2 + $0x58] sm:$0xff] %v2468_v36  ;;  %v2372_v54 = vmul.f32 %v4629_v23, %v2371_v47  ;;  %v1872_v18 = vadd.f32 %v6344_v59, %v1839_v53 }
 0x3f2   : > { %v1775_v26 = vpop.f32.mrf.mxu0 }
 0x3f3   : > { %v4631_v34 = vpop.eup %4630  ;;  %v2373_v3 = vadd.f32 %v4629_v23, %v2372_v54  ;;  %v4345_v48 = vmul.f32 -1.442695, %v1872_v18 }
 0x3f4   : > { %v1991_v5 = vadd.f32 1.0, %v4631_v34 }
 0x3f5   : > { %v2377_v1 = vsel %vm2376_vm13, %v4629_v23, %v2373_v3 }
 0x3f6   : > { %v2382_v49 = vsel %vm2379_vm14, %v2381_v43, %v2377_v1  ;;  %4632 = vrcp.f32 %v1991_v5  ;;  %v2410_v50 = vand.u32 2147483648, %v1991_v5  ;;  %v2408_v7 = vand.u32 2147483647, %v1991_v5 }
 0x3f7   : > { %v2469_v41 = vmul.f32 %v2382_v49, %v6388_v21  ;;  %4634 = vpow2.f32 %v4345_v48  ;;  %vm2404_vm1 = vweird.f32 %v1991_v5 }
 0x3f8   : > { %v2411_v28 = vor.u32 1.1754944e-38, %v2410_v50  ;;  %vm2409_vm3 = vcmp.eq.f32.partialorder %v2408_v7, 8.507059e+37 }
 0x3f9   : > { %2499 = vst [vmem:[#allocation2 + $0xd0] sm:$0xff] %v2469_v41 }
 0x3fc   : > { %v4633_v10 = vpop.eup %4632 }
 0x3fd   : > { %v4635_v2 = vpop.eup %4634  ;;  %v2400_v59 = vmul.f32 %v4633_v10, %v1991_v5  ;;  %vm2405_vm15 = vweird.f32 %v4633_v10 }
 0x3fe   : > { %v1992_v20 = vadd.f32 1.0, %v4635_v2  ;;  %vm2406_vm2 = vmor %vm2404_vm1, %vm2405_vm15 }
 0x3ff   : > { %v2401_v12 = vsub.f32 1.0, %v2400_v59 }
 0x400   : > { %4636 = vrcp.f32 %v1992_v20  ;;  %v2425_v39 = vand.u32 2147483648, %v1992_v20  ;;  %v2423_v31 = vand.u32 2147483647, %v1992_v20  ;;  %vm2419_vm5 = vweird.f32 %v1992_v20 }
 0x401   : > { %v2402_v9 = vmul.f32 %v4633_v10, %v2401_v12 }
 0x402   : > { %v2426_v29 = vor.u32 1.1754944e-38, %v2425_v39  ;;  %vm2424_vm7 = vcmp.eq.f32.partialorder %v2423_v31, 8.507059e+37 }
 0x403   : > { %v2403_v60 = vadd.f32 %v4633_v10, %v2402_v9 }
 0x405   : > { %v2407_v24 = vsel %vm2406_vm2, %v4633_v10, %v2403_v60 }
 0x406   : > { %v4637_v37 = vpop.eup %4636  ;;  %v2412_v21 = vsel %vm2409_vm3, %v2411_v28, %v2407_v24 }
 0x407   : > { %v2471_v8 = vmul.f32 %v2412_v21, %v1871_v58  ;;  %v2415_v45 = vmul.f32 %v4637_v37, %v1992_v20  ;;  %vm2420_vm4 = vweird.f32 %v4637_v37 }
 0x408   : > { %vm2421_vm6 = vmor %vm2419_vm5, %vm2420_vm4 }
 0x409   : > { %2501 = vst [vmem:[#allocation2 + $0xc8] sm:$0xff] %v2471_v8  ;;  %v2416_v40 = vsub.f32 1.0, %v2415_v45 }
 0x40b   : > { %v2417_v6 = vmul.f32 %v4637_v37, %v2416_v40 }
 0x40d   : > { %v2418_v16 = vadd.f32 %v4637_v37, %v2417_v6 }
 0x40f   : > { %v2422_v33 = vsel %vm2421_vm6, %v4637_v37, %v2418_v16  ;;  %2517 = sbr.rel (%p4347_p1) target bundleno = 1048 (0x418), region = 64 }
 0x410   : > { %v2427_v19 = vsel %vm2424_vm7, %v2426_v29, %v2422_v33 }
 0x411   : > { %v2472_v25 = vmul.f32 %v2427_v19, %v1872_v18 }
 0x413   : > { %2502 = vst [vmem:[#allocation2 + $0xe0] sm:$0xff] %v2472_v25 }
 0x414   : > { %v4955_v57 = vmov 0.0  }
 0x415   : > { %2518 = vst [vmem:[#allocation2 + $0xb0] sm:$0xff] %v4955_v57 }
 0x416   : > { %2519 = vst [vmem:[#allocation2] sm:$0xff] %v4955_v57 }
 0x417   : > { %2520 = vst [vmem:[#allocation2 + $0xd8] sm:$0xff] %v4955_v57 }
 0x418 PF: > { %p4348_p3 = scmp.ne.s32.totalorder %s4932_s27, 1 }
 0x41a   : > { %2524 = sbr.rel (%p4348_p3) target bundleno = 1059 (0x423), region = 68 }
 0x41f   : > { %v4956_v63 = vmov 0.0  }
 0x420   : > { %2526 = vst [vmem:[#allocation2 + $0xc8] sm:$0xff] %v4956_v63 }
 0x421   : > { %2527 = vst [vmem:[#allocation2 + $0xe0] sm:$0xff] %v4956_v63 }
 0x422   : > { %2528 = vst [vmem:[#allocation2 + $0x20] sm:$0xff] %v4956_v63 }
 0x423 PF: > { %v2856_v62 = vld [vmem:[#allocation8 + $0x1f8] sm:$0xff]  ;;  %v2855_v22 = vld [vmem:[#allocation8 + $0x1f0] sm:$0xff]  ;;  %v2854_v51 = vld [vmem:[#allocation8 + $0x1e8] sm:$0xff]  ;;  %vm2609_vm8 = vcmask 1040384   ;;  %s7656_s15 = sld [smem:[#allocation124_spill]]  ;;  %s4396_s28 = sshll.u32 %s4932_s27, 4 }
 0x424   : > { %v2872_v35 = vld [vmem:[#allocation8 + $0x278] sm:$0xff]  ;;  %2889 = vmatpush.msra.mxu1 %v2856_v62  ;;  %v2871_v61 = vld [vmem:[#allocation8 + $0x270] sm:$0xff]  ;;  %v2870_v0 = vld [vmem:[#allocation8 + $0x268] sm:$0xff]  ;;  %s7660_s6 = sld [smem:[#allocation14_spill]]  ;;  %s4179_s9 = scalar_lea.sflag [#allocation5], %s5124_s1 }
 0x425   : > { %2970 = vmatpush.msra.mxu2 %v2872_v35  ;;  %v2888_v42 = vld [vmem:[#allocation8 + $0x2f8] sm:$0xff]  ;;  %v2887_v44 = vld [vmem:[#allocation8 + $0x2f0] sm:$0xff]  ;;  %v2886_v52 = vld [vmem:[#allocation8 + $0x2e8] sm:$0xff]  ;;  %s7661_s10 = sld [smem:[#allocation125_spill]] }
 0x426   : > { %3051 = vmatpush.msrb.mxu3 %v2888_v42  ;;  %2890 = vmatpush.msra.mxu1 %v2855_v22  ;;  %v2853_v58 = vld [vmem:[#allocation8 + $0x1e0] sm:$0xff]  ;;  %v2852_v15 = vld [vmem:[#allocation8 + $0x1d8] sm:$0xff]  ;;  %v2851_v14 = vld [vmem:[#allocation8 + $0x1d0] sm:$0xff] }
 0x427   : > { %2971 = vmatpush.msra.mxu2 %v2871_v61  ;;  %v2869_v38 = vld [vmem:[#allocation8 + $0x260] sm:$0xff]  ;;  %v2868_v4 = vld [vmem:[#allocation8 + $0x258] sm:$0xff]  ;;  %v2867_v13 = vld [vmem:[#allocation8 + $0x250] sm:$0xff] }
 0x428   : > { %3052 = vmatpush.msrb.mxu3 %v2887_v44  ;;  %2891 = vmatpush.msra.mxu1 %v2854_v51  ;;  %v2885_v27 = vld [vmem:[#allocation8 + $0x2e0] sm:$0xff]  ;;  %v2884_v23 = vld [vmem:[#allocation8 + $0x2d8] sm:$0xff]  ;;  %v2883_v56 = vld [vmem:[#allocation8 + $0x2d0] sm:$0xff] }
 0x429   : > { %2972 = vmatpush.msra.mxu2 %v2870_v0  ;;  %v2850_v30 = vld [vmem:[#allocation8 + $0x1c8] sm:$0xff]  ;;  %v2849_v36 = vld [vmem:[#allocation8 + $0x1c0] sm:$0xff]  ;;  %v2848_v53 = vld [vmem:[#allocation8 + $0x1b8] sm:$0xff] }
 0x42a   : > { %3053 = vmatpush.msrb.mxu3 %v2886_v52  ;;  %2892 = vmatpush.msra.mxu1 %v2853_v58  ;;  %v2866_v17 = vld [vmem:[#allocation8 + $0x248] sm:$0xff]  ;;  %v2865_v47 = vld [vmem:[#allocation8 + $0x240] sm:$0xff]  ;;  %v2864_v54 = vld [vmem:[#allocation8 + $0x238] sm:$0xff]  ;;  %s4392_s8 = sshll.u32 %s7660_s6, 5 }
 0x42b   : > { %2973 = vmatpush.msra.mxu2 %v2869_v38  ;;  %v2882_v55 = vld [vmem:[#allocation8 + $0x2c8] sm:$0xff]  ;;  %v2881_v11 = vld [vmem:[#allocation8 + $0x2c0] sm:$0xff]  ;;  %v2880_v32 = vld [vmem:[#allocation8 + $0x2b8] sm:$0xff]  ;;  %s4191_s11 = sadd.s32 %s4396_s28, %s4392_s8  ;;  %s4866_s4 = scalar_lea.hbm %s7661_s10, 512 }
 0x42c   : > { %3054 = vmatpush.msrb.mxu3 %v2885_v27  ;;  %2893 = vmatpush.msra.mxu1 %v2852_v15  ;;  %v2847_v18 = vld [vmem:[#allocation8 + $0x1b0] sm:$0xff]  ;;  %v2846_v46 = vld [vmem:[#allocation8 + $0x1a8] sm:$0xff]  ;;  %v2845_v5 = vld [vmem:[#allocation8 + $0x1a0] sm:$0xff]  ;;  %s4393_s12 = sshll.u32 %s4191_s11, 3 }
 0x42d   : > { %2974 = vmatpush.msra.mxu2 %v2868_v4  ;;  %v2863_v34 = vld [vmem:[#allocation8 + $0x230] sm:$0xff]  ;;  %v2862_v26 = vld [vmem:[#allocation8 + $0x228] sm:$0xff]  ;;  %v2861_v48 = vld [vmem:[#allocation8 + $0x220] sm:$0xff]  ;;  %s4193_s18 = scalar_lea.hbm %s7661_s10, %s4393_s12 }
 0x42e   : > { %3055 = vmatpush.msrb.mxu3 %v2884_v23  ;;  %2894 = vmatpush.msra.mxu1 %v2851_v14  ;;  %v2879_v3 = vld [vmem:[#allocation8 + $0x2b0] sm:$0xff]  ;;  %v2878_v43 = vld [vmem:[#allocation8 + $0x2a8] sm:$0xff]  ;;  %v2844_v1 = vld [vmem:[#allocation8 + $0x198] sm:$0xff]  ;;  %s4196_s21 = sshll.u32 %s4193_s18, 4  ;;  %s4197_s21 = int_to_ptr.hbm [resolvable:$true] %s4196_s21 }
 0x42f   : > { %2975 = vmatpush.msra.mxu2 %v2867_v13  ;;  %v2877_v49 = vld [vmem:[#allocation8 + $0x2a0] sm:$0xff]  ;;  %v2860_v41 = vld [vmem:[#allocation8 + $0x218] sm:$0xff]  ;;  %v6416_v10 = vld [vmem:[#allocation2 + $0x18] sm:$0xff]  ;;  %s4860_s22 = sshra.s32 %s4197_s21, 4  ;;  %s4861_s22 = int_to_ptr.hbm [resolvable:$true] %s4860_s22 }
 0x430   : > { %3056 = vmatpush.msrb.mxu3 %v2883_v56  ;;  %2895 = vmatpush.msra.mxu1 %v2850_v30  ;;  %v6418_v2 = vld [vmem:[#allocation2 + $0x68] sm:$0xff]  ;;  %v2843_v20 = vld [vmem:[#allocation8 + $0x190] sm:$0xff]  ;;  %v6420_v50 = vld [vmem:[#allocation2 + $0x50] sm:$0xff]  ;;  %v2614_v60 = vrot.slane %v6416_v10, 7  ;;  %v2695_v21 = vrot.slane %v6416_v10, 1  ;;  %s4862_s14 = scalar_lea.hbm %s4861_s22, 128  ;;  %p4867_p12 = scmp.lt.s32.totalorder %s4861_s22, %s7661_s10 }
 0x431   : > { %2976 = vmatpush.msra.mxu2 %v2866_v17  ;;  %v2876_v59 = vld [vmem:[#allocation8 + $0x298] sm:$0xff]  ;;  %v2859_v12 = vld [vmem:[#allocation8 + $0x210] sm:$0xff]  ;;  %v2570_v7 = vrot.slane %v6418_v2, 7  ;;  %v2842_v28 = vld [vmem:[#allocation8 + $0x188] sm:$0xff]  ;;  %v2696_v8 = vrot.slane %v6420_v50, 1  ;;  %v2615_v19 = vrot.slane %v6420_v50, 7  ;;  %p4863_p7 = scmp.ne.s32.totalorder %s4861_s22, %s4862_s14  ;;  %p4868_p13 = scmp.lt.s32.totalorder %s4866_s4, %s4862_s14 }
 0x432   : > { %3057 = vmatpush.msrb.mxu3 %v2882_v55  ;;  %2896 = vmatpush.msra.mxu1 %v2849_v36  ;;  %v2875_v9 = vld [vmem:[#allocation8 + $0x290] sm:$0xff]  ;;  %v2858_v24 = vld [vmem:[#allocation8 + $0x208] sm:$0xff]  ;;  %v2841_v45 = vld [vmem:[#allocation8 + $0x180] sm:$0xff]  ;;  %v2698_v63 = vrot.slane %v6418_v2, 1 }
 0x433   : > { %2977 = vmatpush.msra.mxu2 %v2865_v47  ;;  %v2874_v37 = vld [vmem:[#allocation8 + $0x288] sm:$0xff]  ;;  %v2857_v40 = vld [vmem:[#allocation8 + $0x200] sm:$0xff]  ;;  %v6427_v39 = vsel %vm2609_vm8, %v2570_v7, %v2614_v60  ;;  %v2823_v6 = vld [vmem:[#allocation8 + $0xf8] sm:$0xff]  ;;  %v6430_v16 = vsel %vm425_vm0, %v2695_v21, %v2696_v8  ;;  %v6438_v22 = vsel %vm2609_vm8, %v2614_v60, %v2615_v19  ;;  %v6447_v51 = vsel %vm2609_vm8, %v2615_v19, %v2570_v7  ;;  %p4864_p10 = pnand %p4863_p7, %p5094_p2  ;;  %p4869_p0 = por %p4868_p13, %p4867_p12 }
 0x434   : > { %3058 = vmatpush.msrb.mxu3 %v2881_v11  ;;  %2897 = vmatpush.msra.mxu1 %v2848_v53  ;;  %v2873_v31 = vld [vmem:[#allocation8 + $0x280] sm:$0xff]  ;;  %v2807_v29 = vld [vmem:[#allocation8 + $0x78] sm:$0xff]  ;;  %v2822_v33 = vld [vmem:[#allocation8 + $0xf0] sm:$0xff]  ;;  %v6441_v61 = vsel %vm425_vm0, %v2696_v8, %v2698_v63  ;;  %v6454_v52 = vsel %vm425_vm0, %v2698_v63, %v2695_v21 }
 0x435   : > { %2978 = vmatpush.msra.mxu2 %v2864_v54  ;;  %v2806_v25 = vld [vmem:[#allocation8 + $0x70] sm:$0xff]  ;;  %v2821_v57 = vld [vmem:[#allocation8 + $0xe8] sm:$0xff]  ;;  %v2820_v35 = vld [vmem:[#allocation8 + $0xe0] sm:$0xff]  ;;  %p4865_p11 = pneg %p4864_p10 }
 0x436   : > { %3059 = vmatpush.msrb.mxu3 %v2880_v32  ;;  %2898 = vmatpush.msra.mxu1 %v2847_v18  ;;  %v2805_v62 = vld [vmem:[#allocation8 + $0x68] sm:$0xff]  ;;  %v2804_v42 = vld [vmem:[#allocation8 + $0x60] sm:$0xff]  ;;  %v6451_v44 = vld [vmem:[#allocation2 + $0x80] sm:$0xff] }
 0x437   : > { %2979 = vmatpush.msra.mxu2 %v2863_v34  ;;  %v6449_v0 = vld [vmem:[#allocation2 + $0x30] sm:$0xff]  ;;  %v6458_v58 = vld [vmem:[#allocation2 + $0x48] sm:$0xff]  ;;  %v2571_v27 = vrot.slane %v6451_v44, 7  ;;  %v2818_v17 = vld [vmem:[#allocation8 + $0xd0] sm:$0xff]  ;;  %v2703_v55 = vrot.slane %v6451_v44, 1  ;;  %p4870_p4 = pnand %p4869_p0, %p4865_p11 }
 0x438   : > { %3060 = vmatpush.msrb.mxu3 %v2879_v3  ;;  %2899 = vmatpush.msra.mxu1 %v2846_v46  ;;  %v2819_v38 = vld [vmem:[#allocation8 + $0xd8] sm:$0xff]  ;;  %v2618_v15 = vrot.slane %v6449_v0, 7  ;;  %v2700_v23 = vrot.slane %v6449_v0, 1  ;;  %v2701_v14 = vrot.slane %v6458_v58, 1  ;;  %v2619_v30 = vrot.slane %v6458_v58, 7  ;;  %v2802_v11 = vld [vmem:[#allocation8 + $0x50] sm:$0xff] }
 0x439   : > { %2980 = vmatpush.msra.mxu2 %v2862_v26  ;;  %v2803_v4 = vld [vmem:[#allocation8 + $0x58] sm:$0xff]  ;;  %v6490_v32 = vld [vmem:[#allocation2 + $0xb8] sm:$0xff]  ;;  %v2800_v7 = vld [vmem:[#allocation8 + $0x40] sm:$0xff] }
 0x43a   : > { %3061 = vmatpush.msrb.mxu3 %v2878_v43  ;;  %2900 = vmatpush.msra.mxu1 %v2845_v5  ;;  %v6466_v13 = vsel %vm2609_vm8, %v2571_v27, %v2618_v15  ;;  %v6469_v56 = vsel %vm425_vm0, %v2700_v23, %v2701_v14  ;;  %v6477_v36 = vsel %vm2609_vm8, %v2618_v15, %v2619_v30  ;;  %v6488_v54 = vld [vmem:[#allocation2 + $0x88] sm:$0xff]  ;;  %v2817_v3 = vld [vmem:[#allocation8 + $0xc8] sm:$0xff]  ;;  %v2572_v46 = vrot.slane %v6490_v32, 7 }
 0x43b   : > { %2981 = vmatpush.msra.mxu2 %v2861_v48  ;;  %v6480_v47 = vsel %vm425_vm0, %v2701_v14, %v2703_v55  ;;  %v6486_v53 = vsel %vm2609_vm8, %v2619_v30, %v2571_v27  ;;  %v6493_v18 = vsel %vm425_vm0, %v2703_v55, %v2700_v23  ;;  %v6497_v34 = vld [vmem:[#allocation2 + $0xe8] sm:$0xff]  ;;  %v2622_v26 = vrot.slane %v6488_v54, 7  ;;  %v2801_v43 = vld [vmem:[#allocation8 + $0x48] sm:$0xff]  ;;  %v6566_v27 = vld [vmem:[#allocation2 + $0x40] sm:$0xff] }
 0x43c   : > { %3062 = vmatpush.msrb.mxu3 %v2877_v49  ;;  %2901 = vmatpush.msra.mxu1 %v2844_v1  ;;  %v2705_v5 = vrot.slane %v6488_v54, 1  ;;  %v2706_v48 = vrot.slane %v6497_v34, 1  ;;  %v6536_v21 = vld [vmem:[#allocation2 + $0xa8] sm:$0xff]  ;;  %v6568_v15 = vld [vmem:[#allocation2 + $0x78] sm:$0xff] }
 0x43d   : > { %2982 = vmatpush.msra.mxu2 %v2860_v41  ;;  %v6505_v1 = vsel %vm2609_vm8, %v2572_v46, %v2622_v26  ;;  %v2623_v41 = vrot.slane %v6497_v34, 7  ;;  %v2815_v8 = vld [vmem:[#allocation8 + $0xb8] sm:$0xff]  ;;  %7595 = vst [vmem:[#allocation48_spill] sm:$0xff] %v6568_v15  ;;  %v2813_v14 = vld [vmem:[#allocation8 + $0xa8] sm:$0xff]  ;;  %v2574_v30 = vrot.slane %v6568_v15, 7 }
 0x43e   : > { %3063 = vmatpush.msrb.mxu3 %v2876_v59  ;;  %2902 = vmatpush.msra.mxu1 %v2843_v20  ;;  %v6508_v49 = vsel %vm425_vm0, %v2705_v5, %v2706_v48  ;;  %v2816_v59 = vld [vmem:[#allocation8 + $0xc0] sm:$0xff]  ;;  %v2708_v20 = vrot.slane %v6490_v32, 1  ;;  %v6575_v23 = vld [vmem:[#allocation2 + $0x8] sm:$0xff]  ;;  %v2797_v55 = vld [vmem:[#allocation8 + $0x28] sm:$0xff] }
 0x43f   : > { %2983 = vmatpush.msra.mxu2 %v2859_v12  ;;  %v6516_v12 = vsel %vm2609_vm8, %v2622_v26, %v2623_v41  ;;  %v6525_v60 = vsel %vm2609_vm8, %v2623_v41, %v2572_v46 }
 0x440   : > { %3064 = vmatpush.msrb.mxu3 %v2875_v9  ;;  %2903 = vmatpush.msra.mxu1 %v2842_v28  ;;  %v6519_v9 = vsel %vm425_vm0, %v2706_v48, %v2708_v20  ;;  %v6527_v28 = vld [vmem:[#allocation2 + $0x60] sm:$0xff]  ;;  %v2812_v48 = vld [vmem:[#allocation8 + $0xa0] sm:$0xff] }
 0x441   : > { %2984 = vmatpush.msra.mxu2 %v2858_v24  ;;  %v6529_v24 = vld [vmem:[#allocation2 + $0x70] sm:$0xff] }
 0x442   : > { %3065 = vmatpush.msrb.mxu3 %v2874_v37  ;;  %2904 = vmatpush.msra.mxu1 %v2841_v45  ;;  %v6532_v37 = vsel %vm425_vm0, %v2708_v20, %v2705_v5  ;;  %v2573_v45 = vrot.slane %v6529_v24, 7  ;;  %v2713_v63 = vrot.slane %v6529_v24, 1  ;;  %v2718_v5 = vrot.slane %v6568_v15, 1  ;;  %v2796_v20 = vld [vmem:[#allocation8 + $0x20] sm:$0xff] }
 0x443   : > { %2985 = vmatpush.msra.mxu2 %v2857_v40  ;;  %2905 = vmatmul.f32.vlgmr.msra.gmra.mxu1 %v6427_v39  ;;  %v2626_v40 = vrot.slane %v6527_v28, 7 }
 0x444   : > { %2986 = vmatmul.f32.vlgmr.msra.gmra.mxu2 %v6416_v10  ;;  %3066 = vmatpush.msrb.mxu3 %v2873_v31  ;;  %v2710_v31 = vrot.slane %v6527_v28, 1 }
 0x445   : > { %3213 = vmatpush.msrb.mxu2 %v2823_v6  ;;  %3067 = vmatmul.f32.vlgmr.msrb.gmra.mxu3 %v6430_v16  ;;  %v2799_v6 = vld [vmem:[#allocation8 + $0x38] sm:$0xff] }
 0x446   : > { %3132 = vmatpush.msrb.mxu1 %v2807_v29  ;;  %v2711_v29 = vrot.slane %v6536_v21, 1 }
 0x447   : > { %3214 = vmatpush.msrb.mxu2 %v2822_v33  ;;  %v6544_v33 = vsel %vm2609_vm8, %v2573_v45, %v2626_v40 }
 0x448   : > { %3133 = vmatpush.msrb.mxu1 %v2806_v25  ;;  %v6547_v19 = vsel %vm425_vm0, %v2710_v31, %v2711_v29  ;;  %v2627_v25 = vrot.slane %v6536_v21, 7 }
 0x449   : > { %3215 = vmatpush.msrb.mxu2 %v2821_v57  ;;  %v2814_v57 = vld [vmem:[#allocation8 + $0xb0] sm:$0xff] }
 0x44a   : > { %3134 = vmatpush.msrb.mxu1 %v2805_v62  ;;  %v6555_v62 = vsel %vm2609_vm8, %v2626_v40, %v2627_v25 }
 0x44b   : > { %3216 = vmatpush.msrb.mxu2 %v2820_v35  ;;  %2908 = vmatmul.f32.gmra.mxu1 %v6438_v22  ;;  %v6558_v35 = vsel %vm425_vm0, %v2711_v29, %v2713_v63 }
 0x44c   : > { %2989 = vmatmul.f32.gmra.mxu2 %v6420_v50  ;;  %3135 = vmatpush.msrb.mxu1 %v2804_v42  ;;  %v2798_v42 = vld [vmem:[#allocation8 + $0x30] sm:$0xff] }
 0x44d   : > { %3070 = vmatmul.f32.gmra.mxu3 %v6441_v61  ;;  %3217 = vmatpush.msrb.mxu2 %v2819_v38  ;;  %v6564_v38 = vsel %vm2609_vm8, %v2627_v25, %v2573_v45  ;;  %v6607_v45 = vld [vmem:[#allocation2 + $0x38] sm:$0xff] }
 0x44e   : > { %3136 = vmatpush.msrb.mxu1 %v2803_v4  ;;  %v6571_v4 = vsel %vm425_vm0, %v2713_v63, %v2710_v31  ;;  %7599 = vst [vmem:[#allocation58_spill] sm:$0xff] %v6607_v45  ;;  %v2811_v31 = vld [vmem:[#allocation8 + $0x98] sm:$0xff]  ;;  %v2575_v29 = vrot.slane %v6607_v45, 7 }
 0x44f   : > { %3218 = vmatpush.msrb.mxu2 %v2818_v17  ;;  %v2630_v17 = vrot.slane %v6566_v27, 7 }
 0x450   : > { %3137 = vmatpush.msrb.mxu1 %v2802_v11  ;;  %v2715_v11 = vrot.slane %v6566_v27, 1 }
 0x451   : > { %3219 = vmatpush.msrb.mxu2 %v2817_v3  ;;  %v2716_v3 = vrot.slane %v6575_v23, 1  ;;  %v6583_v46 = vsel %vm2609_vm8, %v2574_v30, %v2630_v17 }
 0x452   : > { %3138 = vmatpush.msrb.mxu1 %v2801_v43  ;;  %v2631_v43 = vrot.slane %v6575_v23, 7  ;;  %v6610_v40 = vsel %vm425_vm0, %v2718_v5, %v2715_v11 }
 0x453   : > { %2911 = vmatmul.f32.gmra.mxu1 %v6447_v51  ;;  %3220 = vmatpush.msrb.mxu2 %v2816_v59  ;;  %v6586_v26 = vsel %vm425_vm0, %v2715_v11, %v2716_v3  ;;  %v6597_v59 = vsel %vm425_vm0, %v2716_v3, %v2718_v5  ;;  %7600 = vst [vmem:[#allocation23_spill] sm:$0xff] %v6610_v40  ;;  %v2810_v11 = vld [vmem:[#allocation8 + $0x90] sm:$0xff] }
 0x454   : > { %2992 = vmatmul.f32.gmra.mxu2 %v6418_v2  ;;  %3139 = vmatpush.msrb.mxu1 %v2800_v7  ;;  %v6594_v41 = vsel %vm2609_vm8, %v2630_v17, %v2631_v43  ;;  %7596 = vst [vmem:[#allocation20_spill] sm:$0xff] %v6597_v59  ;;  %v6603_v7 = vsel %vm2609_vm8, %v2631_v43, %v2574_v30 }
 0x455   : > { %3073 = vmatmul.f32.gmra.mxu3 %v6454_v52  ;;  %3221 = vmatpush.msrb.mxu2 %v2815_v8  ;;  %7597 = vst [vmem:[#allocation21_spill] sm:$0xff] %v6603_v7  ;;  %v6605_v8 = vld [vmem:[#allocation2 + $0xc0] sm:$0xff] }
 0x456   : > { %3140 = vmatpush.msrb.mxu1 %v2799_v6  ;;  %7598 = vst [vmem:[#allocation22_spill] sm:$0xff] %v6605_v8  ;;  %v6614_v6 = vld [vmem:[#allocation2 + $0x10] sm:$0xff]  ;;  %v2634_v25 = vrot.slane %v6605_v8, 7 }
 0x457   : > { %3222 = vmatpush.msrb.mxu2 %v2814_v57  ;;  %7601 = vst [vmem:[#allocation24_spill] sm:$0xff] %v6614_v6  ;;  %v2720_v57 = vrot.slane %v6605_v8, 1  ;;  %v2721_v63 = vrot.slane %v6614_v6, 1  ;;  %v2635_v17 = vrot.slane %v6614_v6, 7 }
 0x458   : > { %3141 = vmatpush.msrb.mxu1 %v2798_v42  ;;  %v2795_v42 = vld [vmem:[#allocation8 + $0x18] sm:$0xff] }
 0x459   : > { %3223 = vmatpush.msrb.mxu2 %v2813_v14  ;;  %v6622_v14 = vsel %vm2609_vm8, %v2575_v29, %v2634_v25  ;;  %v6625_v30 = vsel %vm425_vm0, %v2720_v57, %v2721_v63  ;;  %v6633_v43 = vsel %vm2609_vm8, %v2634_v25, %v2635_v17 }
 0x45a   : > { %3142 = vmatpush.msrb.mxu1 %v2797_v55  ;;  %7602 = vst [vmem:[#allocation25_spill] sm:$0xff] %v6622_v14  ;;  %v2723_v55 = vrot.slane %v6607_v45, 1 }
 0x45b   : > { %2913 = vmatmul.f32.gmra.mxu1 %v6466_v13  ;;  %3224 = vmatpush.msrb.mxu2 %v2812_v48  ;;  %7603 = vst [vmem:[#allocation26_spill] sm:$0xff] %v6625_v30  ;;  %v2794_v48 = vld [vmem:[#allocation8 + $0x10] sm:$0xff] }
 0x45c   : > { %2994 = vmatmul.f32.gmra.mxu2 %v6449_v0  ;;  %3143 = vmatpush.msrb.mxu1 %v2796_v20  ;;  %7604 = vst [vmem:[#allocation37_spill] sm:$0xff] %v6633_v43  ;;  %v6636_v5 = vsel %vm425_vm0, %v2721_v63, %v2723_v55  ;;  %v2839_v20 = vld [vmem:[#allocation8 + $0x178] sm:$0xff] }
 0x45d   : > { %3075 = vmatmul.f32.gmra.mxu3 %v6469_v56  ;;  %3225 = vmatpush.msrb.mxu2 %v2811_v31  ;;  %7605 = vst [vmem:[#allocation38_spill] sm:$0xff] %v6636_v5 }
 0x45e   : > { %3144 = vmatpush.msrb.mxu1 %v2795_v42  ;;  %3294 = vmatpush.msra.mxu3 %v2839_v20 }
 0x45f   : > { %3226 = vmatpush.msrb.mxu2 %v2810_v11  ;;  %v6642_v11 = vsel %vm2609_vm8, %v2635_v17, %v2575_v29  ;;  %v2809_v29 = vld [vmem:[#allocation8 + $0x88] sm:$0xff]  ;;  %v2836_v17 = vld [vmem:[#allocation8 + $0x160] sm:$0xff] }
 0x460   : > { %3145 = vmatpush.msrb.mxu1 %v2794_v48  ;;  %7606 = vst [vmem:[#allocation41_spill] sm:$0xff] %v6642_v11  ;;  %v2837_v48 = vld [vmem:[#allocation8 + $0x168] sm:$0xff] }
 0x461   : > { %3227 = vmatpush.msrb.mxu2 %v2809_v29  ;;  %v2833_v29 = vld [vmem:[#allocation8 + $0x148] sm:$0xff] }
 0x463   : > { %2916 = vmatmul.f32.gmra.mxu1 %v6477_v36 }
 0x464   : > { %2997 = vmatmul.f32.gmra.mxu2 %v6458_v58 }
 0x465   : > { %3078 = vmatmul.f32.gmra.mxu3 %v6480_v47 }
 0x46b   : > { %2919 = vmatmul.f32.gmra.mxu1 %v6486_v53 }
 0x46c   : > { %3000 = vmatmul.f32.gmra.mxu2 %v6451_v44 }
 0x46d   : > { %3081 = vmatmul.f32.gmra.mxu3 %v6493_v18 }
 0x473   : > { %2921 = vmatmul.f32.gmra.mxu1 %v6505_v1 }
 0x474   : > { %3002 = vmatmul.f32.gmra.mxu2 %v6488_v54 }
 0x475   : > { %3083 = vmatmul.f32.gmra.mxu3 %v6508_v49 }
 0x47b   : > { %2924 = vmatmul.f32.gmra.mxu1 %v6516_v12 }
 0x47c   : > { %3005 = vmatmul.f32.gmra.mxu2 %v6497_v34 }
 0x47d   : > { %3086 = vmatmul.f32.gmra.mxu3 %v6519_v9 }
 0x483   : > { %2927 = vmatmul.f32.gmra.mxu1 %v6525_v60 }
 0x484   : > { %3008 = vmatmul.f32.gmra.mxu2 %v6490_v32 }
 0x485   : > { %3089 = vmatmul.f32.gmra.mxu3 %v6532_v37 }
 0x48b   : > { %2929 = vmatmul.f32.gmra.mxu1 %v6544_v33 }
 0x48c   : > { %3010 = vmatmul.f32.gmra.mxu2 %v6527_v28 }
 0x48d   : > { %3091 = vmatmul.f32.gmra.mxu3 %v6547_v19 }
 0x493   : > { %2932 = vmatmul.f32.gmra.mxu1 %v6555_v62 }
 0x494   : > { %3013 = vmatmul.f32.gmra.mxu2 %v6536_v21 }
 0x495   : > { %3094 = vmatmul.f32.gmra.mxu3 %v6558_v35 }
 0x49b   : > { %2935 = vmatmul.f32.gmra.mxu1 %v6564_v38 }
 0x49c   : > { %3016 = vmatmul.f32.gmra.mxu2 %v6529_v24 }
 0x49d   : > { %3097 = vmatmul.f32.gmra.mxu3 %v6571_v4 }
 0x4a3   : > { %2937 = vmatmul.f32.gmra.mxu1 %v6583_v46 }
 0x4a4   : > { %3018 = vmatmul.f32.gmra.mxu2 %v6566_v27 }
 0x4a5   : > { %3099 = vmatmul.f32.gmra.mxu3 %v6586_v26 }
 0x4ab   : > { %2940 = vmatmul.f32.gmra.mxu1 %v6594_v41 }
 0x4ac   : > { %3021 = vmatmul.f32.gmra.mxu2 %v6575_v23 }
 0x4ad   : > { %3102 = vmatmul.f32.gmra.mxu3 %v6597_v59 }
 0x4b3   : > { %2943 = vmatmul.f32.gmra.mxu1 %v6603_v7 }
 0x4b4   : > { %3024 = vmatmul.f32.gmra.mxu2 %v6568_v15  ;;  %v2825_v15 = vld [vmem:[#allocation8 + $0x108] sm:$0xff] }
 0x4b5   : > { %3105 = vmatmul.f32.gmra.mxu3 %v6610_v40 }
 0x4bb   : > { %2945 = vmatmul.f32.gmra.mxu1 %v6622_v14 }
 0x4bc   : > { %3026 = vmatmul.f32.gmra.mxu2 %v6605_v8 }
 0x4bd   : > { %3107 = vmatmul.f32.gmra.mxu3 %v6625_v30  ;;  %v2838_v30 = vld [vmem:[#allocation8 + $0x170] sm:$0xff] }
 0x4be   : > { %3295 = vmatpush.msra.mxu3 %v2838_v30 }
 0x4c0   : > { %v2906_v3 = vpop.f32.mrf.mxu1  ;;  %3296 = vmatpush.msra.mxu3 %v2837_v48 }
 0x4c2   : > { %3297 = vmatpush.msra.mxu3 %v2836_v17 }
 0x4c3   : > { %2948 = vmatmul.f32.gmra.mxu1 %v6633_v43  ;;  %v6646_v43 = vld [vmem:[#allocation2 + $0x28] sm:$0xff] }
 0x4c4   : > { %3029 = vmatmul.f32.gmra.mxu2 %v6614_v6  ;;  %7607 = vst [vmem:[#allocation42_spill] sm:$0xff] %v6646_v43  ;;  %v6648_v6 = vld [vmem:[#allocation2 + $0xa0] sm:$0xff]  ;;  %v2638_v20 = vrot.slane %v6646_v43, 7 }
 0x4c5   : > { %3110 = vmatmul.f32.gmra.mxu3 %v6636_v5  ;;  %7608 = vst [vmem:[#allocation49_spill] sm:$0xff] %v6648_v6  ;;  %v6651_v5 = vsel %vm425_vm0, %v2723_v55, %v2720_v57  ;;  %v2576_v30 = vrot.slane %v6648_v6, 7  ;;  %v2725_v55 = vrot.slane %v6646_v43, 1 }
 0x4c6   : > { %7609 = vst [vmem:[#allocation50_spill] sm:$0xff] %v6651_v5 }
 0x4c7   : > { %v2987_v31 = vpop.f32.mrf.mxu2  ;;  %v6663_v40 = vsel %vm2609_vm8, %v2576_v30, %v2638_v20 }
 0x4c8   : > { %v2988_v42 = vadd.f32 %v2987_v31, %v2906_v3  ;;  %v2909_v8 = vpop.f32.mrf.mxu1  ;;  %v3068_v25 = vpop.f32.mrf.mxu3  ;;  %v6655_v3 = vld [vmem:[#allocation2 + $0x90] sm:$0xff]  ;;  %v2835_v31 = vld [vmem:[#allocation8 + $0x158] sm:$0xff]  ;;  %7611 = vst [vmem:[#allocation28_spill] sm:$0xff] %v6663_v40 }
 0x4c9   : > { %7610 = vst [vmem:[#allocation27_spill] sm:$0xff] %v6655_v3  ;;  %3298 = vmatpush.msra.mxu3 %v2835_v31  ;;  %v2639_v31 = vrot.slane %v6655_v3, 7 }
 0x4ca   : > { %v6644_v63 = vadd.f32 %v3068_v25, %v2988_v42  ;;  %v2726_v42 = vrot.slane %v6655_v3, 1  ;;  %v2793_v25 = vld [vmem:[#allocation8 + $0x8] sm:$0xff] }
 0x4cb   : > { %2951 = vmatmul.f32.gmra.mxu1 %v6642_v11 }
 0x4cc   : > { %3032 = vmatmul.f32.gmra.mxu2 %v6607_v45  ;;  %3146 = vmatpush.msrb.mxu1 %v2793_v25  ;;  %v2834_v45 = vld [vmem:[#allocation8 + $0x150] sm:$0xff] }
 0x4cd   : > { %3113 = vmatmul.f32.gmra.mxu3 %v6651_v5  ;;  %v6668_v5 = vsel %vm425_vm0, %v2725_v55, %v2726_v42  ;;  %v2830_v25 = vld [vmem:[#allocation8 + $0x130] sm:$0xff] }
 0x4ce   : > { %3299 = vmatpush.msra.mxu3 %v2834_v45  ;;  %7613 = vst [vmem:[#allocation54_spill] sm:$0xff] %v6668_v5  ;;  %v2728_v45 = vrot.slane %v6648_v6, 1 }
 0x4cf   : > { %v2990_v57 = vpop.f32.mrf.mxu2 }
 0x4d0   : > { %v2991_v48 = vadd.f32 %v2990_v57, %v2909_v8  ;;  %v2912_v11 = vpop.f32.mrf.mxu1  ;;  %v3071_v14 = vpop.f32.mrf.mxu3  ;;  %3300 = vmatpush.msra.mxu3 %v2833_v29  ;;  %v2832_v8 = vld [vmem:[#allocation8 + $0x140] sm:$0xff]  ;;  %v6676_v29 = vsel %vm2609_vm8, %v2638_v20, %v2639_v31 }
 0x4d1   : > { %v2831_v11 = vld [vmem:[#allocation8 + $0x138] sm:$0xff]  ;;  %7614 = vst [vmem:[#allocation29_spill] sm:$0xff] %v6676_v29 }
 0x4d2   : > { %v6665_v17 = vadd.f32 %v3071_v14, %v2991_v48  ;;  %3301 = vmatpush.msra.mxu3 %v2832_v8  ;;  %v2808_v14 = vld [vmem:[#allocation8 + $0x80] sm:$0xff] }
 0x4d3   : > { %2953 = vmatmul.f32.gmra.mxu1 %v6663_v40  ;;  %3228 = vmatpush.msrb.mxu2 %v2808_v14  ;;  %v6679_v40 = vsel %vm425_vm0, %v2726_v42, %v2728_v45  ;;  %v2792_v8 = vld [vmem:[#allocation8] sm:$0xff]  ;;  %v2826_v14 = vld [vmem:[#allocation8 + $0x110] sm:$0xff]  ;;  %v6685_v42 = vsel %vm2609_vm8, %v2639_v31, %v2576_v30 }
 0x4d4   : > { %7612 = vst [vmem:[#allocation53_spill] sm:$0xff] %v6665_v17  ;;  %3034 = vmatmul.f32.gmra.mxu2 %v6646_v43  ;;  %3302 = vmatpush.msra.mxu3 %v2831_v11  ;;  %v2829_v43 = vld [vmem:[#allocation8 + $0x128] sm:$0xff]  ;;  %v2828_v11 = vld [vmem:[#allocation8 + $0x120] sm:$0xff] }
 0x4d5   : > { %3115 = vmatmul.f32.gmra.mxu3 %v6668_v5  ;;  %7615 = vst [vmem:[#allocation59_spill] sm:$0xff] %v6679_v40  ;;  %3147 = vmatpush.msrb.mxu1 %v2792_v8  ;;  %v6690_v8 = vsel %vm425_vm0, %v2728_v45, %v2725_v55 }
 0x4d6   : > { %3303 = vmatpush.msra.mxu3 %v2830_v25  ;;  %7616 = vst [vmem:[#allocation60_spill] sm:$0xff] %v6685_v42 }
 0x4d7   : > { %v2993_v57 = vpop.f32.mrf.mxu2  ;;  %7618 = vst [vmem:[#allocation87_spill] sm:$0xff] %v6690_v8 }
 0x4d8   : > { %v2914_v48 = vpop.f32.mrf.mxu1  ;;  %v3074_v17 = vpop.f32.mrf.mxu3  ;;  %3304 = vmatpush.msra.mxu3 %v2829_v43 }
 0x4d9   : > { %v2827_v17 = vld [vmem:[#allocation8 + $0x118] sm:$0xff] }
 0x4da   : > { %3305 = vmatpush.msra.mxu3 %v2828_v11  ;;  %v3423_v11 = vld [vmem:[#allocation8 + $0x478] sm:$0xff] }
 0x4db   : > { %2956 = vmatmul.f32.gmra.mxu1 %v6676_v29  ;;  %v2555_v29 = vld [vmem:[#allocation2 + $0x98] sm:$0xff]  ;;  %3586 = vmatpush.msra.mxu2 %v3423_v11 }
 0x4dc   : > { %3037 = vmatmul.f32.gmra.mxu2 %v6655_v3  ;;  %3306 = vmatpush.msra.mxu3 %v2827_v17  ;;  %v2553_v3 = vld [vmem:[#allocation2 + $0x58] sm:$0xff]  ;;  %v2824_v17 = vld [vmem:[#allocation8 + $0x100] sm:$0xff] }
 0x4dd   : > { %3118 = vmatmul.f32.gmra.mxu3 %v6679_v40  ;;  %v2642_v30 = vrot.slane %v2553_v3, 7  ;;  %v2730_v31 = vrot.slane %v2553_v3, 1 }
 0x4de   : > { %3307 = vmatpush.msra.mxu3 %v2826_v14  ;;  %v3407_v14 = vld [vmem:[#allocation8 + $0x3f8] sm:$0xff] }
 0x4df   : > { %v2995_v20 = vpop.f32.mrf.mxu2  ;;  %3505 = vmatpush.msra.mxu1 %v3407_v14 }
 0x4e0   : > { %v2996_v57 = vadd.f32 %v2995_v20, %v2914_v48  ;;  %v2917_v25 = vpop.f32.mrf.mxu1  ;;  %v3076_v5 = vpop.f32.mrf.mxu3  ;;  %3308 = vmatpush.msra.mxu3 %v2825_v15  ;;  %v2554_v48 = vld [vmem:[#allocation2 + $0xd0] sm:$0xff]  ;;  %v2577_v20 = vrot.slane %v2555_v29, 7 }
 0x4e1   : > { %v2643_v11 = vrot.slane %v2554_v48, 7 }
 0x4e2   : > { %v6687_v43 = vadd.f32 %v3076_v5, %v2996_v57  ;;  %3309 = vmatpush.msra.mxu3 %v2824_v17  ;;  %v2731_v57 = vrot.slane %v2554_v48, 1 }
 0x4e3   : > { %2959 = vmatmul.f32.gmra.mxu1 %v6685_v42  ;;  %v6696_v42 = vsel %vm2609_vm8, %v2577_v20, %v2642_v30 }
 0x4e4   : > { %7617 = vst [vmem:[#allocation117_spill] sm:$0xff] %v6687_v43  ;;  %3040 = vmatmul.f32.gmra.mxu2 %v6648_v6  ;;  %v6701_v40 = vsel %vm425_vm0, %v2730_v31, %v2731_v57  ;;  %v3420_v43 = vld [vmem:[#allocation8 + $0x460] sm:$0xff] }
 0x4e5   : > { %3121 = vmatmul.f32.gmra.mxu3 %v6690_v8  ;;  %7619 = vst [vmem:[#allocation52_spill] sm:$0xff] %v6696_v42  ;;  %v2733_v8 = vrot.slane %v2555_v29, 1 }
 0x4e6   : > { %7621 = vst [vmem:[#allocation64_spill] sm:$0xff] %v6701_v40 }
 0x4e7   : > { %v2998_v5 = vpop.f32.mrf.mxu2 }
 0x4e8   : > { %v2999_v55 = vadd.f32 %v2998_v5, %v2917_v25  ;;  %v2920_v15 = vpop.f32.mrf.mxu1  ;;  %v3079_v45 = vpop.f32.mrf.mxu3  ;;  %v3422_v25 = vld [vmem:[#allocation8 + $0x470] sm:$0xff] }
 0x4e9   : > { %v6706_v15 = vsel %vm2609_vm8, %v2642_v30, %v2643_v11  ;;  %3587 = vmatpush.msra.mxu2 %v3422_v25  ;;  %v2529_v25 = vld [vmem:[#allocation2 + $0xb0] sm:$0xff] }
 0x4ea   : > { %v6698_v6 = vadd.f32 %v3079_v45, %v2999_v55  ;;  %7622 = vst [vmem:[#allocation32_spill] sm:$0xff] %v6706_v15  ;;  %v6709_v55 = vsel %vm425_vm0, %v2731_v57, %v2733_v8  ;;  %v3406_v45 = vld [vmem:[#allocation8 + $0x3f0] sm:$0xff]  ;;  %v6719_v57 = vsel %vm425_vm0, %v2733_v8, %v2730_v31 }
 0x4eb   : > { %2961 = vmatmul.f32.gmra.mxu1 %v6696_v42  ;;  %7623 = vst [vmem:[#allocation118_spill] sm:$0xff] %v6709_v55 }
 0x4ec   : > { %7620 = vst [vmem:[#allocation63_spill] sm:$0xff] %v6698_v6  ;;  %3042 = vmatmul.f32.gmra.mxu2 %v2553_v3  ;;  %3506 = vmatpush.msra.mxu1 %v3406_v45  ;;  %v2531_v6 = vld [vmem:[#allocation2 + $0xd8] sm:$0xff] }
 0x4ed   : > { %3123 = vmatmul.f32.gmra.mxu3 %v6701_v40  ;;  %7626 = vst [vmem:[#allocation56_spill] sm:$0xff] %v6719_v57  ;;  %v3421_v45 = vld [vmem:[#allocation8 + $0x468] sm:$0xff] }
 0x4ee   : > { %3588 = vmatpush.msra.mxu2 %v3421_v45 }
 0x4ef   : > { %v3001_v17 = vpop.f32.mrf.mxu2 }
 0x4f0   : > { %v2922_v5 = vpop.f32.mrf.mxu1  ;;  %v3082_v14 = vpop.f32.mrf.mxu3  ;;  %3589 = vmatpush.msra.mxu2 %v3420_v43  ;;  %v3419_v43 = vld [vmem:[#allocation8 + $0x458] sm:$0xff] }
 0x4f1   : > { %v6714_v14 = vsel %vm2609_vm8, %v2643_v11, %v2577_v20  ;;  %v2690_v20 = vrot.slane %v2529_v25, 1 }
 0x4f2   : > { %7624 = vst [vmem:[#allocation31_spill] sm:$0xff] %v6714_v14  ;;  %3590 = vmatpush.msra.mxu2 %v3419_v43 }
 0x4f3   : > { %2964 = vmatmul.f32.gmra.mxu1 %v6706_v15  ;;  %v2610_v15 = vrot.slane %v2529_v25, 7 }
 0x4f4   : > { %3045 = vmatmul.f32.gmra.mxu2 %v2554_v48  ;;  %v2530_v48 = vld [vmem:[#allocation2] sm:$0xff] }
 0x4f5   : > { %3126 = vmatmul.f32.gmra.mxu3 %v6709_v55  ;;  %v2569_v55 = vrot.slane %v2531_v6, 7  ;;  %v2691_v11 = vrot.slane %v2530_v48, 1 }
 0x4f7   : > { %v3003_v3 = vpop.f32.mrf.mxu2  ;;  %v2680_v8 = vsel %vm2609_vm8, %v2569_v55, %v2610_v15 }
 0x4f8   : > { %v3004_v17 = vadd.f32 %v3003_v3, %v2922_v5  ;;  %v2925_v40 = vpop.f32.mrf.mxu1  ;;  %v3084_v42 = vpop.f32.mrf.mxu3 }
 0x4fa   : > { %v6716_v30 = vadd.f32 %v3084_v42, %v3004_v17  ;;  %v3405_v42 = vld [vmem:[#allocation8 + $0x3e8] sm:$0xff] }
 0x4fb   : > { %2967 = vmatmul.f32.gmra.mxu1 %v6714_v14  ;;  %v2611_v14 = vrot.slane %v2530_v48, 7 }
 0x4fc   : > { %7625 = vst [vmem:[#allocation89_spill] sm:$0xff] %v6716_v30  ;;  %3048 = vmatmul.f32.gmra.mxu2 %v2555_v29  ;;  %3507 = vmatpush.msra.mxu1 %v3405_v42  ;;  %v2692_v29 = vsel %vm425_vm0, %v2690_v20, %v2691_v11 }
 0x4fd   : > { %3129 = vmatmul.f32.gmra.mxu3 %v6719_v57  ;;  %v2693_v57 = vrot.slane %v2531_v6, 1 }
 0x4ff   : > { %v3006_v5 = vpop.f32.mrf.mxu2 }
 0x500   : > { %v3007_v3 = vadd.f32 %v3006_v5, %v2925_v40  ;;  %v2928_v17 = vpop.f32.mrf.mxu1  ;;  %v3087_v30 = vpop.f32.mrf.mxu3  ;;  %v2612_v40 = vsel %vm2609_vm8, %v2610_v15, %v2611_v14  ;;  %v2694_v5 = vsel %vm425_vm0, %v2691_v11, %v2693_v57 }
 0x502   : > { %v6724_v31 = vadd.f32 %v3087_v30, %v3007_v3  ;;  %v3404_v30 = vld [vmem:[#allocation8 + $0x3e0] sm:$0xff] }
 0x503   : > { %3148 = vmatmul.f32.vlgmr.msrb.gmra.mxu1 %v2680_v8  ;;  %v2613_v8 = vsel %vm2609_vm8, %v2611_v14, %v2569_v55  ;;  %v3418_v14 = vld [vmem:[#allocation8 + $0x450] sm:$0xff] }
 0x504   : > { %3229 = vmatmul.f32.vlgmr.msrb.gmra.mxu2 %v2529_v25  ;;  %3508 = vmatpush.msra.mxu1 %v3404_v30 }
 0x505   : > { %3310 = vmatmul.f32.vlgmr.msra.gmra.mxu3 %v2692_v29  ;;  %3591 = vmatpush.msra.mxu2 %v3418_v14 }
 0x507   : > { %v3009_v45 = vpop.f32.mrf.mxu2 }
 0x508   : > { %v2930_v7 = vpop.f32.mrf.mxu1  ;;  %v3090_v59 = vpop.f32.mrf.mxu3 }
 0x509   : > { %v2780_v59 = vsel %vm425_vm0, %v2693_v57, %v2690_v20  ;;  %v3402_v20 = vld [vmem:[#allocation8 + $0x3d0] sm:$0xff] }
 0x50b   : > { %3151 = vmatmul.f32.gmra.mxu1 %v2612_v40 }
 0x50c   : > { %3232 = vmatmul.f32.gmra.mxu2 %v2530_v48  ;;  %v3403_v48 = vld [vmem:[#allocation8 + $0x3d8] sm:$0xff] }
 0x50d   : > { %3313 = vmatmul.f32.gmra.mxu3 %v2694_v5  ;;  %3509 = vmatpush.msra.mxu1 %v3403_v48 }
 0x50f   : > { %v3011_v42 = vpop.f32.mrf.mxu2  ;;  %3510 = vmatpush.msra.mxu1 %v3402_v20 }
 0x510   : > { %v3012_v3 = vadd.f32 %v3011_v42, %v2930_v7  ;;  %v2933_v25 = vpop.f32.mrf.mxu1  ;;  %v3092_v17 = vpop.f32.mrf.mxu3 }
 0x512   : > { %v6730_v29 = vadd.f32 %v3092_v17, %v3012_v3 }
 0x513   : > { %3154 = vmatmul.f32.gmra.mxu1 %v2613_v8 }
 0x514   : > { %3235 = vmatmul.f32.gmra.mxu2 %v2531_v6 }
 0x515   : > { %3316 = vmatmul.f32.gmra.mxu3 %v2780_v59 }
 0x517   : > { %v3014_v15 = vpop.f32.mrf.mxu2 }
 0x518   : > { %v3015_v11 = vadd.f32 %v3014_v15, %v2933_v25  ;;  %v2936_v45 = vpop.f32.mrf.mxu1  ;;  %v3095_v40 = vpop.f32.mrf.mxu3 }
 0x519   : > { %v3415_v45 = vld [vmem:[#allocation8 + $0x438] sm:$0xff] }
 0x51a   : > { %v6733_v7 = vadd.f32 %v3095_v40, %v3015_v11 }
 0x51b   : > { %3156 = vmatmul.f32.gmra.mxu1 %v6427_v39 }
 0x51c   : > { %3237 = vmatmul.f32.gmra.mxu2 %v6416_v10 }
 0x51d   : > { %3318 = vmatmul.f32.gmra.mxu3 %v6430_v16  ;;  %v3417_v16 = vld [vmem:[#allocation8 + $0x448] sm:$0xff] }
 0x51e   : > { %3592 = vmatpush.msra.mxu2 %v3417_v16 }
 0x51f   : > { %v3017_v55 = vpop.f32.mrf.mxu2 }
 0x520   : > { %v2938_v6 = vpop.f32.mrf.mxu1  ;;  %v3098_v57 = vpop.f32.mrf.mxu3 }
 0x523   : > { %3159 = vmatmul.f32.gmra.mxu1 %v6438_v22 }
 0x524   : > { %3240 = vmatmul.f32.gmra.mxu2 %v6420_v50  ;;  %v3401_v50 = vld [vmem:[#allocation8 + $0x3c8] sm:$0xff] }
 0x525   : > { %3321 = vmatmul.f32.gmra.mxu3 %v6441_v61  ;;  %3511 = vmatpush.msra.mxu1 %v3401_v50 }
 0x527   : > { %v3019_v5 = vpop.f32.mrf.mxu2 }
 0x528   : > { %v3020_v30 = vadd.f32 %v3019_v5, %v2938_v6  ;;  %v2941_v39 = vpop.f32.mrf.mxu1  ;;  %v3100_v42 = vpop.f32.mrf.mxu3 }
 0x52a   : > { %v6741_v10 = vadd.f32 %v3100_v42, %v3020_v30 }
 0x52b   : > { %3162 = vmatmul.f32.gmra.mxu1 %v6447_v51 }
 0x52c   : > { %3243 = vmatmul.f32.gmra.mxu2 %v6418_v2  ;;  %v3416_v2 = vld [vmem:[#allocation8 + $0x440] sm:$0xff] }
 0x52d   : > { %3324 = vmatmul.f32.gmra.mxu3 %v6454_v52  ;;  %3593 = vmatpush.msra.mxu2 %v3416_v2  ;;  %v3400_v52 = vld [vmem:[#allocation8 + $0x3c0] sm:$0xff] }
 0x52e   : > { %3512 = vmatpush.msra.mxu1 %v3400_v52 }
 0x52f   : > { %v3022_v22 = vpop.f32.mrf.mxu2  ;;  %3594 = vmatpush.msra.mxu2 %v3415_v45 }
 0x530   : > { %v3023_v3 = vadd.f32 %v3022_v22, %v2941_v39  ;;  %v2944_v25 = vpop.f32.mrf.mxu1  ;;  %v3103_v61 = vpop.f32.mrf.mxu3  ;;  %v3398_v39 = vld [vmem:[#allocation8 + $0x3b0] sm:$0xff] }
 0x532   : > { %v6746_v17 = vadd.f32 %v3103_v61, %v3023_v3  ;;  %v3413_v3 = vld [vmem:[#allocation8 + $0x428] sm:$0xff] }
 0x533   : > { %3164 = vmatmul.f32.gmra.mxu1 %v6466_v13 }
 0x534   : > { %3245 = vmatmul.f32.gmra.mxu2 %v6449_v0 }
 0x535   : > { %3326 = vmatmul.f32.gmra.mxu3 %v6469_v56 }
 0x537   : > { %v3025_v51 = vpop.f32.mrf.mxu2 }
 0x538   : > { %v2946_v8 = vpop.f32.mrf.mxu1  ;;  %v3106_v59 = vpop.f32.mrf.mxu3 }
 0x53b   : > { %3167 = vmatmul.f32.gmra.mxu1 %v6477_v36 }
 0x53c   : > { %3248 = vmatmul.f32.gmra.mxu2 %v6458_v58  ;;  %v3399_v58 = vld [vmem:[#allocation8 + $0x3b8] sm:$0xff] }
 0x53d   : > { %3329 = vmatmul.f32.gmra.mxu3 %v6480_v47  ;;  %3513 = vmatpush.msra.mxu1 %v3399_v58  ;;  %v3411_v58 = vld [vmem:[#allocation8 + $0x418] sm:$0xff] }
 0x53f   : > { %v3027_v43 = vpop.f32.mrf.mxu2  ;;  %3514 = vmatpush.msra.mxu1 %v3398_v39 }
 0x540   : > { %v3028_v15 = vadd.f32 %v3027_v43, %v2946_v8  ;;  %v2949_v48 = vpop.f32.mrf.mxu1  ;;  %v3108_v11 = vpop.f32.mrf.mxu3 }
 0x542   : > { %v6754_v0 = vadd.f32 %v3108_v11, %v3028_v15  ;;  %v3396_v15 = vld [vmem:[#allocation8 + $0x3a0] sm:$0xff] }
 0x543   : > { %3170 = vmatmul.f32.gmra.mxu1 %v6486_v53 }
 0x544   : > { %3251 = vmatmul.f32.gmra.mxu2 %v6451_v44  ;;  %v3414_v44 = vld [vmem:[#allocation8 + $0x430] sm:$0xff] }
 0x545   : > { %3332 = vmatmul.f32.gmra.mxu3 %v6493_v18  ;;  %3595 = vmatpush.msra.mxu2 %v3414_v44 }
 0x547   : > { %v3030_v40 = vpop.f32.mrf.mxu2  ;;  %3596 = vmatpush.msra.mxu2 %v3413_v3 }
 0x548   : > { %v3031_v55 = vadd.f32 %v3030_v40, %v2949_v48  ;;  %v2952_v14 = vpop.f32.mrf.mxu1  ;;  %v3111_v6 = vpop.f32.mrf.mxu3 }
 0x54a   : > { %v6759_v57 = vadd.f32 %v3111_v6, %v3031_v55 }
 0x54b   : > { %3172 = vmatmul.f32.gmra.mxu1 %v6505_v1 }
 0x54c   : > { %3253 = vmatmul.f32.gmra.mxu2 %v6488_v54 }
 0x54d   : > { %3334 = vmatmul.f32.gmra.mxu3 %v6508_v49 }
 0x54f   : > { %v3033_v20 = vpop.f32.mrf.mxu2 }
 0x550   : > { %v2954_v5 = vpop.f32.mrf.mxu1  ;;  %v3114_v30 = vpop.f32.mrf.mxu3 }
 0x553   : > { %3175 = vmatmul.f32.gmra.mxu1 %v6516_v12 }
 0x554   : > { %3256 = vmatmul.f32.gmra.mxu2 %v6497_v34  ;;  %v3397_v34 = vld [vmem:[#allocation8 + $0x3a8] sm:$0xff] }
 0x555   : > { %3337 = vmatmul.f32.gmra.mxu3 %v6519_v9  ;;  %3515 = vmatpush.msra.mxu1 %v3397_v34 }
 0x557   : > { %v3035_v42 = vpop.f32.mrf.mxu2  ;;  %3516 = vmatpush.msra.mxu1 %v3396_v15 }
 0x558   : > { %v3036_v16 = vadd.f32 %v3035_v42, %v2954_v5  ;;  %v2957_v22 = vpop.f32.mrf.mxu1  ;;  %v3116_v50 = vpop.f32.mrf.mxu3  ;;  %v3394_v42 = vld [vmem:[#allocation8 + $0x390] sm:$0xff] }
 0x55a   : > { %v6767_v54 = vadd.f32 %v3116_v50, %v3036_v16 }
 0x55b   : > { %3178 = vmatmul.f32.gmra.mxu1 %v6525_v60 }
 0x55c   : > { %3259 = vmatmul.f32.gmra.mxu2 %v6490_v32  ;;  %v3412_v32 = vld [vmem:[#allocation8 + $0x420] sm:$0xff] }
 0x55d   : > { %3340 = vmatmul.f32.gmra.mxu3 %v6532_v37  ;;  %3597 = vmatpush.msra.mxu2 %v3412_v32 }
 0x55f   : > { %v3038_v25 = vpop.f32.mrf.mxu2  ;;  %3598 = vmatpush.msra.mxu2 %v3411_v58 }
 0x560   : > { %v3039_v61 = vadd.f32 %v3038_v25, %v2957_v22  ;;  %v2960_v51 = vpop.f32.mrf.mxu1  ;;  %v3119_v2 = vpop.f32.mrf.mxu3  ;;  %v7627_v22 = vld [vmem:[#allocation20_spill] sm:$0xff] }
 0x561   : > { %v7628_v51 = vld [vmem:[#allocation21_spill] sm:$0xff] }
 0x562   : > { %v6772_v8 = vadd.f32 %v3119_v2, %v3039_v61  ;;  %v3390_v61 = vld [vmem:[#allocation8 + $0x370] sm:$0xff]  ;;  %v3409_v2 = vld [vmem:[#allocation8 + $0x408] sm:$0xff] }
 0x563   : > { %3180 = vmatmul.f32.gmra.mxu1 %v6544_v33 }
 0x564   : > { %3261 = vmatmul.f32.gmra.mxu2 %v6527_v28 }
 0x565   : > { %3342 = vmatmul.f32.gmra.mxu3 %v6547_v19 }
 0x567   : > { %v3041_v59 = vpop.f32.mrf.mxu2 }
 0x568   : > { %v2962_v52 = vpop.f32.mrf.mxu1  ;;  %v3122_v43 = vpop.f32.mrf.mxu3  ;;  %v7630_v59 = vld [vmem:[#allocation53_spill] sm:$0xff] }
 0x569   : > { %v3388_v43 = vld [vmem:[#allocation8 + $0x360] sm:$0xff] }
 0x56b   : > { %3183 = vmatmul.f32.gmra.mxu1 %v6555_v62 }
 0x56c   : > { %3264 = vmatmul.f32.gmra.mxu2 %v6536_v21  ;;  %v3395_v21 = vld [vmem:[#allocation8 + $0x398] sm:$0xff] }
 0x56d   : > { %3345 = vmatmul.f32.gmra.mxu3 %v6558_v35  ;;  %3517 = vmatpush.msra.mxu1 %v3395_v21  ;;  %v7632_v21 = vld [vmem:[#allocation25_spill] sm:$0xff] }
 0x56f   : > { %v3043_v48 = vpop.f32.mrf.mxu2  ;;  %3518 = vmatpush.msra.mxu1 %v3394_v42 }
 0x570   : > { %v3044_v11 = vadd.f32 %v3043_v48, %v2962_v52  ;;  %v2965_v45 = vpop.f32.mrf.mxu1  ;;  %v3124_v40 = vpop.f32.mrf.mxu3  ;;  %v7631_v52 = vld [vmem:[#allocation23_spill] sm:$0xff]  ;;  %v3393_v48 = vld [vmem:[#allocation8 + $0x388] sm:$0xff] }
 0x571   : > { %3519 = vmatpush.msra.mxu1 %v3393_v48  ;;  %v3379_v48 = vld [vmem:[#allocation8 + $0x318] sm:$0xff] }
 0x572   : > { %v6780_v28 = vadd.f32 %v3124_v40, %v3044_v11 }
 0x573   : > { %3186 = vmatmul.f32.gmra.mxu1 %v6564_v38 }
 0x574   : > { %3267 = vmatmul.f32.gmra.mxu2 %v6529_v24  ;;  %v3410_v24 = vld [vmem:[#allocation8 + $0x410] sm:$0xff] }
 0x575   : > { %3348 = vmatmul.f32.gmra.mxu3 %v6571_v4  ;;  %3599 = vmatpush.msra.mxu2 %v3410_v24 }
 0x577   : > { %v3046_v55 = vpop.f32.mrf.mxu2  ;;  %3600 = vmatpush.msra.mxu2 %v3409_v2  ;;  %v7637_v2 = vld [vmem:[#allocation117_spill] sm:$0xff] }
 0x578   : > { %v3047_v14 = vadd.f32 %v3046_v55, %v2965_v45  ;;  %v2968_v6 = vpop.f32.mrf.mxu1  ;;  %v3127_v20 = vpop.f32.mrf.mxu3  ;;  %v3387_v45 = vld [vmem:[#allocation8 + $0x358] sm:$0xff]  ;;  %v3386_v55 = vld [vmem:[#allocation8 + $0x350] sm:$0xff] }
 0x579   : > { %v3385_v6 = vld [vmem:[#allocation8 + $0x348] sm:$0xff] }
 0x57a   : > { %v6785_v44 = vadd.f32 %v3127_v20, %v3047_v14  ;;  %v7633_v14 = vld [vmem:[#allocation22_spill] sm:$0xff] }
 0x57b   : > { %3188 = vmatmul.f32.gmra.mxu1 %v6583_v46  ;;  %v7634_v20 = vld [vmem:[#allocation26_spill] sm:$0xff] }
 0x57c   : > { %3269 = vmatmul.f32.gmra.mxu2 %v6566_v27  ;;  %v3391_v27 = vld [vmem:[#allocation8 + $0x378] sm:$0xff] }
 0x57d   : > { %3350 = vmatmul.f32.gmra.mxu3 %v6586_v26  ;;  %3424 = vmatpush.msra.mxu0 %v3391_v27 }
 0x57e   : > { %4429 = vmatpush.msrb.mxu3 %v3391_v27  ;;  %v7635_v27 = vld [vmem:[#allocation37_spill] sm:$0xff] }
 0x57f   : > { %v3049_v5 = vpop.f32.mrf.mxu2  ;;  %3425 = vmatpush.msra.mxu0 %v3390_v61 }
 0x580   : > { %v3130_v30 = vpop.f32.mrf.mxu3  ;;  %v3149_v39 = vpop.f32.mrf.mxu1  ;;  %4430 = vmatpush.msrb.mxu3 %v3390_v61  ;;  %v3384_v5 = vld [vmem:[#allocation8 + $0x340] sm:$0xff] }
 0x581   : > { %v3150_v16 = vadd.f32 %v3149_v39, %v6644_v63  ;;  %v3389_v63 = vld [vmem:[#allocation8 + $0x368] sm:$0xff]  ;;  %v3408_v30 = vld [vmem:[#allocation8 + $0x400] sm:$0xff]  ;;  %v3383_v39 = vld [vmem:[#allocation8 + $0x338] sm:$0xff] }
 0x582   : > { %3426 = vmatpush.msra.mxu0 %v3389_v63  ;;  %4431 = vmatpush.msrb.mxu3 %v3389_v63  ;;  %v3392_v61 = vld [vmem:[#allocation8 + $0x380] sm:$0xff] }
 0x583   : > { %3191 = vmatmul.f32.gmra.mxu1 %v6594_v41  ;;  %3601 = vmatpush.msra.mxu2 %v3408_v30  ;;  %v7641_v30 = vld [vmem:[#allocation63_spill] sm:$0xff] }
 0x584   : > { %3272 = vmatmul.f32.gmra.mxu2 %v6575_v23  ;;  %v7629_v23 = vld [vmem:[#allocation48_spill] sm:$0xff]  ;;  %3427 = vmatpush.msra.mxu0 %v3388_v43 }
 0x585   : > { %3353 = vmatmul.f32.gmra.mxu3 %v7627_v22  ;;  %3520 = vmatpush.msra.mxu1 %v3392_v61 }
 0x586   : > { %3428 = vmatpush.msra.mxu0 %v3387_v45  ;;  %4432 = vmatpush.msrb.mxu3 %v3388_v43 }
 0x587   : > { %v3230_v50 = vpop.f32.mrf.mxu2 }
 0x588   : > { %v6794_v3 = vadd.f32 %v3230_v50, %v3150_v16  ;;  %v3152_v25 = vpop.f32.mrf.mxu1  ;;  %v6796_v34 = vpop.f32.mrf.mxu3  ;;  %3429 = vmatpush.msra.mxu0 %v3386_v55  ;;  %4433 = vmatpush.msrb.mxu3 %v3387_v45  ;;  %v3382_v50 = vld [vmem:[#allocation8 + $0x330] sm:$0xff] }
 0x589   : > { %v3153_v32 = vadd.f32 %v3152_v25, %v7630_v59  ;;  %v7636_v25 = vld [vmem:[#allocation24_spill] sm:$0xff]  ;;  %v7638_v59 = vld [vmem:[#allocation38_spill] sm:$0xff] }
 0x58a   : > { %3430 = vmatpush.msra.mxu0 %v3385_v6  ;;  %4434 = vmatpush.msrb.mxu3 %v3386_v55 }
 0x58b   : > { %3194 = vmatmul.f32.gmra.mxu1 %v7628_v51 }
 0x58c   : > { %3275 = vmatmul.f32.gmra.mxu2 %v7629_v23  ;;  %3431 = vmatpush.msra.mxu0 %v3384_v5  ;;  %v3381_v23 = vld [vmem:[#allocation8 + $0x328] sm:$0xff] }
 0x58d   : > { %3356 = vmatmul.f32.gmra.mxu3 %v7631_v52 }
 0x58e   : > { %4435 = vmatpush.msrb.mxu3 %v3385_v6  ;;  %3432 = vmatpush.msra.mxu0 %v3383_v39  ;;  %v7639_v6 = vld [vmem:[#allocation41_spill] sm:$0xff] }
 0x58f   : > { %v3233_v15 = vpop.f32.mrf.mxu2 }
 0x590   : > { %v6802_v11 = vadd.f32 %v3233_v15, %v3153_v32  ;;  %v3155_v40 = vpop.f32.mrf.mxu1  ;;  %v6804_v58 = vpop.f32.mrf.mxu3  ;;  %4436 = vmatpush.msrb.mxu3 %v3384_v5  ;;  %3433 = vmatpush.msra.mxu0 %v3382_v50  ;;  %v3380_v32 = vld [vmem:[#allocation8 + $0x320] sm:$0xff]  ;;  %v7640_v5 = vld [vmem:[#allocation58_spill] sm:$0xff] }
 0x592   : > { %3434 = vmatpush.msra.mxu0 %v3381_v23  ;;  %4437 = vmatpush.msrb.mxu3 %v3383_v39 }
 0x593   : > { %3196 = vmatmul.f32.gmra.mxu1 %v7632_v21 }
 0x594   : > { %3277 = vmatmul.f32.gmra.mxu2 %v7633_v14  ;;  %3435 = vmatpush.msra.mxu0 %v3380_v32  ;;  %v3378_v14 = vld [vmem:[#allocation8 + $0x310] sm:$0xff] }
 0x595   : > { %3358 = vmatmul.f32.gmra.mxu3 %v7634_v20 }
 0x596   : > { %3436 = vmatpush.msra.mxu0 %v3379_v48  ;;  %4438 = vmatpush.msrb.mxu3 %v3382_v50 }
 0x597   : > { %v3236_v24 = vpop.f32.mrf.mxu2 }
 0x598   : > { %v3157_v42 = vpop.f32.mrf.mxu1  ;;  %v3317_v16 = vpop.f32.mrf.mxu3  ;;  %3437 = vmatpush.msra.mxu0 %v3378_v14  ;;  %4439 = vmatpush.msrb.mxu3 %v3381_v23  ;;  %v3377_v24 = vld [vmem:[#allocation8 + $0x308] sm:$0xff] }
 0x599   : > { %v3158_v63 = vadd.f32 %v3157_v42, %v7637_v2  ;;  %v7642_v42 = vld [vmem:[#allocation50_spill] sm:$0xff]  ;;  %v3376_v16 = vld [vmem:[#allocation8 + $0x300] sm:$0xff] }
 0x59a   : > { %3438 = vmatpush.msra.mxu0 %v3377_v24  ;;  %4440 = vmatpush.msrb.mxu3 %v3380_v32  ;;  %v7644_v32 = vld [vmem:[#allocation42_spill] sm:$0xff] }
 0x59b   : > { %3199 = vmatmul.f32.gmra.mxu1 %v7635_v27 }
 0x59c   : > { %3280 = vmatmul.f32.gmra.mxu2 %v7636_v25  ;;  %3439 = vmatpush.msra.mxu0 %v3376_v16 }
 0x59d   : > { %3361 = vmatmul.f32.gmra.mxu3 %v7638_v59  ;;  %3440 = vmatmul.f32.vlgmr.msra.gmra.mxu0 %v6466_v13  ;;  %v7647_v13 = vld [vmem:[#allocation27_spill] sm:$0xff] }
 0x59e   : > { %4441 = vmatpush.msrb.mxu3 %v3379_v48 }
 0x59f   : > { %v3238_v43 = vpop.f32.mrf.mxu2 }
 0x5a0   : > { %v3239_v15 = vadd.f32 %v3238_v43, %v3158_v63  ;;  %v3160_v45 = vpop.f32.mrf.mxu1  ;;  %v3319_v40 = vpop.f32.mrf.mxu3  ;;  %4442 = vmatpush.msrb.mxu3 %v3378_v14  ;;  %v7643_v63 = vld [vmem:[#allocation28_spill] sm:$0xff]  ;;  %v7645_v43 = vld [vmem:[#allocation54_spill] sm:$0xff]  ;;  %v7648_v14 = vld [vmem:[#allocation89_spill] sm:$0xff] }
 0x5a1   : > { %v3161_v39 = vadd.f32 %v3160_v45, %v7641_v30  ;;  %v7649_v30 = vld [vmem:[#allocation59_spill] sm:$0xff] }
 0x5a2   : > { %v6813_v55 = vadd.f32 %v3319_v40, %v3239_v15  ;;  %4443 = vmatpush.msrb.mxu3 %v3377_v24  ;;  %v7646_v40 = vld [vmem:[#allocation29_spill] sm:$0xff] }
 0x5a3   : > { %3202 = vmatmul.f32.gmra.mxu1 %v7639_v6 }
 0x5a4   : > { %3283 = vmatmul.f32.gmra.mxu2 %v7640_v5  ;;  %4444 = vmatpush.msrb.mxu3 %v3376_v16 }
 0x5a5   : > { %3364 = vmatmul.f32.gmra.mxu3 %v7642_v42  ;;  %3443 = vmatmul.f32.gmra.mxu0 %v6477_v36  ;;  %v7651_v36 = vld [vmem:[#allocation60_spill] sm:$0xff] }
 0x5a7   : > { %v3241_v25 = vpop.f32.mrf.mxu2 }
 0x5a8   : > { %v3242_v50 = vadd.f32 %v3241_v25, %v3161_v39  ;;  %v3163_v61 = vpop.f32.mrf.mxu1  ;;  %v3322_v23 = vpop.f32.mrf.mxu3 }
 0x5a9   : > { %v7650_v61 = vld [vmem:[#allocation49_spill] sm:$0xff] }
 0x5aa   : > { %v6820_v2 = vadd.f32 %v3322_v23, %v3242_v50 }
 0x5ab   : > { %3204 = vmatmul.f32.gmra.mxu1 %v7643_v63 }
 0x5ac   : > { %3285 = vmatmul.f32.gmra.mxu2 %v7644_v32  ;;  %v7652_v32 = vld [vmem:[#allocation87_spill] sm:$0xff] }
 0x5ad   : > { %3366 = vmatmul.f32.gmra.mxu3 %v7645_v43  ;;  %3446 = vmatmul.f32.gmra.mxu0 %v6486_v53  ;;  %v4733_v53 = vld [vmem:[#allocation2 + $0x30] sm:$0xff] }
 0x5af   : > { %v3244_v15 = vpop.f32.mrf.mxu2 }
 0x5b0   : > { %v3165_v48 = vpop.f32.mrf.mxu1  ;;  %v3325_v45 = vpop.f32.mrf.mxu3 }
 0x5b1   : > { %v3166_v5 = vadd.f32 %v3165_v48, %v7648_v14 }
 0x5b3   : > { %3207 = vmatmul.f32.gmra.mxu1 %v7646_v40 }
 0x5b4   : > { %3288 = vmatmul.f32.gmra.mxu2 %v7647_v13 }
 0x5b5   : > { %3369 = vmatmul.f32.gmra.mxu3 %v7649_v30  ;;  %3448 = vmatmul.f32.gmra.mxu0 %v6505_v1 }
 0x5b7   : > { %v3246_v24 = vpop.f32.mrf.mxu2 }
 0x5b8   : > { %v3247_v39 = vadd.f32 %v3246_v24, %v3166_v5  ;;  %v3168_v16 = vpop.f32.mrf.mxu1  ;;  %v3327_v25 = vpop.f32.mrf.mxu3 }
 0x5b9   : > { %v3169_v23 = vadd.f32 %v3168_v16, %v6724_v31  ;;  %v4734_v31 = vld [vmem:[#allocation2 + $0x48] sm:$0xff] }
 0x5ba   : > { %v6831_v50 = vadd.f32 %v3327_v25, %v3247_v39 }
 0x5bb   : > { %3210 = vmatmul.f32.gmra.mxu1 %v7651_v36 }
 0x5bc   : > { %3291 = vmatmul.f32.gmra.mxu2 %v7650_v61 }
 0x5bd   : > { %3372 = vmatmul.f32.gmra.mxu3 %v7652_v32  ;;  %3451 = vmatmul.f32.gmra.mxu0 %v6516_v12 }
 0x5bf   : > { %v3249_v15 = vpop.f32.mrf.mxu2 }
 0x5c0   : > { %v3250_v48 = vadd.f32 %v3249_v15, %v3169_v23  ;;  %v3171_v45 = vpop.f32.mrf.mxu1  ;;  %v3330_v13 = vpop.f32.mrf.mxu3  ;;  %v4735_v15 = vld [vmem:[#allocation2 + $0x80] sm:$0xff] }
 0x5c2   : > { %v6838_v14 = vadd.f32 %v3330_v13, %v3250_v48 }
 0x5c3   : > { %3521 = vmatmul.f32.vlgmr.msra.gmra.mxu1 %v4733_v53 }
 0x5c4   : > { %3602 = vmatmul.f32.vlgmr.msra.gmra.mxu2 %v6469_v56 }
 0x5c5   : > { %3454 = vmatmul.f32.gmra.mxu0 %v6525_v60  ;;  %v4736_v60 = vld [vmem:[#allocation2 + $0x88] sm:$0xff] }
 0x5c7   : > { %v3252_v5 = vpop.f32.mrf.mxu2 }
 0x5c8   : > { %v3173_v24 = vpop.f32.mrf.mxu1  ;;  %v3333_v39 = vpop.f32.mrf.mxu3 }
 0x5c9   : > { %v3174_v16 = vadd.f32 %v3173_v24, %v6730_v29 }
 0x5cb   : > { %3524 = vmatmul.f32.gmra.mxu1 %v4734_v31 }
 0x5cc   : > { %3605 = vmatmul.f32.gmra.mxu2 %v6480_v47 }
 0x5cd   : > { %3456 = vmatmul.f32.gmra.mxu0 %v6544_v33 }
 0x5cf   : > { %v3254_v1 = vpop.f32.mrf.mxu2 }
 0x5d0   : > { %v3255_v25 = vadd.f32 %v3254_v1, %v3174_v16  ;;  %v3176_v61 = vpop.f32.mrf.mxu1  ;;  %v3335_v23 = vpop.f32.mrf.mxu3  ;;  %v4738_v1 = vld [vmem:[#allocation2 + $0xb8] sm:$0xff] }
 0x5d1   : > { %v3177_v12 = vadd.f32 %v3176_v61, %v6733_v7  ;;  %v4737_v7 = vld [vmem:[#allocation2 + $0xe8] sm:$0xff] }
 0x5d2   : > { %v6845_v56 = vadd.f32 %v3335_v23, %v3255_v25 }
 0x5d3   : > { %3527 = vmatmul.f32.gmra.mxu1 %v4735_v15 }
 0x5d4   : > { %3608 = vmatmul.f32.gmra.mxu2 %v6493_v18 }
 0x5d5   : > { %3459 = vmatmul.f32.gmra.mxu0 %v6555_v62 }
 0x5d7   : > { %v3257_v48 = vpop.f32.mrf.mxu2 }
 0x5d8   : > { %v3258_v47 = vadd.f32 %v3257_v48, %v3177_v12  ;;  %v3179_v45 = vpop.f32.mrf.mxu1  ;;  %v3338_v29 = vpop.f32.mrf.mxu3 }
 0x5da   : > { %v6850_v13 = vadd.f32 %v3338_v29, %v3258_v47 }
 0x5db   : > { %3529 = vmatmul.f32.gmra.mxu1 %v4736_v60  ;;  %v4741_v60 = vld [vmem:[#allocation2 + $0x70] sm:$0xff] }
 0x5dc   : > { %3610 = vmatmul.f32.gmra.mxu2 %v6508_v49 }
 0x5dd   : > { %3462 = vmatmul.f32.gmra.mxu0 %v6564_v38  ;;  %v4739_v38 = vld [vmem:[#allocation2 + $0x60] sm:$0xff] }
 0x5df   : > { %v3260_v53 = vpop.f32.mrf.mxu2 }
 0x5e0   : > { %v3181_v18 = vpop.f32.mrf.mxu1  ;;  %v3341_v5 = vpop.f32.mrf.mxu3 }
 0x5e1   : > { %v3182_v24 = vadd.f32 %v3181_v18, %v6741_v10 }
 0x5e3   : > { %3532 = vmatmul.f32.gmra.mxu1 %v4737_v7 }
 0x5e4   : > { %3613 = vmatmul.f32.gmra.mxu2 %v6519_v9 }
 0x5e5   : > { %3464 = vmatmul.f32.gmra.mxu0 %v6583_v46 }
 0x5e7   : > { %v3262_v33 = vpop.f32.mrf.mxu2 }
 0x5e8   : > { %v3263_v39 = vadd.f32 %v3262_v33, %v3182_v24  ;;  %v3184_v31 = vpop.f32.mrf.mxu1  ;;  %v3343_v16 = vpop.f32.mrf.mxu3 }
 0x5e9   : > { %v3185_v62 = vadd.f32 %v3184_v31, %v6746_v17  ;;  %v4740_v17 = vld [vmem:[#allocation2 + $0xa8] sm:$0xff] }
 0x5ea   : > { %v6857_v49 = vadd.f32 %v3343_v16, %v3263_v39 }
 0x5eb   : > { %3535 = vmatmul.f32.gmra.mxu1 %v4738_v1  ;;  %v4744_v1 = vld [vmem:[#allocation2 + $0x78] sm:$0xff] }
 0x5ec   : > { %3616 = vmatmul.f32.gmra.mxu2 %v6532_v37 }
 0x5ed   : > { %3467 = vmatmul.f32.gmra.mxu0 %v6594_v41 }
 0x5ef   : > { %v3265_v25 = vpop.f32.mrf.mxu2 }
 0x5f0   : > { %v3266_v9 = vadd.f32 %v3265_v25, %v3185_v62  ;;  %v3187_v61 = vpop.f32.mrf.mxu1  ;;  %v3346_v10 = vpop.f32.mrf.mxu3 }
 0x5f2   : > { %v6862_v23 = vadd.f32 %v3346_v10, %v3266_v9 }
 0x5f3   : > { %3537 = vmatmul.f32.gmra.mxu1 %v4739_v38 }
 0x5f4   : > { %3618 = vmatmul.f32.gmra.mxu2 %v6547_v19 }
 0x5f5   : > { %3470 = vmatmul.f32.gmra.mxu0 %v7628_v51  ;;  %v4742_v51 = vld [vmem:[#allocation2 + $0x40] sm:$0xff] }
 0x5f7   : > { %v3268_v15 = vpop.f32.mrf.mxu2 }
 0x5f8   : > { %v3189_v37 = vpop.f32.mrf.mxu1  ;;  %v3349_v12 = vpop.f32.mrf.mxu3 }
 0x5f9   : > { %v3190_v48 = vadd.f32 %v3189_v37, %v6754_v0 }
 0x5fb   : > { %3540 = vmatmul.f32.gmra.mxu1 %v4740_v17 }
 0x5fc   : > { %3621 = vmatmul.f32.gmra.mxu2 %v6558_v35 }
 0x5fd   : > { %3472 = vmatmul.f32.gmra.mxu0 %v7632_v21 }
 0x5ff   : > { %v3270_v46 = vpop.f32.mrf.mxu2 }
 0x600   : > { %v3271_v47 = vadd.f32 %v3270_v46, %v3190_v48  ;;  %v3192_v45 = vpop.f32.mrf.mxu1  ;;  %v3351_v29 = vpop.f32.mrf.mxu3 }
 0x601   : > { %v3193_v41 = vadd.f32 %v3192_v45, %v6759_v57  ;;  %v4743_v57 = vld [vmem:[#allocation2 + $0x8] sm:$0xff] }
 0x602   : > { %v6869_v19 = vadd.f32 %v3351_v29, %v3271_v47  ;;  %v7653_v29 = vld [vmem:[#allocation52_spill] sm:$0xff] }
 0x603   : > { %3543 = vmatmul.f32.gmra.mxu1 %v4741_v60 }
 0x604   : > { %3624 = vmatmul.f32.gmra.mxu2 %v6571_v4 }
 0x605   : > { %3475 = vmatmul.f32.gmra.mxu0 %v7635_v27 }
 0x607   : > { %v3273_v53 = vpop.f32.mrf.mxu2 }
 0x608   : > { %v3274_v35 = vadd.f32 %v3273_v53, %v3193_v41  ;;  %v3195_v18 = vpop.f32.mrf.mxu1  ;;  %v3354_v0 = vpop.f32.mrf.mxu3 }
 0x60a   : > { %v6874_v5 = vadd.f32 %v3354_v0, %v3274_v35 }
 0x60b   : > { %3545 = vmatmul.f32.gmra.mxu1 %v4742_v51  ;;  %v4749_v51 = vld [vmem:[#allocation2 + $0x90] sm:$0xff] }
 0x60c   : > { %3626 = vmatmul.f32.gmra.mxu2 %v6586_v26 }
 0x60d   : > { %3478 = vmatmul.f32.gmra.mxu0 %v7639_v6  ;;  %v4745_v6 = vld [vmem:[#allocation2 + $0xc0] sm:$0xff] }
 0x60f   : > { %v3276_v7 = vpop.f32.mrf.mxu2 }
 0x610   : > { %v3197_v4 = vpop.f32.mrf.mxu1  ;;  %v3357_v24 = vpop.f32.mrf.mxu3 }
 0x611   : > { %v3198_v33 = vadd.f32 %v3197_v4, %v6767_v54  ;;  %v3312_v24 = vadd.f32 %v6796_v34, %v6794_v3  ;;  %v4750_v34 = vld [vmem:[#allocation2 + $0xa0] sm:$0xff] }
 0x613   : > { %3548 = vmatmul.f32.gmra.mxu1 %v4743_v57  ;;  %v6910_v57 = vld [vmem:[%s7222_s5] ss:$0 sm:$0xff] }
 0x614   : > { %3629 = vmatmul.f32.gmra.mxu2 %v7627_v22 }
 0x615   : > { %3480 = vmatmul.f32.gmra.mxu0 %v7643_v63 }
 0x617   : > { %v3278_v21 = vpop.f32.mrf.mxu2 }
 0x618   : > { %v3279_v39 = vadd.f32 %v3278_v21, %v3198_v33  ;;  %v3200_v31 = vpop.f32.mrf.mxu1  ;;  %v3359_v16 = vpop.f32.mrf.mxu3  ;;  %v7655_v33 = vld [vmem:[#allocation31_spill] sm:$0xff] }
 0x619   : > { %v3201_v27 = vadd.f32 %v3200_v31, %v6772_v8  ;;  %v4746_v8 = vld [vmem:[#allocation2 + $0x10] sm:$0xff] }
 0x61a   : > { %v6881_v26 = vadd.f32 %v3359_v16, %v3279_v39  ;;  %v3441_v61 = vpop.f32.mrf.mxu0 }
 0x61b   : > { %3551 = vmatmul.f32.gmra.mxu1 %v4744_v1  ;;  %v6923_v1 = vld [vmem:[#allocation2 + $0xc8] sm:$0xff] }
 0x61c   : > { %3632 = vmatmul.f32.gmra.mxu2 %v7631_v52 }
 0x61d   : > { %3483 = vmatmul.f32.gmra.mxu0 %v7646_v40  ;;  %v4747_v40 = vld [vmem:[#allocation2 + $0x38] sm:$0xff] }
 0x61f   : > { %v3281_v62 = vpop.f32.mrf.mxu2 }
 0x620   : > { %v3282_v22 = vadd.f32 %v3281_v62, %v3201_v27  ;;  %v3203_v25 = vpop.f32.mrf.mxu1  ;;  %v3362_v54 = vpop.f32.mrf.mxu3  ;;  %v6925_v62 = vld [vmem:[#allocation2 + $0x20] sm:$0xff] }
 0x621   : > { %v2578_v25 = vrot.slane %v6925_v62, 7 }
 0x622   : > { %v6886_v9 = vadd.f32 %v3362_v54, %v3282_v22  ;;  %v3444_v15 = vpop.f32.mrf.mxu0  ;;  %v2646_v54 = vrot.slane %v6923_v1, 7 }
 0x623   : > { %3553 = vmatmul.f32.gmra.mxu1 %v4745_v6  ;;  %v3315_v6 = vadd.f32 %v6804_v58, %v6802_v11  ;;  %v7657_v58 = vld [vmem:[#allocation64_spill] sm:$0xff] }
 0x624   : > { %3634 = vmatmul.f32.gmra.mxu2 %v7634_v20 }
 0x625   : > { %3486 = vmatmul.f32.gmra.mxu0 %v7651_v36  ;;  %v4748_v36 = vld [vmem:[#allocation2 + $0x28] sm:$0xff] }
 0x627   : > { %v3284_v10 = vpop.f32.mrf.mxu2 }
 0x628   : > { %v3205_v52 = vpop.f32.mrf.mxu1  ;;  %v3365_v38 = vpop.f32.mrf.mxu3  ;;  %v6932_v10 = vld [vmem:[#allocation2 + $0xe0] sm:$0xff] }
 0x629   : > { %v3206_v63 = vadd.f32 %v3205_v52, %v6780_v28  ;;  %v2647_v38 = vrot.slane %v6932_v10, 7 }
 0x62a   : > { %v3447_v46 = vpop.f32.mrf.mxu0 }
 0x62b   : > { %3556 = vmatmul.f32.gmra.mxu1 %v4746_v8  ;;  %v2689_v8 = vsel %vm2609_vm8, %v2578_v25, %v2646_v54 }
 0x62c   : > { %3637 = vmatmul.f32.gmra.mxu2 %v7638_v59 }
 0x62d   : > { %3488 = vmatmul.f32.gmra.mxu0 %v7653_v29 }
 0x62f   : > { %v3286_v37 = vpop.f32.mrf.mxu2 }
 0x630   : > { %v3287_v12 = vadd.f32 %v3286_v37, %v3206_v63  ;;  %v3208_v20 = vpop.f32.mrf.mxu1  ;;  %v3367_v17 = vpop.f32.mrf.mxu3  ;;  %v2648_v63 = vsel %vm2609_vm8, %v2646_v54, %v2647_v38  ;;  %v4751_v37 = vld [vmem:[#allocation2 + $0x58] sm:$0xff] }
 0x631   : > { %v3209_v59 = vadd.f32 %v3208_v20, %v6785_v44  ;;  %3499 = vmatmul.f32.vlgmr.msrb.gmra.mxu3 %v2648_v63 }
 0x632   : > { %v6893_v48 = vadd.f32 %v3367_v17, %v3287_v12  ;;  %v3449_v53 = vpop.f32.mrf.mxu0 }
 0x633   : > { %3559 = vmatmul.f32.gmra.mxu1 %v4747_v40 }
 0x634   : > { %3640 = vmatmul.f32.gmra.mxu2 %v7642_v42  ;;  %v7654_v42 = vld [vmem:[#allocation32_spill] sm:$0xff] }
 0x635   : > { %3491 = vmatmul.f32.gmra.mxu0 %v7654_v42 }
 0x637   : > { %v3289_v47 = vpop.f32.mrf.mxu2 }
 0x638   : > { %v3290_v45 = vadd.f32 %v3289_v47, %v3209_v59  ;;  %v3370_v28 = vpop.f32.mrf.mxu3  ;;  %v3211_v60 = vpop.f32.mrf.mxu1 }
 0x63a   : > { %v6898_v41 = vadd.f32 %v3370_v28, %v3290_v45  ;;  %v6903_v7 = vpop.f32.mrf.mxu0  ;;  %v7658_v45 = vld [vmem:[#allocation118_spill] sm:$0xff]  ;;  %v4752_v28 = vld [vmem:[#allocation2 + $0xd0] sm:$0xff] }
 0x63b   : > { %3561 = vmatmul.f32.gmra.mxu1 %v4748_v36 }
 0x63c   : > { %3642 = vmatmul.f32.gmra.mxu2 %v7645_v43 }
 0x63d   : > { %3494 = vmatmul.f32.gmra.mxu0 %v7655_v33  ;;  %v6958_v33 = vld [vmem:[%s5128_s24 + $0x38] sm:$0xff] }
 0x63f   : > { %v3292_v35 = vpop.f32.mrf.mxu2 }
 0x640   : > { %v3522_v18 = vpop.f32.mrf.mxu1  ;;  %v3373_v0 = vpop.f32.mrf.mxu3 }
 0x641   : > { %v3523_v44 = vadd.f32 %v3522_v18, %v3441_v61 }
 0x642   : > { %v3455_v27 = vpop.f32.mrf.mxu0 }
 0x643   : > { %3564 = vmatmul.f32.gmra.mxu1 %v4749_v51  ;;  %v2736_v27 = vrot.slane %v6932_v10, 1 }
 0x644   : > { %3645 = vmatmul.f32.gmra.mxu2 %v7649_v30  ;;  %v6916_v30 = vld [vmem:[%s7656_s15] ss:$0 sm:$0xff] }
 0x645   : > { %3496 = vmatmul.f32.gmra.mxu0 %v2689_v8 }
 0x647   : > { %v3603_v4 = vpop.f32.mrf.mxu2 }
 0x648   : > { %v3604_v43 = vadd.f32 %v3603_v4, %v3523_v44  ;;  %v3525_v21 = vpop.f32.mrf.mxu1 }
 0x649   : > { %v3526_v3 = vadd.f32 %v3525_v21, %v3444_v15  ;;  %v7659_v21 = vld [vmem:[#allocation56_spill] sm:$0xff] }
 0x64a   : > { %v3667_v39 = vadd.f32 %v3604_v43, %v3312_v24  ;;  %v6946_v17 = vpop.f32.mrf.mxu0  ;;  %v4365_v43 = vld [vmem:[%s5128_s24 + $0x30] sm:$0xff] }
 0x64b   : > { %3567 = vmatmul.f32.gmra.mxu1 %v4750_v34  ;;  %v2735_v34 = vrot.slane %v6923_v1, 1 }
 0x64c   : > { %v3686_v31 = vmul.f32 %v6910_v57, %v3667_v39  ;;  %3648 = vmatmul.f32.gmra.mxu2 %v7652_v32 }
 0x64e   : > { %v6921_v16 = vadd.f32 %v6916_v30, %v3686_v31  ;;  %v4753_v31 = vld [vmem:[#allocation2 + $0x98] sm:$0xff] }
 0x64f   : > { %v3606_v22 = vpop.f32.mrf.mxu2 }
 0x650   : > { %v4349_v32 = vmul.f32 -1.442695, %v6921_v16  ;;  %v3607_v61 = vadd.f32 %v3606_v22, %v3526_v3  ;;  %v3528_v52 = vpop.f32.mrf.mxu1 }
 0x652   : > { %4669 = vpow2.f32 %v4349_v32  ;;  %v3668_v15 = vadd.f32 %v3607_v61, %v3315_v6  ;;  %v6950_v36 = vpop.f32.mrf.mxu0  ;;  %v4090_v6 = vrot.slane %v4365_v43, 1  ;;  %v4091_v32 = vrot.slane %v6958_v33, 1 }
 0x653   : > { %3569 = vmatmul.f32.gmra.mxu1 %v4751_v37 }
 0x654   : > { %v3687_v11 = vmul.f32 %v6910_v57, %v3668_v15  ;;  %3650 = vmatmul.f32.gmra.mxu2 %v7657_v58  ;;  %v2737_v58 = vsel %vm425_vm0, %v2735_v34, %v2736_v27 }
 0x656   : > { %v6944_v12 = vadd.f32 %v6916_v30, %v3687_v11 }
 0x657   : > { %v3609_v20 = vpop.f32.mrf.mxu2 }
 0x658   : > { %v4670_v40 = vpop.eup %4669  ;;  %v4350_v46 = vmul.f32 -1.442695, %v6944_v12  ;;  %v3530_v47 = vpop.f32.mrf.mxu1 }
 0x659   : > { %v3769_v59 = vadd.f32 1.0, %v4670_v40  ;;  %v3531_v29 = vadd.f32 %v3530_v47, %v3449_v53 }
 0x65a   : > { %4671 = vpow2.f32 %v4350_v46  ;;  %v3463_v52 = vpop.f32.mrf.mxu0 }
 0x65b   : > { %4673 = vrcp.f32 %v3769_v59  ;;  %3572 = vmatmul.f32.gmra.mxu1 %v4752_v28  ;;  %v3796_v3 = vand.u32 2147483648, %v3769_v59  ;;  %v3794_v22 = vand.u32 2147483647, %v3769_v59  ;;  %vm3790_vm10 = vweird.f32 %v3769_v59  ;;  %v4367_v28 = vld [vmem:[%s5128_s24 + $0x40] sm:$0xff] }
 0x65c   : > { %3653 = vmatmul.f32.gmra.mxu2 %v7658_v45 }
 0x65d   : > { %v3797_v11 = vor.u32 1.1754944e-38, %v3796_v3  ;;  %vm3795_vm12 = vcmp.eq.f32.partialorder %v3794_v22, 8.507059e+37 }
 0x65f   : > { %v3611_v60 = vpop.f32.mrf.mxu2 }
 0x660   : > { %v4672_v35 = vpop.eup %4671  ;;  %v3612_v42 = vadd.f32 %v3611_v60, %v3531_v29  ;;  %v3533_v44 = vpop.f32.mrf.mxu1 }
 0x661   : > { %v4674_v18 = vpop.eup %4673  ;;  %v6952_v0 = vadd.f32 1.0, %v4672_v35  ;;  %v3534_v39 = vadd.f32 %v3533_v44, %v6903_v7 }
 0x662   : > { %v3786_v51 = vmul.f32 %v4674_v18, %v3769_v59  ;;  %v3669_v4 = vadd.f32 %v3612_v42, %v6813_v55  ;;  %vm3791_vm9 = vweird.f32 %v4674_v18  ;;  %v4092_v59 = vsel %vm425_vm0, %v4090_v6, %v4091_v32 }
 0x663   : > { %4675 = vrcp.f32 %v6952_v0  ;;  %3575 = vmatmul.f32.gmra.mxu1 %v4753_v31  ;;  %vm3792_vm11 = vmor %vm3790_vm10, %vm3791_vm9  ;;  %v3811_v60 = vand.u32 2147483648, %v6952_v0  ;;  %v2738_v42 = vrot.slane %v6925_v62, 1  ;;  %vm3805_vm14 = vweird.f32 %v6952_v0 }
 0x664   : > { %v3787_v24 = vsub.f32 1.0, %v3786_v51  ;;  %v3688_v53 = vmul.f32 %v6910_v57, %v3669_v4  ;;  %3656 = vmatmul.f32.gmra.mxu2 %v7659_v21  ;;  %v3809_v51 = vand.u32 2147483647, %v6952_v0 }
 0x665   : > { %v2739_v31 = vsel %vm425_vm0, %v2736_v27, %v2738_v42 }
 0x666   : > { %v3788_v55 = vmul.f32 %v4674_v18, %v3787_v24  ;;  %v6966_v54 = vadd.f32 %v6916_v30, %v3688_v53  ;;  %v6986_v24 = vpop.f32.mrf.mxu0  ;;  %v3812_v53 = vor.u32 1.1754944e-38, %v3811_v60  ;;  %vm3810_vm1 = vcmp.eq.f32.partialorder %v3809_v51, 8.507059e+37 }
 0x667   : > { %v3614_v61 = vpop.f32.mrf.mxu2 }
 0x668   : > { %v3789_v8 = vadd.f32 %v4674_v18, %v3788_v55  ;;  %v4351_v7 = vmul.f32 -1.442695, %v6966_v54  ;;  %v3615_v15 = vadd.f32 %v3614_v61, %v3534_v39  ;;  %v3536_v37 = vpop.f32.mrf.mxu1 }
 0x669   : > { %v4676_v63 = vpop.eup %4675 }
 0x66a   : > { %v3793_v20 = vsel %vm3792_vm11, %v4674_v18, %v3789_v8  ;;  %v3801_v40 = vmul.f32 %v4676_v63, %v6952_v0  ;;  %4677 = vpow2.f32 %v4351_v7  ;;  %v3670_v47 = vadd.f32 %v3615_v15, %v6820_v2 }
 0x66b   : > { %v3798_v46 = vsel %vm3795_vm12, %v3797_v11, %v3793_v20  ;;  %3577 = vmatmul.f32.gmra.mxu1 %v6923_v1  ;;  %vm3806_vm13 = vweird.f32 %v4676_v63  ;;  %v4093_v2 = vrot.slane %v4367_v28, 1  ;;  %v4368_v20 = vld [vmem:[%s5128_s24 + $0x48] sm:$0xff] }
 0x66c   : > { %v4025_v45 = vmul.f32 %v3798_v46, %v6921_v16  ;;  %v3802_v29 = vsub.f32 1.0, %v3801_v40  ;;  %3658 = vmatmul.f32.gmra.mxu2 %v2737_v58  ;;  %v3689_v35 = vmul.f32 %v6910_v57, %v3670_v47  ;;  %vm3807_vm15 = vmor %vm3805_vm14, %vm3806_vm13  ;;  %v7002_v40 = vld [vmem:[%s5128_s24 + $0x50] sm:$0xff] }
 0x66d   : > { %v4094_v6 = vsel %vm425_vm0, %v4091_v32, %v4093_v2  ;;  %v4096_v28 = vrot.slane %v7002_v40, 1 }
 0x66e   : > { %v4146_v18 = vadd.f32 %v4092_v59, %v4025_v45  ;;  %v3803_v44 = vmul.f32 %v4676_v63, %v3802_v29  ;;  %v6984_v16 = vadd.f32 %v6916_v30, %v3689_v35  ;;  %v6996_v27 = vpop.f32.mrf.mxu0 }
 0x66f   : > { %v3617_v4 = vpop.f32.mrf.mxu2 }
 0x670   : > { %v4678_v43 = vpop.eup %4677  ;;  %4162 = vst [vmem:[%s6412_s19] sm:$0xff] %v4146_v18  ;;  %v3804_v33 = vadd.f32 %v4676_v63, %v3803_v44  ;;  %v4352_v39 = vmul.f32 -1.442695, %v6984_v16  ;;  %v3538_v3 = vpop.f32.mrf.mxu1  ;;  %v2789_v18 = vsel %vm425_vm0, %v2738_v42, %v2735_v34 }
 0x671   : > { %v3771_v21 = vadd.f32 1.0, %v4678_v43  ;;  %v3539_v0 = vadd.f32 %v3538_v3, %v6946_v17 }
 0x672   : > { %v3808_v55 = vsel %vm3807_vm15, %v4676_v63, %v3804_v33 }
 0x673   : > { %v3813_v22 = vsel %vm3810_vm1, %v3812_v53, %v3808_v55  ;;  %4679 = vrcp.f32 %v3771_v21  ;;  %3580 = vmatmul.f32.gmra.mxu1 %v6932_v10  ;;  %v3826_v59 = vand.u32 2147483648, %v3771_v21  ;;  %v3824_v45 = vand.u32 2147483647, %v3771_v21 }
 0x674   : > { %v4026_v61 = vmul.f32 %v3813_v22, %v6944_v12  ;;  %4681 = vpow2.f32 %v4352_v39  ;;  %3661 = vmatmul.f32.gmra.mxu2 %v2739_v31  ;;  %vm3820_vm3 = vweird.f32 %v3771_v21  ;;  %v4370_v39 = vld [vmem:[%s5128_s24 + $0x58] sm:$0xff] }
 0x675   : > { %v3827_v4 = vor.u32 1.1754944e-38, %v3826_v59  ;;  %vm3825_vm5 = vcmp.eq.f32.partialorder %v3824_v45, 8.507059e+37 }
 0x676   : > { %v4147_v52 = vadd.f32 %v4094_v6, %v4026_v61  ;;  %v3471_v35 = vpop.f32.mrf.mxu0 }
 0x677   : > { %v3619_v8 = vpop.f32.mrf.mxu2  ;;  %v4371_v35 = vld [vmem:[%s5128_s24 + $0x60] sm:$0xff] }
 0x678   : > { %4163 = vst [vmem:[%s6412_s19 + $0x8] sm:$0xff] %v4147_v52  ;;  %v3620_v7 = vadd.f32 %v3619_v8, %v3539_v0  ;;  %v3541_v63 = vpop.f32.mrf.mxu1  ;;  %v4098_v0 = vrot.slane %v4370_v39, 1 }
 0x679   : > { %v4680_v15 = vpop.eup %4679  ;;  %v3542_v46 = vadd.f32 %v3541_v63, %v6950_v36  ;;  %v2649_v36 = vsel %vm2609_vm8, %v2647_v38, %v2578_v25 }
 0x67a   : > { %v4682_v32 = vpop.eup %4681  ;;  %v3816_v11 = vmul.f32 %v4680_v15, %v3771_v21  ;;  %v3671_v12 = vadd.f32 %v3620_v7, %v6831_v50  ;;  %vm3821_vm2 = vweird.f32 %v4680_v15  ;;  %v4095_v50 = vrot.slane %v4368_v20, 1  ;;  %3502 = vmatmul.f32.gmra.mxu3 %v2649_v36 }
 0x67b   : > { %v3772_v58 = vadd.f32 1.0, %v4682_v32  ;;  %3583 = vmatmul.f32.gmra.mxu1 %v6925_v62  ;;  %vm3822_vm4 = vmor %vm3820_vm3, %vm3821_vm2 }
 0x67c   : > { %v3817_v37 = vsub.f32 1.0, %v3816_v11  ;;  %v3690_v17 = vmul.f32 %v6910_v57, %v3671_v12  ;;  %3664 = vmatmul.f32.gmra.mxu2 %v2789_v18  ;;  %v4097_v38 = vsel %vm425_vm0, %v4095_v50, %v4096_v28  ;;  %v4099_v12 = vsel %vm425_vm0, %v4096_v28, %v4098_v0  ;;  %v4372_v28 = vld [vmem:[%s5128_s24 + $0x68] sm:$0xff] }
 0x67d   : > { %4683 = vrcp.f32 %v3772_v58  ;;  %v3841_v3 = vand.u32 2147483648, %v3772_v58  ;;  %v3839_v61 = vand.u32 2147483647, %v3772_v58  ;;  %vm3835_vm7 = vweird.f32 %v3772_v58 }
 0x67e   : > { %v3818_v47 = vmul.f32 %v4680_v15, %v3817_v37  ;;  %v7008_v29 = vadd.f32 %v6916_v30, %v3690_v17  ;;  %v7029_v22 = vpop.f32.mrf.mxu0 }
 0x67f   : > { %v3622_v60 = vpop.f32.mrf.mxu2  ;;  %vm3840_vm9 = vcmp.eq.f32.partialorder %v3839_v61, 8.507059e+37 }
 0x680   : > { %v3819_v44 = vadd.f32 %v4680_v15, %v3818_v47  ;;  %v4353_v51 = vmul.f32 -1.442695, %v7008_v29  ;;  %v3623_v2 = vadd.f32 %v3622_v60, %v3542_v46  ;;  %v3544_v62 = vpop.f32.mrf.mxu1 }
 0x681   : > { %v4101_v62 = vrot.slane %v4372_v28, 1 }
 0x682   : > { %v3823_v43 = vsel %vm3822_vm4, %v4680_v15, %v3819_v44  ;;  %4685 = vpow2.f32 %v4353_v51  ;;  %v3672_v1 = vadd.f32 %v3623_v2, %v6838_v14  ;;  %v3842_v15 = vor.u32 1.1754944e-38, %v3841_v3 }
 0x683   : > { %v4684_v25 = vpop.eup %4683  ;;  %v3828_v10 = vsel %vm3825_vm5, %v3827_v4, %v3823_v43  ;;  %v4100_v4 = vrot.slane %v4371_v35, 1 }
 0x684   : > { %v4027_v34 = vmul.f32 %v3828_v10, %v6966_v54  ;;  %v3831_v42 = vmul.f32 %v4684_v25, %v3772_v58  ;;  %v3691_v33 = vmul.f32 %v6910_v57, %v3672_v1  ;;  %vm3836_vm6 = vweird.f32 %v4684_v25 }
 0x685   : > { %vm3837_vm8 = vmor %vm3835_vm7, %vm3836_vm6 }
 0x686   : > { %v4148_v53 = vadd.f32 %v4097_v38, %v4027_v34  ;;  %v3832_v21 = vsub.f32 1.0, %v3831_v42  ;;  %v7027_v31 = vadd.f32 %v6916_v30, %v3691_v33  ;;  %v7036_v40 = vpop.f32.mrf.mxu0 }
 0x687   : > { %v3625_v55 = vpop.f32.mrf.mxu2 }
 0x688   : > { %v4686_v14 = vpop.eup %4685  ;;  %4164 = vst [vmem:[%s6412_s19 + $0x10] sm:$0xff] %v4148_v53  ;;  %v3833_v6 = vmul.f32 %v4684_v25, %v3832_v21  ;;  %v4354_v54 = vmul.f32 -1.442695, %v7027_v31  ;;  %v3546_v8 = vpop.f32.mrf.mxu1  ;;  %v4102_v21 = vsel %vm425_vm0, %v4100_v4, %v4101_v62 }
 0x689   : > { %v3773_v52 = vadd.f32 1.0, %v4686_v14  ;;  %v3547_v32 = vadd.f32 %v3546_v8, %v6986_v24  ;;  %v4373_v14 = vld [vmem:[%s5128_s24 + $0x70] sm:$0xff] }
 0x68a   : > { %v3834_v7 = vadd.f32 %v4684_v25, %v3833_v6  ;;  %4687 = vpow2.f32 %v4354_v54  ;;  %v4103_v8 = vrot.slane %v4373_v14, 1 }
 0x68b   : > { %4689 = vrcp.f32 %v3773_v52  ;;  %v3856_v18 = vand.u32 2147483648, %v3773_v52  ;;  %v3854_v51 = vand.u32 2147483647, %v3773_v52  ;;  %vm3850_vm11 = vweird.f32 %v3773_v52 }
 0x68c   : > { %v3838_v63 = vsel %vm3837_vm8, %v4684_v25, %v3834_v7 }
 0x68d   : > { %v3843_v11 = vsel %vm3840_vm9, %v3842_v15, %v3838_v63  ;;  %vm3855_vm13 = vcmp.eq.f32.partialorder %v3854_v51, 8.507059e+37  ;;  %v4374_v51 = vld [vmem:[%s5128_s24 + $0x78] sm:$0xff] }
 0x68e   : > { %v4028_v37 = vmul.f32 %v3843_v11, %v6984_v16  ;;  %v3479_v1 = vpop.f32.mrf.mxu0 }
 0x68f   : > { %v3627_v20 = vpop.f32.mrf.mxu2 }
 0x690   : > { %v4688_v58 = vpop.eup %4687  ;;  %v4149_v17 = vadd.f32 %v4099_v12, %v4028_v37  ;;  %v3628_v46 = vadd.f32 %v3627_v20, %v3547_v32  ;;  %v3549_v45 = vpop.f32.mrf.mxu1 }
 0x691   : > { %v4690_v59 = vpop.eup %4689  ;;  %v3774_v47 = vadd.f32 1.0, %v4688_v58  ;;  %v3550_v16 = vadd.f32 %v3549_v45, %v6996_v27  ;;  %v3857_v27 = vor.u32 1.1754944e-38, %v3856_v18 }
 0x692   : > { %4165 = vst [vmem:[%s6412_s19 + $0x18] sm:$0xff] %v4149_v17  ;;  %v3846_v50 = vmul.f32 %v4690_v59, %v3773_v52  ;;  %v3673_v24 = vadd.f32 %v3628_v46, %v6845_v56  ;;  %vm3851_vm10 = vweird.f32 %v4690_v59  ;;  %v4104_v17 = vsel %vm425_vm0, %v4101_v62, %v4103_v8 }
 0x693   : > { %4691 = vrcp.f32 %v3774_v47  ;;  %vm3852_vm12 = vmor %vm3850_vm11, %vm3851_vm10  ;;  %v3871_v6 = vand.u32 2147483648, %v3774_v47  ;;  %v3869_v52 = vand.u32 2147483647, %v3774_v47  ;;  %vm3865_vm15 = vweird.f32 %v3774_v47 }
 0x694   : > { %v3847_v60 = vsub.f32 1.0, %v3846_v50  ;;  %v3692_v36 = vmul.f32 %v6910_v57, %v3673_v24 }
 0x695   : > { %vm3870_vm2 = vcmp.eq.f32.partialorder %v3869_v52, 8.507059e+37  ;;  %v4376_v52 = vld [vmem:[%s5128_s24 + $0x88] sm:$0xff] }
 0x696   : > { %v3848_v44 = vmul.f32 %v4690_v59, %v3847_v60  ;;  %v7045_v2 = vadd.f32 %v6916_v30, %v3692_v36  ;;  %v7056_v63 = vpop.f32.mrf.mxu0 }
 0x697   : > { %v3630_v43 = vpop.f32.mrf.mxu2 }
 0x698   : > { %v3849_v56 = vadd.f32 %v4690_v59, %v3848_v44  ;;  %v4355_v25 = vmul.f32 -1.442695, %v7045_v2  ;;  %v3631_v10 = vadd.f32 %v3630_v43, %v3550_v16  ;;  %v3552_v34 = vpop.f32.mrf.mxu1 }
 0x699   : > { %v4692_v38 = vpop.eup %4691 }
 0x69a   : > { %v3853_v42 = vsel %vm3852_vm12, %v4690_v59, %v3849_v56  ;;  %v3861_v33 = vmul.f32 %v4692_v38, %v3774_v47  ;;  %4693 = vpow2.f32 %v4355_v25  ;;  %v3674_v39 = vadd.f32 %v3631_v10, %v6850_v13 }
 0x69b   : > { %v3858_v53 = vsel %vm3855_vm13, %v3857_v27, %v3853_v42  ;;  %vm3866_vm14 = vweird.f32 %v4692_v38  ;;  %v4105_v25 = vrot.slane %v4374_v51, 1 }
 0x69c   : > { %v4029_v3 = vmul.f32 %v3858_v53, %v7008_v29  ;;  %v3862_v55 = vsub.f32 1.0, %v3861_v33  ;;  %v3693_v61 = vmul.f32 %v6910_v57, %v3674_v39  ;;  %vm3867_vm1 = vmor %vm3865_vm15, %vm3866_vm14  ;;  %v3872_v29 = vor.u32 1.1754944e-38, %v3871_v6 }
 0x69e   : > { %v4150_v54 = vadd.f32 %v4102_v21, %v4029_v3  ;;  %v3863_v0 = vmul.f32 %v4692_v38, %v3862_v55  ;;  %v7054_v7 = vadd.f32 %v6916_v30, %v3693_v61  ;;  %v7063_v50 = vpop.f32.mrf.mxu0 }
 0x69f   : > { %v3633_v15 = vpop.f32.mrf.mxu2 }
 0x6a0   : > { %v4694_v32 = vpop.eup %4693  ;;  %4166 = vst [vmem:[%s6412_s19 + $0x20] sm:$0xff] %v4150_v54  ;;  %v3864_v13 = vadd.f32 %v4692_v38, %v3863_v0  ;;  %v4356_v12 = vmul.f32 -1.442695, %v7054_v7  ;;  %v3554_v37 = vpop.f32.mrf.mxu1 }
 0x6a1   : > { %v3775_v11 = vadd.f32 1.0, %v4694_v32  ;;  %v3555_v59 = vadd.f32 %v3554_v37, %v7029_v22 }
 0x6a2   : > { %v3868_v20 = vsel %vm3867_vm1, %v4692_v38, %v3864_v13 }
 0x6a3   : > { %v3873_v58 = vsel %vm3870_vm2, %v3872_v29, %v3868_v20  ;;  %4695 = vrcp.f32 %v3775_v11  ;;  %v3886_v62 = vand.u32 2147483648, %v3775_v11  ;;  %v3884_v1 = vand.u32 2147483647, %v3775_v11 }
 0x6a4   : > { %v4030_v46 = vmul.f32 %v3873_v58, %v7027_v31  ;;  %4697 = vpow2.f32 %v4356_v12  ;;  %v4375_v31 = vld [vmem:[%s5128_s24 + $0x80] sm:$0xff]  ;;  %vm3880_vm4 = vweird.f32 %v3775_v11  ;;  %v4108_v12 = vrot.slane %v4376_v52, 1 }
 0x6a5   : > { %v4106_v10 = vrot.slane %v4375_v31, 1  ;;  %vm3885_vm6 = vcmp.eq.f32.partialorder %v3884_v1, 8.507059e+37 }
 0x6a6   : > { %v4151_v47 = vadd.f32 %v4104_v17, %v4030_v46 }
 0x6a7   : > { %v3635_v45 = vpop.f32.mrf.mxu2  ;;  %v4107_v55 = vsel %vm425_vm0, %v4105_v25, %v4106_v10 }
 0x6a8   : > { %4167 = vst [vmem:[%s6412_s19 + $0x28] sm:$0xff] %v4151_v47  ;;  %v3636_v24 = vadd.f32 %v3635_v45, %v3555_v59  ;;  %v3557_v35 = vpop.f32.mrf.mxu1  ;;  %v4109_v45 = vsel %vm425_vm0, %v4106_v10, %v4108_v12 }
 0x6a9   : > { %v4696_v60 = vpop.eup %4695  ;;  %v3558_v22 = vadd.f32 %v3557_v35, %v7036_v40  ;;  %v3887_v40 = vor.u32 1.1754944e-38, %v3886_v62  ;;  %v4378_v62 = vld [vmem:[%s5128_s24 + $0x98] sm:$0xff] }
 0x6aa   : > { %v4698_v28 = vpop.eup %4697  ;;  %v3876_v36 = vmul.f32 %v4696_v60, %v3775_v11  ;;  %v3675_v16 = vadd.f32 %v3636_v24, %v6857_v49  ;;  %vm3881_vm3 = vweird.f32 %v4696_v60  ;;  %v3487_v49 = vpop.f32.mrf.mxu0 }
 0x6ab   : > { %v3776_v18 = vadd.f32 1.0, %v4698_v28  ;;  %vm3882_vm5 = vmor %vm3880_vm4, %vm3881_vm3 }
 0x6ac   : > { %v3877_v44 = vsub.f32 1.0, %v3876_v36  ;;  %v3694_v4 = vmul.f32 %v6910_v57, %v3675_v16 }
 0x6ad   : > { %4699 = vrcp.f32 %v3776_v18  ;;  %v3901_v15 = vand.u32 2147483648, %v3776_v18  ;;  %v3899_v11 = vand.u32 2147483647, %v3776_v18  ;;  %vm3895_vm8 = vweird.f32 %v3776_v18 }
 0x6ae   : > { %v3878_v43 = vmul.f32 %v4696_v60, %v3877_v44  ;;  %v7072_v56 = vadd.f32 %v6916_v30, %v3694_v4 }
 0x6af   : > { %v3638_v38 = vpop.f32.mrf.mxu2  ;;  %v3902_v17 = vor.u32 1.1754944e-38, %v3901_v15  ;;  %vm3900_vm10 = vcmp.eq.f32.partialorder %v3899_v11, 8.507059e+37 }
 0x6b0   : > { %v3879_v27 = vadd.f32 %v4696_v60, %v3878_v43  ;;  %v4357_v34 = vmul.f32 -1.442695, %v7072_v56  ;;  %v3639_v42 = vadd.f32 %v3638_v38, %v3558_v22  ;;  %v3560_v33 = vpop.f32.mrf.mxu1  ;;  %v4377_v22 = vld [vmem:[%s5128_s24 + $0x90] sm:$0xff] }
 0x6b1   : > { %v4110_v49 = vrot.slane %v4377_v22, 1  ;;  %v4380_v22 = vld [vmem:[%s5128_s24 + $0xa8] sm:$0xff] }
 0x6b2   : > { %v3883_v53 = vsel %vm3882_vm5, %v4696_v60, %v3879_v27  ;;  %4701 = vpow2.f32 %v4357_v34  ;;  %v3676_v21 = vadd.f32 %v3639_v42, %v6862_v23  ;;  %v7083_v13 = vpop.f32.mrf.mxu0  ;;  %v4111_v27 = vrot.slane %v4378_v62, 1  ;;  %v4381_v62 = vld [vmem:[%s5128_s24 + $0xb0] sm:$0xff] }
 0x6b3   : > { %v4700_v39 = vpop.eup %4699  ;;  %v3888_v3 = vsel %vm3885_vm6, %v3887_v40, %v3883_v53 }
 0x6b4   : > { %v4031_v14 = vmul.f32 %v3888_v3, %v7045_v2  ;;  %v3891_v6 = vmul.f32 %v4700_v39, %v3776_v18  ;;  %v3695_v61 = vmul.f32 %v6910_v57, %v3676_v21  ;;  %vm3896_vm7 = vweird.f32 %v4700_v39 }
 0x6b5   : > { %vm3897_vm9 = vmor %vm3895_vm8, %vm3896_vm7 }
 0x6b6   : > { %v4152_v54 = vadd.f32 %v4107_v55, %v4031_v14  ;;  %v3892_v0 = vsub.f32 1.0, %v3891_v6  ;;  %v7081_v8 = vadd.f32 %v6916_v30, %v3695_v61  ;;  %v4112_v14 = vsel %vm425_vm0, %v4110_v49, %v4111_v27 }
 0x6b7   : > { %v3641_v32 = vpop.f32.mrf.mxu2  ;;  %v4116_v49 = vrot.slane %v4381_v62, 1 }
 0x6b8   : > { %v4702_v23 = vpop.eup %4701  ;;  %4168 = vst [vmem:[%s6412_s19 + $0x30] sm:$0xff] %v4152_v54  ;;  %v3893_v29 = vmul.f32 %v4700_v39, %v3892_v0  ;;  %v4358_v2 = vmul.f32 -1.442695, %v7081_v8  ;;  %v3562_v20 = vpop.f32.mrf.mxu1  ;;  %v4379_v0 = vld [vmem:[%s5128_s24 + $0xa0] sm:$0xff] }
 0x6b9   : > { %v3777_v37 = vadd.f32 1.0, %v4702_v23  ;;  %v3563_v59 = vadd.f32 %v3562_v20, %v7056_v63  ;;  %v4113_v11 = vrot.slane %v4379_v0, 1 }
 0x6ba   : > { %v3894_v58 = vadd.f32 %v4700_v39, %v3893_v29  ;;  %4703 = vpow2.f32 %v4358_v2  ;;  %v7090_v35 = vpop.f32.mrf.mxu0 }
 0x6bb   : > { %4705 = vrcp.f32 %v3777_v37  ;;  %v3916_v1 = vand.u32 2147483648, %v3777_v37  ;;  %v3914_v10 = vand.u32 2147483647, %v3777_v37  ;;  %vm3910_vm12 = vweird.f32 %v3777_v37 }
 0x6bc   : > { %v3898_v46 = vsel %vm3897_vm9, %v4700_v39, %v3894_v58 }
 0x6bd   : > { %v3903_v47 = vsel %vm3900_vm10, %v3902_v17, %v3898_v46  ;;  %vm3915_vm14 = vcmp.eq.f32.partialorder %v3914_v10, 8.507059e+37  ;;  %v4115_v10 = vrot.slane %v4380_v22, 1 }
 0x6be   : > { %v4032_v24 = vmul.f32 %v3903_v47, %v7054_v7  ;;  %v4114_v47 = vsel %vm425_vm0, %v4111_v27, %v4113_v11 }
 0x6bf   : > { %v3643_v60 = vpop.f32.mrf.mxu2 }
 0x6c0   : > { %v4704_v28 = vpop.eup %4703  ;;  %v4153_v36 = vadd.f32 %v4109_v45, %v4032_v24  ;;  %v3644_v16 = vadd.f32 %v3643_v60, %v3563_v59  ;;  %v3565_v51 = vpop.f32.mrf.mxu1 }
 0x6c1   : > { %v4706_v18 = vpop.eup %4705  ;;  %v3778_v44 = vadd.f32 1.0, %v4704_v28  ;;  %v3566_v7 = vadd.f32 %v3565_v51, %v7063_v50  ;;  %v3917_v50 = vor.u32 1.1754944e-38, %v3916_v1 }
 0x6c2   : > { %4169 = vst [vmem:[%s6412_s19 + $0x38] sm:$0xff] %v4153_v36  ;;  %v3906_v31 = vmul.f32 %v4706_v18, %v3777_v37  ;;  %v3677_v63 = vadd.f32 %v3644_v16, %v6869_v19  ;;  %vm3911_vm11 = vweird.f32 %v4706_v18  ;;  %v3495_v42 = vpop.f32.mrf.mxu0 }
 0x6c3   : > { %4707 = vrcp.f32 %v3778_v44  ;;  %vm3912_vm13 = vmor %vm3910_vm12, %vm3911_vm11  ;;  %v3931_v52 = vand.u32 2147483648, %v3778_v44  ;;  %v3929_v29 = vand.u32 2147483647, %v3778_v44  ;;  %vm3925_vm1 = vweird.f32 %v3778_v44 }
 0x6c4   : > { %v3907_v4 = vsub.f32 1.0, %v3906_v31  ;;  %v3696_v43 = vmul.f32 %v6910_v57, %v3677_v63 }
 0x6c5   : > { %vm3930_vm3 = vcmp.eq.f32.partialorder %v3929_v29, 8.507059e+37 }
 0x6c6   : > { %v3908_v25 = vmul.f32 %v4706_v18, %v3907_v4  ;;  %v7099_v38 = vadd.f32 %v6916_v30, %v3696_v43 }
 0x6c7   : > { %v3646_v34 = vpop.f32.mrf.mxu2 }
 0x6c8   : > { %v3909_v19 = vadd.f32 %v4706_v18, %v3908_v25  ;;  %v4359_v40 = vmul.f32 -1.442695, %v7099_v38  ;;  %v3647_v33 = vadd.f32 %v3646_v34, %v3566_v7  ;;  %v3568_v21 = vpop.f32.mrf.mxu1 }
 0x6c9   : > { %v4708_v53 = vpop.eup %4707  ;;  %v4117_v21 = vsel %vm425_vm0, %v4115_v10, %v4116_v49 }
 0x6ca   : > { %v3913_v39 = vsel %vm3912_vm13, %v4706_v18, %v3909_v19  ;;  %v3921_v3 = vmul.f32 %v4708_v53, %v3778_v44  ;;  %4709 = vpow2.f32 %v4359_v40  ;;  %v3678_v6 = vadd.f32 %v3647_v33, %v6874_v5  ;;  %v3497_v11 = vpop.f32.mrf.mxu0 }
 0x6cb   : > { %v3918_v55 = vsel %vm3915_vm14, %v3917_v50, %v3913_v39  ;;  %vm3926_vm15 = vweird.f32 %v4708_v53  ;;  %v3932_v5 = vor.u32 1.1754944e-38, %v3931_v52 }
 0x6cc   : > { %v4033_v61 = vmul.f32 %v3918_v55, %v7072_v56  ;;  %v3922_v54 = vsub.f32 1.0, %v3921_v3  ;;  %v3697_v15 = vmul.f32 %v6910_v57, %v3678_v6  ;;  %vm3927_vm2 = vmor %vm3925_vm1, %vm3926_vm15 }
 0x6ce   : > { %v4154_v32 = vadd.f32 %v4112_v14, %v4033_v61  ;;  %v3923_v23 = vmul.f32 %v4708_v53, %v3922_v54  ;;  %v7108_v2 = vadd.f32 %v6916_v30, %v3697_v15  ;;  %v4382_v61 = vld [vmem:[%s5128_s24 + $0xb8] sm:$0xff] }
 0x6cf   : > { %v3649_v12 = vpop.f32.mrf.mxu2  ;;  %v4118_v29 = vrot.slane %v4382_v61, 1  ;;  %v4755_v61 = vld [vmem:[%s7656_s15] ss:$0 sm:$0xff] }
 0x6d0   : > { %v4710_v37 = vpop.eup %4709  ;;  %4170 = vst [vmem:[%s6412_s19 + $0x40] sm:$0xff] %v4154_v32  ;;  %v3924_v20 = vadd.f32 %v4708_v53, %v3923_v23  ;;  %v4360_v58 = vmul.f32 -1.442695, %v7108_v2  ;;  %v3570_v17 = vpop.f32.mrf.mxu1 }
 0x6d1   : > { %v3779_v56 = vadd.f32 1.0, %v4710_v37  ;;  %v3571_v24 = vadd.f32 %v3570_v17, %v7083_v13  ;;  %v4119_v17 = vsel %vm425_vm0, %v4116_v49, %v4118_v29 }
 0x6d2   : > { %v3928_v46 = vsel %vm3927_vm2, %v4708_v53, %v3924_v20 }
 0x6d3   : > { %v3933_v59 = vsel %vm3930_vm3, %v3932_v5, %v3928_v46  ;;  %4711 = vrcp.f32 %v3779_v56  ;;  %v3946_v7 = vand.u32 2147483648, %v3779_v56  ;;  %v3944_v1 = vand.u32 2147483647, %v3779_v56 }
 0x6d4   : > { %v4034_v45 = vmul.f32 %v3933_v59, %v7081_v8  ;;  %4713 = vpow2.f32 %v4360_v58  ;;  %vm3940_vm5 = vweird.f32 %v3779_v56 }
 0x6d5   : > { %v3947_v19 = vor.u32 1.1754944e-38, %v3946_v7  ;;  %vm3945_vm7 = vcmp.eq.f32.partialorder %v3944_v1, 8.507059e+37 }
 0x6d6   : > { %v4155_v60 = vadd.f32 %v4114_v47, %v4034_v45 }
 0x6d7   : > { %v3651_v28 = vpop.f32.mrf.mxu2 }
 0x6d8   : > { %4171 = vst [vmem:[%s6412_s19 + $0x48] sm:$0xff] %v4155_v60  ;;  %v3652_v36 = vadd.f32 %v3651_v28, %v3571_v24  ;;  %v3573_v18 = vpop.f32.mrf.mxu1 }
 0x6d9   : > { %v4712_v16 = vpop.eup %4711  ;;  %v3574_v8 = vadd.f32 %v3573_v18, %v7090_v35 }
 0x6da   : > { %v4714_v44 = vpop.eup %4713  ;;  %v3936_v51 = vmul.f32 %v4712_v16, %v3779_v56  ;;  %v3679_v31 = vadd.f32 %v3652_v36, %v6881_v26  ;;  %vm3941_vm4 = vweird.f32 %v4712_v16  ;;  %v3500_v36 = vpop.f32.mrf.mxu3 }
 0x6db   : > { %v3780_v63 = vadd.f32 1.0, %v4714_v44  ;;  %vm3942_vm6 = vmor %vm3940_vm5, %vm3941_vm4 }
 0x6dc   : > { %v3937_v4 = vsub.f32 1.0, %v3936_v51  ;;  %v3698_v43 = vmul.f32 %v6910_v57, %v3679_v31  ;;  %v4383_v31 = vld [vmem:[%s5128_s24 + $0xc0] sm:$0xff] }
 0x6dd   : > { %4715 = vrcp.f32 %v3780_v63  ;;  %v3961_v0 = vand.u32 2147483648, %v3780_v63  ;;  %v3959_v32 = vand.u32 2147483647, %v3780_v63  ;;  %vm3955_vm9 = vweird.f32 %v3780_v63 }
 0x6de   : > { %v3938_v13 = vmul.f32 %v4712_v16, %v3937_v4  ;;  %v7122_v25 = vadd.f32 %v6916_v30, %v3698_v43  ;;  %v4120_v7 = vrot.slane %v4383_v31, 1 }
 0x6df   : > { %v3654_v27 = vpop.f32.mrf.mxu2  ;;  %v3962_v20 = vor.u32 1.1754944e-38, %v3961_v0  ;;  %vm3960_vm11 = vcmp.eq.f32.partialorder %v3959_v32, 8.507059e+37 }
 0x6e0   : > { %v3939_v26 = vadd.f32 %v4712_v16, %v3938_v13  ;;  %v4361_v34 = vmul.f32 -1.442695, %v7122_v25  ;;  %v3655_v42 = vadd.f32 %v3654_v27, %v3574_v8  ;;  %v3576_v35 = vpop.f32.mrf.mxu1 }
 0x6e2   : > { %v3943_v40 = vsel %vm3942_vm6, %v4712_v16, %v3939_v26  ;;  %4717 = vpow2.f32 %v4361_v34  ;;  %v3680_v33 = vadd.f32 %v3655_v42, %v6886_v9 }
 0x6e3   : > { %v4716_v53 = vpop.eup %4715  ;;  %v3948_v50 = vsel %vm3945_vm7, %v3947_v19, %v3943_v40 }
 0x6e4   : > { %v4035_v39 = vmul.f32 %v3948_v50, %v7099_v38  ;;  %v3951_v3 = vmul.f32 %v4716_v53, %v3780_v63  ;;  %v3699_v55 = vmul.f32 %v6910_v57, %v3680_v33  ;;  %vm3956_vm8 = vweird.f32 %v4716_v53  ;;  %v4384_v63 = vld [vmem:[%s5128_s24 + $0xc8] sm:$0xff] }
 0x6e5   : > { %vm3957_vm10 = vmor %vm3955_vm9, %vm3956_vm8  ;;  %v4121_v13 = vrot.slane %v4384_v63, 1 }
 0x6e6   : > { %v4156_v14 = vadd.f32 %v4117_v21, %v4035_v39  ;;  %v3952_v6 = vsub.f32 1.0, %v3951_v3  ;;  %v7131_v54 = vadd.f32 %v6916_v30, %v3699_v55  ;;  %v4754_v21 = vld [vmem:[%s7222_s5] ss:$0 sm:$0xff] }
 0x6e7   : > { %v3657_v52 = vpop.f32.mrf.mxu2 }
 0x6e8   : > { %v4718_v15 = vpop.eup %4717  ;;  %4172 = vst [vmem:[%s6412_s19 + $0x50] sm:$0xff] %v4156_v14  ;;  %v3953_v9 = vmul.f32 %v4716_v53, %v3952_v6  ;;  %v4362_v23 = vmul.f32 -1.442695, %v7131_v54  ;;  %v3578_v12 = vpop.f32.mrf.mxu1 }
 0x6e9   : > { %v3781_v38 = vadd.f32 1.0, %v4718_v15  ;;  %v3579_v56 = vadd.f32 %v3578_v12, %v3497_v11 }
 0x6ea   : > { %v3954_v37 = vadd.f32 %v4716_v53, %v3953_v9  ;;  %4719 = vpow2.f32 %v4362_v23 }
 0x6eb   : > { %4721 = vrcp.f32 %v3781_v38  ;;  %v3974_v43 = vand.u32 2147483647, %v3781_v38  ;;  %vm3970_vm13 = vweird.f32 %v3781_v38 }
 0x6ec   : > { %v3958_v5 = vsel %vm3957_vm10, %v4716_v53, %v3954_v37  ;;  %v4385_v53 = vld [vmem:[%s5128_s24 + $0xd0] sm:$0xff] }
 0x6ed   : > { %v3963_v58 = vsel %vm3960_vm11, %v3962_v20, %v3958_v5  ;;  %vm3975_vm15 = vcmp.eq.f32.partialorder %v3974_v43, 8.507059e+37  ;;  %v4123_v6 = vrot.slane %v4385_v53, 1 }
 0x6ee   : > { %v4036_v46 = vmul.f32 %v3963_v58, %v7108_v2  ;;  %v3976_v2 = vand.u32 2147483648, %v3781_v38 }
 0x6ef   : > { %v3659_v59 = vpop.f32.mrf.mxu2  ;;  %v4124_v29 = vsel %vm425_vm0, %v4121_v13, %v4123_v6 }
 0x6f0   : > { %v4720_v47 = vpop.eup %4719  ;;  %v4157_v45 = vadd.f32 %v4119_v17, %v4036_v46  ;;  %v3660_v24 = vadd.f32 %v3659_v59, %v3579_v56  ;;  %v3581_v16 = vpop.f32.mrf.mxu1  ;;  %v4386_v46 = vld [vmem:[%s5128_s24 + $0xd8] sm:$0xff]  ;;  %v4387_v59 = vld [vmem:[%s5128_s24 + $0xe0] sm:$0xff] }
 0x6f1   : > { %v4722_v60 = vpop.eup %4721  ;;  %v3782_v28 = vadd.f32 1.0, %v4720_v47  ;;  %v3582_v22 = vadd.f32 %v3581_v16, %v3500_v36 }
 0x6f2   : > { %4173 = vst [vmem:[%s6412_s19 + $0x58] sm:$0xff] %v4157_v45  ;;  %v3966_v18 = vmul.f32 %v4722_v60, %v3781_v38  ;;  %v3681_v44 = vadd.f32 %v3660_v24, %v6893_v48  ;;  %vm3971_vm12 = vweird.f32 %v4722_v60 }
 0x6f3   : > { %4723 = vrcp.f32 %v3782_v28  ;;  %vm3972_vm14 = vmor %vm3970_vm13, %vm3971_vm12  ;;  %v3991_v50 = vand.u32 2147483648, %v3782_v28  ;;  %v3989_v14 = vand.u32 2147483647, %v3782_v28  ;;  %vm3985_vm2 = vweird.f32 %v3782_v28 }
 0x6f4   : > { %v3967_v51 = vsub.f32 1.0, %v3966_v18  ;;  %v3700_v4 = vmul.f32 %v6910_v57, %v3681_v44  ;;  %v3977_v57 = vor.u32 1.1754944e-38, %v3976_v2  ;;  %v4388_v2 = vld [vmem:[%s5128_s24 + $0xe8] sm:$0xff]  ;;  %s4194_s24 = sshll.u32 %s6412_s19, 4  ;;  %s4195_s24 = int_to_ptr.vmem [resolvable:$true] %s4194_s24 }
 0x6f5   : > { %v3992_v52 = vor.u32 1.1754944e-38, %v3991_v50  ;;  %vm3990_vm4 = vcmp.eq.f32.partialorder %v3989_v14, 8.507059e+37 }
 0x6f6   : > { %v3968_v62 = vmul.f32 %v4722_v60, %v3967_v51  ;;  %v7143_v8 = vadd.f32 %v6916_v30, %v3700_v4  ;;  %v4122_v30 = vsel %vm425_vm0, %v4120_v7, %v4121_v13  ;;  %v4128_v13 = vrot.slane %v4388_v2, 1 }
 0x6f7   : > { %v3662_v1 = vpop.f32.mrf.mxu2 }
 0x6f8   : > { %v3969_v10 = vadd.f32 %v4722_v60, %v3968_v62  ;;  %v4363_v48 = vmul.f32 -1.442695, %v7143_v8  ;;  %v3663_v49 = vadd.f32 %v3662_v1, %v3582_v22  ;;  %v3584_v26 = vpop.f32.mrf.mxu1 }
 0x6f9   : > { %v4724_v27 = vpop.eup %4723 }
 0x6fa   : > { %v3973_v34 = vsel %vm3972_vm14, %v4722_v60, %v3969_v10  ;;  %v3981_v42 = vmul.f32 %v4724_v27, %v3782_v28  ;;  %4725 = vpow2.f32 %v4363_v48  ;;  %v3682_v35 = vadd.f32 %v3663_v49, %v6898_v41 }
 0x6fb   : > { %v3978_v19 = vsel %vm3975_vm15, %v3977_v57, %v3973_v34  ;;  %vm3986_vm1 = vweird.f32 %v4724_v27  ;;  %v4125_v60 = vrot.slane %v4386_v46, 1  ;;  %v4126_v28 = vrot.slane %v4387_v59, 1 }
 0x6fc   : > { %v4037_v40 = vmul.f32 %v3978_v19, %v7122_v25  ;;  %v3982_v33 = vsub.f32 1.0, %v3981_v42  ;;  %v3701_v39 = vmul.f32 %v4754_v21, %v3682_v35  ;;  %vm3987_vm3 = vmor %vm3985_vm2, %vm3986_vm1 }
 0x6fd   : > { %v3503_v38 = vpop.f32.mrf.mxu3  ;;  %v4127_v51 = vsel %vm425_vm0, %v4125_v60, %v4126_v28  ;;  %v4129_v49 = vsel %vm425_vm0, %v4126_v28, %v4128_v13 }
 0x6fe   : > { %v4158_v3 = vadd.f32 %v4122_v30, %v4037_v40  ;;  %v3983_v55 = vmul.f32 %v4724_v27, %v3982_v33  ;;  %v7156_v41 = vadd.f32 %v4755_v61, %v3701_v39 }
 0x6ff   : > { %v3665_v11 = vpop.f32.mrf.mxu2 }
 0x700   : > { %v4726_v25 = vpop.eup %4725  ;;  %4174 = vst [vmem:[%s6412_s19 + $0x60] sm:$0xff] %v4158_v3  ;;  %v3984_v0 = vadd.f32 %v4724_v27, %v3983_v55  ;;  %v4364_v9 = vmul.f32 -1.442695, %v7156_v41 }
 0x701   : > { %v3783_v15 = vadd.f32 1.0, %v4726_v25 }
 0x702   : > { %v3988_v32 = vsel %vm3987_vm3, %v4724_v27, %v3984_v0 }
 0x703   : > { %v3993_v23 = vsel %vm3990_vm4, %v3992_v52, %v3988_v32  ;;  %4727 = vrcp.f32 %v3783_v15  ;;  %v4006_v47 = vand.u32 2147483648, %v3783_v15  ;;  %v4004_v24 = vand.u32 2147483647, %v3783_v15 }
 0x704   : > { %v4038_v12 = vmul.f32 %v3993_v23, %v7131_v54  ;;  %4729 = vpow2.f32 %v4364_v9  ;;  %vm4000_vm6 = vweird.f32 %v3783_v15 }
 0x705   : > { %v4007_v36 = vor.u32 1.1754944e-38, %v4006_v47  ;;  %vm4005_vm8 = vcmp.eq.f32.partialorder %v4004_v24, 8.507059e+37 }
 0x706   : > { %v4159_v37 = vadd.f32 %v4124_v29, %v4038_v12 }
 0x708   : > { %4175 = vst [vmem:[%s6412_s19 + $0x68] sm:$0xff] %v4159_v37 }
 0x709   : > { %v4728_v20 = vpop.eup %4727 }
 0x70a   : > { %v4730_v5 = vpop.eup %4729  ;;  %v3996_v56 = vmul.f32 %v4728_v20, %v3783_v15  ;;  %vm4001_vm5 = vweird.f32 %v4728_v20 }
 0x70b   : > { %v3784_v58 = vadd.f32 1.0, %v4730_v5  ;;  %vm4002_vm7 = vmor %vm4000_vm6, %vm4001_vm5 }
 0x70c   : > { %v3997_v17 = vsub.f32 1.0, %v3996_v56 }
 0x70d   : > { %4731 = vrcp.f32 %v3784_v58  ;;  %v4021_v62 = vand.u32 2147483648, %v3784_v58  ;;  %v4019_v7 = vand.u32 2147483647, %v3784_v58  ;;  %vm4015_vm10 = vweird.f32 %v3784_v58 }
 0x70e   : > { %v3998_v45 = vmul.f32 %v4728_v20, %v3997_v17 }
 0x70f   : > { %vm4020_vm12 = vcmp.eq.f32.partialorder %v4019_v7, 8.507059e+37 }
 0x710   : > { %v3999_v54 = vadd.f32 %v4728_v20, %v3998_v45 }
 0x712   : > { %v4003_v16 = vsel %vm4002_vm7, %v4728_v20, %v3999_v54 }
 0x713   : > { %v4732_v18 = vpop.eup %4731  ;;  %v4008_v44 = vsel %vm4005_vm8, %v4007_v36, %v4003_v16 }
 0x714   : > { %v4039_v31 = vmul.f32 %v4008_v44, %v7143_v8  ;;  %v4011_v63 = vmul.f32 %v4732_v18, %v3784_v58  ;;  %vm4016_vm9 = vweird.f32 %v4732_v18  ;;  %v4022_v8 = vor.u32 1.1754944e-38, %v4021_v62 }
 0x715   : > { %vm4017_vm11 = vmor %vm4015_vm10, %vm4016_vm9 }
 0x716   : > { %v4160_v4 = vadd.f32 %v4127_v51, %v4039_v31  ;;  %v4012_v22 = vsub.f32 1.0, %v4011_v63 }
 0x718   : > { %4176 = vst [vmem:[%s6412_s19 + $0x70] sm:$0xff] %v4160_v4  ;;  %v4013_v43 = vmul.f32 %v4732_v18, %v4012_v22 }
 0x71a   : > { %v4014_v1 = vadd.f32 %v4732_v18, %v4013_v43 }
 0x71c   : > { %v4018_v10 = vsel %vm4017_vm11, %v4732_v18, %v4014_v1 }
 0x71d   : > { %v4023_v48 = vsel %vm4020_vm12, %v4022_v8, %v4018_v10 }
 0x71e   : > { %v4040_v27 = vmul.f32 %v4023_v48, %v7156_v41 }
 0x720   : > { %v4161_v57 = vadd.f32 %v4129_v49, %v4040_v27 }
 0x722   : > { %4177 = vst [vmem:[%s6412_s19 + $0x78] sm:$0xff] %v4161_v57 }
 0x723   : > { %4873 = shalt.err (!%p4870_p4)
}
 0x724   : > { %s4957_s1 = smov 128   ;;  %s4958_s19 = smov 8  }
 0x725   : > { %4459 = dma.vmem_to_hbm [thread:$0]  (%p5094_p2), %s4195_s24, 2048, %s4197_s21, %s4179_s9, %s4957_s1, %s4957_s1, %s4958_s19  }
 0x726 PF: > { %s7663_s28 = sld [smem:[#allocation15_spill]] }
 0x727   : > { %s7664_s8 = sld [smem:[#allocation13_spill]] }
 0x72c   : > { %p4482_p6 = scmp.ge.s32.totalorder %s7663_s28, 2 }
 0x72d   : > { %s4211_s12 = sand.u32 1, %s7664_s8  }
 0x72e   : > { %p4473_p8 = pnand %p4482_p6, %p5056_p5  ;;  %s4212_s27 = scalar_lea.sflag [#allocation5], %s4211_s12 }
 0x730   : > { %p4474_p9 = pneg %p4473_p8 }
 0x732   : > { %4915 = dma.done.wait (%p4474_p9), %s4212_s27, 2048  }
 0x733   : > { %4917 = vsyncadd (%p4474_p9), %s4212_s27, 4294965248  ;;  %s24_s8 = sadd.s32 1, %s7663_s28   ;;  %s7666_s17 = sld [smem:[#allocation17_spill]] }
 0x734   : > { %p21_p1 = scmp.ge.s32.totalorder %s24_s8, 6   ;;  %s7667_s18 = sld [smem:[#allocation19_spill]] }
 0x735   : > { %s7668_s24 = smov %s4924_s25  ;;  %s7669_s25 = smov %s4928_s26 }
 0x736   : > { %s7670_s26 = smov %s5111_s13  ;;  %s7671_s27 = smov %s4940_s29 }
 0x737   : > { %s7672_s28 = smov %s4944_s30  ;;  %23 = sbr.rel (!%p21_p1) target bundleno = 13 (0xd), region = 115 }
 0x739   : > { %s7673_s29 = smov %s7666_s17 }
 0x73a   : > { %s7674_s30 = smov %s7667_s18 }
 0x73c   :  { %4218 = vsyncpa [#allocation4], 1 }
 0x73d   :  { %4220 = vsyncpa [#allocation4 + $0x1], 1 }
 0x73e   :  { %4221 = vsyncpa [#allocation7], 1 }
 0x73f   :  { %4222 = vsyncpa [#allocation5], 1 }
 0x740   :  { %4224 = vsyncpa [#allocation5 + $0x1], 1 }

</bundles_post_ra>
